<compile_context>
chip_gen: v7x
topology: tpu7x:2x2x1
jax: 0.10.0
libtpu: 0.0.40
codegen_flags: <defaults>
</compile_context>

<pallas_src>
import jax
import jax.numpy as jnp
import numpy as np
from jax.experimental import pallas as pl
from jax.experimental.pallas import tpu as pltpu


# ------------------------------------------------------------------- kernel --

def fused_mnist_kernel(x_ref, m1_ref, s1_ref, b1_ref, m2_ref, s2_ref, b2_ref,
                       g_ref, dmask_ref, r_ref, fcb_ref, out_ref, a2_ref):
    f32 = jnp.float32
    bf16 = jnp.bfloat16

    # ---------------- layer 1: conv1(3x3,pad1) + ReLU + 2x2 maxpool ----------
    # x block: (1, 30, 30) zero-padded image.  Row taps are static ref slices.
    x_taps = [x_ref[0, kh:kh + 28, :].astype(bf16) for kh in range(3)]   # (28,30)
    corners1 = []
    for dx in range(2):                      # pool column offset (folded in m1)
        acc = jnp.zeros((28, 512), f32)
        for kh in range(3):
            acc = acc + jnp.dot(x_taps[kh], m1_ref[dx, kh],
                                preferred_element_type=f32)
        for dy in range(2):                  # pool row offset via selection matmul
            sel = jnp.dot(s1_ref[dy], acc, preferred_element_type=f32)   # (16,512)
            corners1.append(jnp.maximum(sel + b1_ref[...], 0.0))
    # pooled layer-1 output, already in padded layer-2 input layout (16, 512)
    a2_ref[...] = jnp.maximum(jnp.maximum(corners1[0], corners1[1]),
                              jnp.maximum(corners1[2], corners1[3]))

    # ---------------- layer 2: conv2(3x3,pad1) + ReLU + 2x2 maxpool ----------
    a2_taps = [a2_ref[kh:kh + 14, :].astype(bf16) for kh in range(3)]    # (14,512)
    corners2 = []
    for dx in range(2):
        acc = jnp.zeros((14, 448), f32)
        for kh in range(3):
            acc = acc + jnp.dot(a2_taps[kh], m2_ref[dx, kh],
                                preferred_element_type=f32)
        for dy in range(2):
            sel = jnp.dot(s2_ref[dy], acc, preferred_element_type=f32)   # (7,448)
            corners2.append(jnp.maximum(sel + b2_ref[...], 0.0))
    p = jnp.maximum(jnp.maximum(corners2[0], corners2[1]),
                    jnp.maximum(corners2[2], corners2[3]))               # (7,448)

    # ---------------- FC (flatten folded into g) + log_softmax ---------------
    z = jnp.dot(p.astype(bf16), g_ref[...], preferred_element_type=f32)  # (7,128)
    zr = jnp.dot(z * dmask_ref[...], r_ref[...],
                 preferred_element_type=f32)                             # (7,10)
    logits = fcb_ref[...] + jnp.sum(zr, axis=0, keepdims=True)           # (1,10)
    m = jnp.max(logits, axis=1, keepdims=True)
    lse = m + jnp.log(jnp.sum(jnp.exp(logits - m), axis=1, keepdims=True))
    out_ref[0, :, :] = logits - lse


# ----------------------------------------------------- one-time host prepare --

def prepare_kernel_params(params):
    """Smear conv/fc weights into the banded / selection matrices the kernel uses."""
    w1 = np.asarray(params["conv1_w"], np.float32)   # (32, 1, 3, 3)
    b1 = np.asarray(params["conv1_b"], np.float32)
    w2 = np.asarray(params["conv2_w"], np.float32)   # (64, 32, 3, 3)
    b2 = np.asarray(params["conv2_b"], np.float32)
    fw = np.asarray(params["fc_w"], np.float32)      # (10, 3136)
    fb = np.asarray(params["fc_b"], np.float32)

    C1, C2, NCLS = 32, 64, 10
    W1S, W2S, W3S = 28, 14, 7      # spatial sizes: conv1 out, pool1 out, pool2 out
    WP1, WP2 = 30, 16              # padded widths of layer-1 / layer-2 inputs
    L2, L3 = WP2 * C1, W3S * C2    # 512, 448

    # conv1 weights -> banded matrices, pool column offset dx folded in.
    m1 = np.zeros((2, 3, WP1, L2), np.float32)
    for dx in range(2):
        for kh in range(3):
            for j in range(W2S):
                for kw in range(3):
                    m1[dx, kh, 2 * j + dx + kw,
                       (j + 1) * C1:(j + 2) * C1] = w1[:, 0, kh, kw]

    # conv2 weights -> banded matrices (input lanes = padded_w*32 + ci).
    m2 = np.zeros((2, 3, L2, L3), np.float32)
    for dx in range(2):
        for kh in range(3):
            for j in range(W3S):
                for kw in range(3):
                    r0 = (2 * j + dx + kw) * C1
                    m2[dx, kh, r0:r0 + C1, j * C2:(j + 1) * C2] = w2[:, :, kh, kw].T

    # maxpool row-selection matrices (also produce the next layer's row padding).
    s1 = np.zeros((2, WP2, W1S), np.float32)         # (2, 16, 28)
    for dy in range(2):
        for i in range(W2S):
            s1[dy, i + 1, 2 * i + dy] = 1.0
    s2 = np.zeros((2, W3S, W2S), np.float32)         # (2, 7, 14)
    for dy in range(2):
        for i in range(W3S):
            s2[dy, i, 2 * i + dy] = 1.0

    # biases laid out on the (row, lane) grids, zero at padding positions.
    bias1 = np.zeros((WP2, L2), np.float32)
    bias1[1:1 + W2S, C1:(1 + W2S) * C1] = np.tile(b1, W2S)[None, :]
    bias2 = np.tile(b2, W3S)[None, :]                # (1, 448)

    # FC: fold torch's NCHW flatten (c*49 + h*7 + w) into a lane-dense matrix.
    g = np.zeros((L3, 128), np.float32)
    for h in range(7):
        for j in range(7):
            for c in range(C2):
                g[j * C2 + c, h * NCLS:(h + 1) * NCLS] = fw[:, c * 49 + h * 7 + j]
    dmask = np.zeros((7, 128), np.float32)
    rsel = np.zeros((128, NCLS), np.float32)
    for h in range(7):
        dmask[h, h * NCLS:(h + 1) * NCLS] = 1.0
        for n in range(NCLS):
            rsel[h * NCLS + n, n] = 1.0
    fcb = fb[None, :]                                # (1, 10)

    return {
        "m1": jnp.asarray(m1, jnp.bfloat16),
        "m2": jnp.asarray(m2, jnp.bfloat16),
        "s1": jnp.asarray(s1, jnp.float32),
        "s2": jnp.asarray(s2, jnp.float32),
        "bias1": jnp.asarray(bias1, jnp.float32),
        "bias2": jnp.asarray(bias2, jnp.float32),
        "g": jnp.asarray(g, jnp.bfloat16),
        "dmask": jnp.asarray(dmask, jnp.float32),
        "rsel": jnp.asarray(rsel, jnp.float32),
        "fcb": jnp.asarray(fcb, jnp.float32),
    }


# ------------------------------------------------------------------ forward --

def mnist_forward(x_nchw, kp):
    B = x_nchw.shape[0]
    xpad = jnp.pad(x_nchw[:, 0].astype(jnp.float32),
                   ((0, 0), (1, 1), (1, 1)))         # (B, 30, 30)
    out = pl.pallas_call(
        fused_mnist_kernel,
        out_shape=jax.ShapeDtypeStruct((B, 1, 10), jnp.float32),
        grid=(B,),
        in_specs=[
            pl.BlockSpec((1, 30, 30), lambda i: (i, 0, 0)),
            pl.BlockSpec(kp["m1"].shape, lambda i: (0, 0, 0, 0)),
            pl.BlockSpec(kp["s1"].shape, lambda i: (0, 0, 0)),
            pl.BlockSpec(kp["bias1"].shape, lambda i: (0, 0)),
            pl.BlockSpec(kp["m2"].shape, lambda i: (0, 0, 0, 0)),
            pl.BlockSpec(kp["s2"].shape, lambda i: (0, 0, 0)),
            pl.BlockSpec(kp["bias2"].shape, lambda i: (0, 0)),
            pl.BlockSpec(kp["g"].shape, lambda i: (0, 0)),
            pl.BlockSpec(kp["dmask"].shape, lambda i: (0, 0)),
            pl.BlockSpec(kp["rsel"].shape, lambda i: (0, 0)),
            pl.BlockSpec(kp["fcb"].shape, lambda i: (0, 0)),
        ],
        out_specs=pl.BlockSpec((1, 1, 10), lambda i: (i, 0, 0)),
        scratch_shapes=[pltpu.VMEM((16, 512), jnp.float32)],
        compiler_params=pltpu.CompilerParams(
            dimension_semantics=("parallel",),
            vmem_limit_bytes=32 * 1024 * 1024,
        ),
    )(xpad, kp["m1"], kp["s1"], kp["bias1"], kp["m2"], kp["s2"],
      kp["bias2"], kp["g"], kp["dmask"], kp["rsel"], kp["fcb"])
    return out.reshape(B, 10)


# --------------------------------------------------------------- reference --

def reference_forward(x, params):
    dn = ("NCHW", "OIHW", "NCHW")
    h = jax.lax.conv_general_dilated(x, params["conv1_w"], (1, 1),
                                     ((1, 1), (1, 1)), dimension_numbers=dn)
    h = jax.nn.relu(h + params["conv1_b"][None, :, None, None])
    h = jax.lax.reduce_window(h, -jnp.inf, jax.lax.max,
                              (1, 1, 2, 2), (1, 1, 2, 2), "VALID")
    h = jax.lax.conv_general_dilated(h, params["conv2_w"], (1, 1),
                                     ((1, 1), (1, 1)), dimension_numbers=dn)
    h = jax.nn.relu(h + params["conv2_b"][None, :, None, None])
    h = jax.lax.reduce_window(h, -jnp.inf, jax.lax.max,
                              (1, 1, 2, 2), (1, 1, 2, 2), "VALID")
    h = h.reshape(x.shape[0], -1)
    logits = h @ params["fc_w"].T + params["fc_b"]
    return jax.nn.log_softmax(logits, axis=1)


# -------------------------------------------------------------------- setup --

def init_params(key):
    ks = jax.random.split(key, 6)

    def uinit(k, shape, fan_in):
        bound = 1.0 / jnp.sqrt(fan_in)
        return jax.random.uniform(k, shape, jnp.float32, -bound, bound)

    return {
        "conv1_w": uinit(ks[0], (32, 1, 3, 3), 1 * 9),
        "conv1_b": uinit(ks[1], (32,), 1 * 9),
        "conv2_w": uinit(ks[2], (64, 32, 3, 3), 32 * 9),
        "conv2_b": uinit(ks[3], (64,), 32 * 9),
        "fc_w":    uinit(ks[4], (10, 64 * 7 * 7), 64 * 7 * 7),
        "fc_b":    uinit(ks[5], (10,), 64 * 7 * 7),
    }


if __name__ == "__main__":
    key = jax.random.PRNGKey(0)
    k_x, k_p = jax.random.split(key)

    # MNIST-shaped input (spatial 28 is required by the 64*7*7 FC layer)
    x = jax.random.normal(k_x, (2, 1, 28, 28), jnp.float32)
    params = init_params(k_p)
    kparams = prepare_kernel_params(params)   # one-time weight restructuring

    fwd = jax.jit(mnist_forward)
    out = jax.block_until_ready(fwd(x, kparams))
    ref = jax.block_until_ready(reference_forward(x, params))

    assert out.shape == (2, 10)
    assert bool(jnp.all(jnp.isfinite(out)))
    # log_softmax rows must exponentiate-sum to 1
    assert bool(jnp.allclose(jnp.sum(jnp.exp(out), axis=1), 1.0, atol=1e-4))
    # matches the f32 reference up to bf16-MXU tolerance
    assert bool(jnp.allclose(out, ref, atol=5e-2, rtol=0.0)), \
        float(jnp.max(jnp.abs(out - ref)))

    print("KERNEL_OK")
</pallas_src>

<mosaic_0001>
module attributes {stable_mosaic.version = 11 : i64} {
  func.func @fused_mnist_kernel(%arg0: i32, %arg1: memref<1x30x30xf32, #tpu.memory_space<vmem>>, %arg2: memref<2x3x30x512xbf16, #tpu.memory_space<vmem>>, %arg3: memref<2x16x28xf32, #tpu.memory_space<vmem>>, %arg4: memref<16x512xf32, #tpu.memory_space<vmem>>, %arg5: memref<2x3x512x448xbf16, #tpu.memory_space<vmem>>, %arg6: memref<2x7x14xf32, #tpu.memory_space<vmem>>, %arg7: memref<1x448xf32, #tpu.memory_space<vmem>>, %arg8: memref<448x128xbf16, #tpu.memory_space<vmem>>, %arg9: memref<7x128xf32, #tpu.memory_space<vmem>>, %arg10: memref<128x10xf32, #tpu.memory_space<vmem>>, %arg11: memref<1x10xf32, #tpu.memory_space<vmem>>, %arg12: memref<1x1x10xf32, #tpu.memory_space<vmem>>, %arg13: memref<16x512xf32, #tpu.memory_space<vmem>>) attributes {dimension_semantics = [#tpu.dimension_semantics<parallel>], iteration_bounds = array<i64: 2>, scalar_prefetch = 0 : i64, scratch_operands = 1 : i64, tpu.core_type = #tpu.core_type<tc>, window_params = [{transform_indices = @transform_0, window_bounds = array<i64: 1, 30, 30>}, {pipeline_mode = #tpu.pipeline_mode<synchronous>, transform_indices = @transform_1, window_bounds = array<i64: 2, 3, 30, 512>}, {pipeline_mode = #tpu.pipeline_mode<synchronous>, transform_indices = @transform_2, window_bounds = array<i64: 2, 16, 28>}, {pipeline_mode = #tpu.pipeline_mode<synchronous>, transform_indices = @transform_3, window_bounds = array<i64: 16, 512>}, {pipeline_mode = #tpu.pipeline_mode<synchronous>, transform_indices = @transform_4, window_bounds = array<i64: 2, 3, 512, 448>}, {pipeline_mode = #tpu.pipeline_mode<synchronous>, transform_indices = @transform_5, window_bounds = array<i64: 2, 7, 14>}, {pipeline_mode = #tpu.pipeline_mode<synchronous>, transform_indices = @transform_6, window_bounds = array<i64: 1, 448>}, {pipeline_mode = #tpu.pipeline_mode<synchronous>, transform_indices = @transform_7, window_bounds = array<i64: 448, 128>}, {pipeline_mode = #tpu.pipeline_mode<synchronous>, transform_indices = @transform_8, window_bounds = array<i64: 7, 128>}, {pipeline_mode = #tpu.pipeline_mode<synchronous>, transform_indices = @transform_9, window_bounds = array<i64: 128, 10>}, {pipeline_mode = #tpu.pipeline_mode<synchronous>, transform_indices = @transform_10, window_bounds = array<i64: 1, 10>}, {transform_indices = @transform_11, window_bounds = array<i64: 1, 1, 10>}]} {
    %c0 = arith.constant 0 : index
    %c0_0 = arith.constant 0 : index
    %c0_1 = arith.constant 0 : index
    %0 = vector.load %arg1[%c0, %c0_0, %c0_1] : memref<1x30x30xf32, #tpu.memory_space<vmem>>, vector<1x28x30xf32>
    %1 = vector.shape_cast %0 : vector<1x28x30xf32> to vector<28x30xf32>
    %2 = arith.truncf %1 : vector<28x30xf32> to vector<28x30xbf16>
    %c0_2 = arith.constant 0 : index
    %c1 = arith.constant 1 : index
    %c0_3 = arith.constant 0 : index
    %3 = vector.load %arg1[%c0_2, %c1, %c0_3] : memref<1x30x30xf32, #tpu.memory_space<vmem>>, vector<1x28x30xf32>
    %4 = vector.shape_cast %3 : vector<1x28x30xf32> to vector<28x30xf32>
    %5 = arith.truncf %4 : vector<28x30xf32> to vector<28x30xbf16>
    %c0_4 = arith.constant 0 : index
    %c2 = arith.constant 2 : index
    %c0_5 = arith.constant 0 : index
    %6 = vector.load %arg1[%c0_4, %c2, %c0_5] : memref<1x30x30xf32, #tpu.memory_space<vmem>>, vector<1x28x30xf32>
    %7 = vector.shape_cast %6 : vector<1x28x30xf32> to vector<28x30xf32>
    %8 = arith.truncf %7 : vector<28x30xf32> to vector<28x30xbf16>
    %cst = arith.constant 0.000000e+00 : f32
    %9 = vector.broadcast %cst : f32 to vector<28x512xf32>
    %c0_6 = arith.constant 0 : index
    %c0_7 = arith.constant 0 : index
    %c0_8 = arith.constant 0 : index
    %c0_9 = arith.constant 0 : index
    %10 = vector.load %arg2[%c0_6, %c0_7, %c0_8, %c0_9] : memref<2x3x30x512xbf16, #tpu.memory_space<vmem>>, vector<1x1x30x512xbf16>
    %11 = vector.shape_cast %10 : vector<1x1x30x512xbf16> to vector<30x512xbf16>
    %cst_10 = arith.constant dense<0.000000e+00> : vector<28x512xf32>
    %12 = tpu.matmul %2, %11, %cst_10 {dimension_numbers = #tpu.dot_dimension_numbers<[1], [0], [0], [1], [0, 0, 1, 1], [], []>} : vector<28x30xbf16>, vector<30x512xbf16>, vector<28x512xf32> -> vector<28x512xf32>
    %13 = arith.addf %9, %12 : vector<28x512xf32>
    %c0_11 = arith.constant 0 : index
    %c1_12 = arith.constant 1 : index
    %c0_13 = arith.constant 0 : index
    %c0_14 = arith.constant 0 : index
    %14 = vector.load %arg2[%c0_11, %c1_12, %c0_13, %c0_14] : memref<2x3x30x512xbf16, #tpu.memory_space<vmem>>, vector<1x1x30x512xbf16>
    %15 = vector.shape_cast %14 : vector<1x1x30x512xbf16> to vector<30x512xbf16>
    %cst_15 = arith.constant dense<0.000000e+00> : vector<28x512xf32>
    %16 = tpu.matmul %5, %15, %cst_15 {dimension_numbers = #tpu.dot_dimension_numbers<[1], [0], [0], [1], [0, 0, 1, 1], [], []>} : vector<28x30xbf16>, vector<30x512xbf16>, vector<28x512xf32> -> vector<28x512xf32>
    %17 = arith.addf %13, %16 : vector<28x512xf32>
    %c0_16 = arith.constant 0 : index
    %c2_17 = arith.constant 2 : index
    %c0_18 = arith.constant 0 : index
    %c0_19 = arith.constant 0 : index
    %18 = vector.load %arg2[%c0_16, %c2_17, %c0_18, %c0_19] : memref<2x3x30x512xbf16, #tpu.memory_space<vmem>>, vector<1x1x30x512xbf16>
    %19 = vector.shape_cast %18 : vector<1x1x30x512xbf16> to vector<30x512xbf16>
    %cst_20 = arith.constant dense<0.000000e+00> : vector<28x512xf32>
    %20 = tpu.matmul %8, %19, %cst_20 {dimension_numbers = #tpu.dot_dimension_numbers<[1], [0], [0], [1], [0, 0, 1, 1], [], []>} : vector<28x30xbf16>, vector<30x512xbf16>, vector<28x512xf32> -> vector<28x512xf32>
    %21 = arith.addf %17, %20 : vector<28x512xf32>
    %c0_21 = arith.constant 0 : index
    %c0_22 = arith.constant 0 : index
    %c0_23 = arith.constant 0 : index
    %22 = vector.load %arg3[%c0_21, %c0_22, %c0_23] : memref<2x16x28xf32, #tpu.memory_space<vmem>>, vector<1x16x28xf32>
    %23 = vector.shape_cast %22 : vector<1x16x28xf32> to vector<16x28xf32>
    %cst_24 = arith.constant dense<0.000000e+00> : vector<16x512xf32>
    %24 = tpu.matmul %23, %21, %cst_24 {dimension_numbers = #tpu.dot_dimension_numbers<[1], [0], [0], [1], [0, 0, 1, 1], [], []>} : vector<16x28xf32>, vector<28x512xf32>, vector<16x512xf32> -> vector<16x512xf32>
    %c0_25 = arith.constant 0 : index
    %c0_26 = arith.constant 0 : index
    %25 = vector.load %arg4[%c0_25, %c0_26] : memref<16x512xf32, #tpu.memory_space<vmem>>, vector<16x512xf32>
    %26 = arith.addf %24, %25 : vector<16x512xf32>
    %cst_27 = arith.constant 0.000000e+00 : f32
    %27 = vector.broadcast %cst_27 : f32 to vector<16x512xf32>
    %28 = arith.maximumf %26, %27 : vector<16x512xf32>
    %c1_28 = arith.constant 1 : index
    %c0_29 = arith.constant 0 : index
    %c0_30 = arith.constant 0 : index
    %29 = vector.load %arg3[%c1_28, %c0_29, %c0_30] : memref<2x16x28xf32, #tpu.memory_space<vmem>>, vector<1x16x28xf32>
    %30 = vector.shape_cast %29 : vector<1x16x28xf32> to vector<16x28xf32>
    %cst_31 = arith.constant dense<0.000000e+00> : vector<16x512xf32>
    %31 = tpu.matmul %30, %21, %cst_31 {dimension_numbers = #tpu.dot_dimension_numbers<[1], [0], [0], [1], [0, 0, 1, 1], [], []>} : vector<16x28xf32>, vector<28x512xf32>, vector<16x512xf32> -> vector<16x512xf32>
    %c0_32 = arith.constant 0 : index
    %c0_33 = arith.constant 0 : index
    %32 = vector.load %arg4[%c0_32, %c0_33] : memref<16x512xf32, #tpu.memory_space<vmem>>, vector<16x512xf32>
    %33 = arith.addf %31, %32 : vector<16x512xf32>
    %cst_34 = arith.constant 0.000000e+00 : f32
    %34 = vector.broadcast %cst_34 : f32 to vector<16x512xf32>
    %35 = arith.maximumf %33, %34 : vector<16x512xf32>
    %cst_35 = arith.constant 0.000000e+00 : f32
    %36 = vector.broadcast %cst_35 : f32 to vector<28x512xf32>
    %c1_36 = arith.constant 1 : index
    %c0_37 = arith.constant 0 : index
    %c0_38 = arith.constant 0 : index
    %c0_39 = arith.constant 0 : index
    %37 = vector.load %arg2[%c1_36, %c0_37, %c0_38, %c0_39] : memref<2x3x30x512xbf16, #tpu.memory_space<vmem>>, vector<1x1x30x512xbf16>
    %38 = vector.shape_cast %37 : vector<1x1x30x512xbf16> to vector<30x512xbf16>
    %cst_40 = arith.constant dense<0.000000e+00> : vector<28x512xf32>
    %39 = tpu.matmul %2, %38, %cst_40 {dimension_numbers = #tpu.dot_dimension_numbers<[1], [0], [0], [1], [0, 0, 1, 1], [], []>} : vector<28x30xbf16>, vector<30x512xbf16>, vector<28x512xf32> -> vector<28x512xf32>
    %40 = arith.addf %36, %39 : vector<28x512xf32>
    %c1_41 = arith.constant 1 : index
    %c1_42 = arith.constant 1 : index
    %c0_43 = arith.constant 0 : index
    %c0_44 = arith.constant 0 : index
    %41 = vector.load %arg2[%c1_41, %c1_42, %c0_43, %c0_44] : memref<2x3x30x512xbf16, #tpu.memory_space<vmem>>, vector<1x1x30x512xbf16>
    %42 = vector.shape_cast %41 : vector<1x1x30x512xbf16> to vector<30x512xbf16>
    %cst_45 = arith.constant dense<0.000000e+00> : vector<28x512xf32>
    %43 = tpu.matmul %5, %42, %cst_45 {dimension_numbers = #tpu.dot_dimension_numbers<[1], [0], [0], [1], [0, 0, 1, 1], [], []>} : vector<28x30xbf16>, vector<30x512xbf16>, vector<28x512xf32> -> vector<28x512xf32>
    %44 = arith.addf %40, %43 : vector<28x512xf32>
    %c1_46 = arith.constant 1 : index
    %c2_47 = arith.constant 2 : index
    %c0_48 = arith.constant 0 : index
    %c0_49 = arith.constant 0 : index
    %45 = vector.load %arg2[%c1_46, %c2_47, %c0_48, %c0_49] : memref<2x3x30x512xbf16, #tpu.memory_space<vmem>>, vector<1x1x30x512xbf16>
    %46 = vector.shape_cast %45 : vector<1x1x30x512xbf16> to vector<30x512xbf16>
    %cst_50 = arith.constant dense<0.000000e+00> : vector<28x512xf32>
    %47 = tpu.matmul %8, %46, %cst_50 {dimension_numbers = #tpu.dot_dimension_numbers<[1], [0], [0], [1], [0, 0, 1, 1], [], []>} : vector<28x30xbf16>, vector<30x512xbf16>, vector<28x512xf32> -> vector<28x512xf32>
    %48 = arith.addf %44, %47 : vector<28x512xf32>
    %c0_51 = arith.constant 0 : index
    %c0_52 = arith.constant 0 : index
    %c0_53 = arith.constant 0 : index
    %49 = vector.load %arg3[%c0_51, %c0_52, %c0_53] : memref<2x16x28xf32, #tpu.memory_space<vmem>>, vector<1x16x28xf32>
    %50 = vector.shape_cast %49 : vector<1x16x28xf32> to vector<16x28xf32>
    %cst_54 = arith.constant dense<0.000000e+00> : vector<16x512xf32>
    %51 = tpu.matmul %50, %48, %cst_54 {dimension_numbers = #tpu.dot_dimension_numbers<[1], [0], [0], [1], [0, 0, 1, 1], [], []>} : vector<16x28xf32>, vector<28x512xf32>, vector<16x512xf32> -> vector<16x512xf32>
    %c0_55 = arith.constant 0 : index
    %c0_56 = arith.constant 0 : index
    %52 = vector.load %arg4[%c0_55, %c0_56] : memref<16x512xf32, #tpu.memory_space<vmem>>, vector<16x512xf32>
    %53 = arith.addf %51, %52 : vector<16x512xf32>
    %cst_57 = arith.constant 0.000000e+00 : f32
    %54 = vector.broadcast %cst_57 : f32 to vector<16x512xf32>
    %55 = arith.maximumf %53, %54 : vector<16x512xf32>
    %c1_58 = arith.constant 1 : index
    %c0_59 = arith.constant 0 : index
    %c0_60 = arith.constant 0 : index
    %56 = vector.load %arg3[%c1_58, %c0_59, %c0_60] : memref<2x16x28xf32, #tpu.memory_space<vmem>>, vector<1x16x28xf32>
    %57 = vector.shape_cast %56 : vector<1x16x28xf32> to vector<16x28xf32>
    %cst_61 = arith.constant dense<0.000000e+00> : vector<16x512xf32>
    %58 = tpu.matmul %57, %48, %cst_61 {dimension_numbers = #tpu.dot_dimension_numbers<[1], [0], [0], [1], [0, 0, 1, 1], [], []>} : vector<16x28xf32>, vector<28x512xf32>, vector<16x512xf32> -> vector<16x512xf32>
    %c0_62 = arith.constant 0 : index
    %c0_63 = arith.constant 0 : index
    %59 = vector.load %arg4[%c0_62, %c0_63] : memref<16x512xf32, #tpu.memory_space<vmem>>, vector<16x512xf32>
    %60 = arith.addf %58, %59 : vector<16x512xf32>
    %cst_64 = arith.constant 0.000000e+00 : f32
    %61 = vector.broadcast %cst_64 : f32 to vector<16x512xf32>
    %62 = arith.maximumf %60, %61 : vector<16x512xf32>
    %63 = arith.maximumf %28, %35 : vector<16x512xf32>
    %64 = arith.maximumf %55, %62 : vector<16x512xf32>
    %65 = arith.maximumf %63, %64 : vector<16x512xf32>
    %c0_65 = arith.constant 0 : index
    %c0_66 = arith.constant 0 : index
    %66 = vector.load %arg13[%c0_65, %c0_66] : memref<16x512xf32, #tpu.memory_space<vmem>>, vector<16x512xf32>
    tpu.vector_store %arg13[%c0_65, %c0_66], %65 {strides = array<i32>} : memref<16x512xf32, #tpu.memory_space<vmem>>, vector<16x512xf32>,
    %c0_67 = arith.constant 0 : index
    %c0_68 = arith.constant 0 : index
    %67 = vector.load %arg13[%c0_67, %c0_68] : memref<16x512xf32, #tpu.memory_space<vmem>>, vector<14x512xf32>
    %68 = arith.truncf %67 : vector<14x512xf32> to vector<14x512xbf16>
    %c1_69 = arith.constant 1 : index
    %c0_70 = arith.constant 0 : index
    %69 = vector.load %arg13[%c1_69, %c0_70] : memref<16x512xf32, #tpu.memory_space<vmem>>, vector<14x512xf32>
    %70 = arith.truncf %69 : vector<14x512xf32> to vector<14x512xbf16>
    %c2_71 = arith.constant 2 : index
    %c0_72 = arith.constant 0 : index
    %71 = vector.load %arg13[%c2_71, %c0_72] : memref<16x512xf32, #tpu.memory_space<vmem>>, vector<14x512xf32>
    %72 = arith.truncf %71 : vector<14x512xf32> to vector<14x512xbf16>
    %cst_73 = arith.constant 0.000000e+00 : f32
    %73 = vector.broadcast %cst_73 : f32 to vector<14x448xf32>
    %c0_74 = arith.constant 0 : index
    %c0_75 = arith.constant 0 : index
    %c0_76 = arith.constant 0 : index
    %c0_77 = arith.constant 0 : index
    %74 = vector.load %arg5[%c0_74, %c0_75, %c0_76, %c0_77] : memref<2x3x512x448xbf16, #tpu.memory_space<vmem>>, vector<1x1x512x448xbf16>
    %75 = vector.shape_cast %74 : vector<1x1x512x448xbf16> to vector<512x448xbf16>
    %cst_78 = arith.constant dense<0.000000e+00> : vector<14x448xf32>
    %76 = tpu.matmul %68, %75, %cst_78 {dimension_numbers = #tpu.dot_dimension_numbers<[1], [0], [0], [1], [0, 0, 1, 1], [], []>} : vector<14x512xbf16>, vector<512x448xbf16>, vector<14x448xf32> -> vector<14x448xf32>
    %77 = arith.addf %73, %76 : vector<14x448xf32>
    %c0_79 = arith.constant 0 : index
    %c1_80 = arith.constant 1 : index
    %c0_81 = arith.constant 0 : index
    %c0_82 = arith.constant 0 : index
    %78 = vector.load %arg5[%c0_79, %c1_80, %c0_81, %c0_82] : memref<2x3x512x448xbf16, #tpu.memory_space<vmem>>, vector<1x1x512x448xbf16>
    %79 = vector.shape_cast %78 : vector<1x1x512x448xbf16> to vector<512x448xbf16>
    %cst_83 = arith.constant dense<0.000000e+00> : vector<14x448xf32>
    %80 = tpu.matmul %70, %79, %cst_83 {dimension_numbers = #tpu.dot_dimension_numbers<[1], [0], [0], [1], [0, 0, 1, 1], [], []>} : vector<14x512xbf16>, vector<512x448xbf16>, vector<14x448xf32> -> vector<14x448xf32>
    %81 = arith.addf %77, %80 : vector<14x448xf32>
    %c0_84 = arith.constant 0 : index
    %c2_85 = arith.constant 2 : index
    %c0_86 = arith.constant 0 : index
    %c0_87 = arith.constant 0 : index
    %82 = vector.load %arg5[%c0_84, %c2_85, %c0_86, %c0_87] : memref<2x3x512x448xbf16, #tpu.memory_space<vmem>>, vector<1x1x512x448xbf16>
    %83 = vector.shape_cast %82 : vector<1x1x512x448xbf16> to vector<512x448xbf16>
    %cst_88 = arith.constant dense<0.000000e+00> : vector<14x448xf32>
    %84 = tpu.matmul %72, %83, %cst_88 {dimension_numbers = #tpu.dot_dimension_numbers<[1], [0], [0], [1], [0, 0, 1, 1], [], []>} : vector<14x512xbf16>, vector<512x448xbf16>, vector<14x448xf32> -> vector<14x448xf32>
    %85 = arith.addf %81, %84 : vector<14x448xf32>
    %c0_89 = arith.constant 0 : index
    %c0_90 = arith.constant 0 : index
    %c0_91 = arith.constant 0 : index
    %86 = vector.load %arg6[%c0_89, %c0_90, %c0_91] : memref<2x7x14xf32, #tpu.memory_space<vmem>>, vector<1x7x14xf32>
    %87 = vector.shape_cast %86 : vector<1x7x14xf32> to vector<7x14xf32>
    %cst_92 = arith.constant dense<0.000000e+00> : vector<7x448xf32>
    %88 = tpu.matmul %87, %85, %cst_92 {dimension_numbers = #tpu.dot_dimension_numbers<[1], [0], [0], [1], [0, 0, 1, 1], [], []>} : vector<7x14xf32>, vector<14x448xf32>, vector<7x448xf32> -> vector<7x448xf32>
    %c0_93 = arith.constant 0 : index
    %c0_94 = arith.constant 0 : index
    %89 = vector.load %arg7[%c0_93, %c0_94] : memref<1x448xf32, #tpu.memory_space<vmem>>, vector<1x448xf32>
    %90 = vector.broadcast %89 : vector<1x448xf32> to vector<7x448xf32>
    %91 = arith.addf %88, %90 : vector<7x448xf32>
    %cst_95 = arith.constant 0.000000e+00 : f32
    %92 = vector.broadcast %cst_95 : f32 to vector<7x448xf32>
    %93 = arith.maximumf %91, %92 : vector<7x448xf32>
    %c1_96 = arith.constant 1 : index
    %c0_97 = arith.constant 0 : index
    %c0_98 = arith.constant 0 : index
    %94 = vector.load %arg6[%c1_96, %c0_97, %c0_98] : memref<2x7x14xf32, #tpu.memory_space<vmem>>, vector<1x7x14xf32>
    %95 = vector.shape_cast %94 : vector<1x7x14xf32> to vector<7x14xf32>
    %cst_99 = arith.constant dense<0.000000e+00> : vector<7x448xf32>
    %96 = tpu.matmul %95, %85, %cst_99 {dimension_numbers = #tpu.dot_dimension_numbers<[1], [0], [0], [1], [0, 0, 1, 1], [], []>} : vector<7x14xf32>, vector<14x448xf32>, vector<7x448xf32> -> vector<7x448xf32>
    %c0_100 = arith.constant 0 : index
    %c0_101 = arith.constant 0 : index
    %97 = vector.load %arg7[%c0_100, %c0_101] : memref<1x448xf32, #tpu.memory_space<vmem>>, vector<1x448xf32>
    %98 = vector.broadcast %97 : vector<1x448xf32> to vector<7x448xf32>
    %99 = arith.addf %96, %98 : vector<7x448xf32>
    %cst_102 = arith.constant 0.000000e+00 : f32
    %100 = vector.broadcast %cst_102 : f32 to vector<7x448xf32>
    %101 = arith.maximumf %99, %100 : vector<7x448xf32>
    %cst_103 = arith.constant 0.000000e+00 : f32
    %102 = vector.broadcast %cst_103 : f32 to vector<14x448xf32>
    %c1_104 = arith.constant 1 : index
    %c0_105 = arith.constant 0 : index
    %c0_106 = arith.constant 0 : index
    %c0_107 = arith.constant 0 : index
    %103 = vector.load %arg5[%c1_104, %c0_105, %c0_106, %c0_107] : memref<2x3x512x448xbf16, #tpu.memory_space<vmem>>, vector<1x1x512x448xbf16>
    %104 = vector.shape_cast %103 : vector<1x1x512x448xbf16> to vector<512x448xbf16>
    %cst_108 = arith.constant dense<0.000000e+00> : vector<14x448xf32>
    %105 = tpu.matmul %68, %104, %cst_108 {dimension_numbers = #tpu.dot_dimension_numbers<[1], [0], [0], [1], [0, 0, 1, 1], [], []>} : vector<14x512xbf16>, vector<512x448xbf16>, vector<14x448xf32> -> vector<14x448xf32>
    %106 = arith.addf %102, %105 : vector<14x448xf32>
    %c1_109 = arith.constant 1 : index
    %c1_110 = arith.constant 1 : index
    %c0_111 = arith.constant 0 : index
    %c0_112 = arith.constant 0 : index
    %107 = vector.load %arg5[%c1_109, %c1_110, %c0_111, %c0_112] : memref<2x3x512x448xbf16, #tpu.memory_space<vmem>>, vector<1x1x512x448xbf16>
    %108 = vector.shape_cast %107 : vector<1x1x512x448xbf16> to vector<512x448xbf16>
    %cst_113 = arith.constant dense<0.000000e+00> : vector<14x448xf32>
    %109 = tpu.matmul %70, %108, %cst_113 {dimension_numbers = #tpu.dot_dimension_numbers<[1], [0], [0], [1], [0, 0, 1, 1], [], []>} : vector<14x512xbf16>, vector<512x448xbf16>, vector<14x448xf32> -> vector<14x448xf32>
    %110 = arith.addf %106, %109 : vector<14x448xf32>
    %c1_114 = arith.constant 1 : index
    %c2_115 = arith.constant 2 : index
    %c0_116 = arith.constant 0 : index
    %c0_117 = arith.constant 0 : index
    %111 = vector.load %arg5[%c1_114, %c2_115, %c0_116, %c0_117] : memref<2x3x512x448xbf16, #tpu.memory_space<vmem>>, vector<1x1x512x448xbf16>
    %112 = vector.shape_cast %111 : vector<1x1x512x448xbf16> to vector<512x448xbf16>
    %cst_118 = arith.constant dense<0.000000e+00> : vector<14x448xf32>
    %113 = tpu.matmul %72, %112, %cst_118 {dimension_numbers = #tpu.dot_dimension_numbers<[1], [0], [0], [1], [0, 0, 1, 1], [], []>} : vector<14x512xbf16>, vector<512x448xbf16>, vector<14x448xf32> -> vector<14x448xf32>
    %114 = arith.addf %110, %113 : vector<14x448xf32>
    %c0_119 = arith.constant 0 : index
    %c0_120 = arith.constant 0 : index
    %c0_121 = arith.constant 0 : index
    %115 = vector.load %arg6[%c0_119, %c0_120, %c0_121] : memref<2x7x14xf32, #tpu.memory_space<vmem>>, vector<1x7x14xf32>
    %116 = vector.shape_cast %115 : vector<1x7x14xf32> to vector<7x14xf32>
    %cst_122 = arith.constant dense<0.000000e+00> : vector<7x448xf32>
    %117 = tpu.matmul %116, %114, %cst_122 {dimension_numbers = #tpu.dot_dimension_numbers<[1], [0], [0], [1], [0, 0, 1, 1], [], []>} : vector<7x14xf32>, vector<14x448xf32>, vector<7x448xf32> -> vector<7x448xf32>
    %c0_123 = arith.constant 0 : index
    %c0_124 = arith.constant 0 : index
    %118 = vector.load %arg7[%c0_123, %c0_124] : memref<1x448xf32, #tpu.memory_space<vmem>>, vector<1x448xf32>
    %119 = vector.broadcast %118 : vector<1x448xf32> to vector<7x448xf32>
    %120 = arith.addf %117, %119 : vector<7x448xf32>
    %cst_125 = arith.constant 0.000000e+00 : f32
    %121 = vector.broadcast %cst_125 : f32 to vector<7x448xf32>
    %122 = arith.maximumf %120, %121 : vector<7x448xf32>
    %c1_126 = arith.constant 1 : index
    %c0_127 = arith.constant 0 : index
    %c0_128 = arith.constant 0 : index
    %123 = vector.load %arg6[%c1_126, %c0_127, %c0_128] : memref<2x7x14xf32, #tpu.memory_space<vmem>>, vector<1x7x14xf32>
    %124 = vector.shape_cast %123 : vector<1x7x14xf32> to vector<7x14xf32>
    %cst_129 = arith.constant dense<0.000000e+00> : vector<7x448xf32>
    %125 = tpu.matmul %124, %114, %cst_129 {dimension_numbers = #tpu.dot_dimension_numbers<[1], [0], [0], [1], [0, 0, 1, 1], [], []>} : vector<7x14xf32>, vector<14x448xf32>, vector<7x448xf32> -> vector<7x448xf32>
    %c0_130 = arith.constant 0 : index
    %c0_131 = arith.constant 0 : index
    %126 = vector.load %arg7[%c0_130, %c0_131] : memref<1x448xf32, #tpu.memory_space<vmem>>, vector<1x448xf32>
    %127 = vector.broadcast %126 : vector<1x448xf32> to vector<7x448xf32>
    %128 = arith.addf %125, %127 : vector<7x448xf32>
    %cst_132 = arith.constant 0.000000e+00 : f32
    %129 = vector.broadcast %cst_132 : f32 to vector<7x448xf32>
    %130 = arith.maximumf %128, %129 : vector<7x448xf32>
    %131 = arith.maximumf %93, %101 : vector<7x448xf32>
    %132 = arith.maximumf %122, %130 : vector<7x448xf32>
    %133 = arith.maximumf %131, %132 : vector<7x448xf32>
    %134 = arith.truncf %133 : vector<7x448xf32> to vector<7x448xbf16>
    %c0_133 = arith.constant 0 : index
    %c0_134 = arith.constant 0 : index
    %135 = vector.load %arg8[%c0_133, %c0_134] : memref<448x128xbf16, #tpu.memory_space<vmem>>, vector<448x128xbf16>
    %cst_135 = arith.constant dense<0.000000e+00> : vector<7x128xf32>
    %136 = tpu.matmul %134, %135, %cst_135 {dimension_numbers = #tpu.dot_dimension_numbers<[1], [0], [0], [1], [0, 0, 1, 1], [], []>} : vector<7x448xbf16>, vector<448x128xbf16>, vector<7x128xf32> -> vector<7x128xf32>
    %c0_136 = arith.constant 0 : index
    %c0_137 = arith.constant 0 : index
    %137 = vector.load %arg9[%c0_136, %c0_137] : memref<7x128xf32, #tpu.memory_space<vmem>>, vector<7x128xf32>
    %138 = arith.mulf %136, %137 : vector<7x128xf32>
    %c0_138 = arith.constant 0 : index
    %c0_139 = arith.constant 0 : index
    %139 = vector.load %arg10[%c0_138, %c0_139] : memref<128x10xf32, #tpu.memory_space<vmem>>, vector<128x10xf32>
    %cst_140 = arith.constant dense<0.000000e+00> : vector<7x10xf32>
    %140 = tpu.matmul %138, %139, %cst_140 {dimension_numbers = #tpu.dot_dimension_numbers<[1], [0], [0], [1], [0, 0, 1, 1], [], []>} : vector<7x128xf32>, vector<128x10xf32>, vector<7x10xf32> -> vector<7x10xf32>
    %c0_141 = arith.constant 0 : index
    %c0_142 = arith.constant 0 : index
    %141 = vector.load %arg11[%c0_141, %c0_142] : memref<1x10xf32, #tpu.memory_space<vmem>>, vector<1x10xf32>
    %cst_143 = arith.constant dense<0.000000e+00> : vector<10xf32>
    %142 = vector.multi_reduction <add>, %140, %cst_143 [0] : vector<7x10xf32> to vector<10xf32>
    %143 = vector.shape_cast %142 : vector<10xf32> to vector<1x10xf32>
    %144 = arith.addf %141, %143 : vector<1x10xf32>
    %cst_144 = arith.constant dense<0xFF800000> : vector<1xf32>
    %145 = vector.multi_reduction <maximumf>, %144, %cst_144 [1] : vector<1x10xf32> to vector<1xf32>
    %146 = vector.shape_cast %145 : vector<1xf32> to vector<1x1xf32>
    %147 = vector.broadcast %146 : vector<1x1xf32> to vector<1x10xf32>
    %148 = arith.subf %144, %147 : vector<1x10xf32>
    %149 = math.exp %148 : vector<1x10xf32>
    %cst_145 = arith.constant dense<0.000000e+00> : vector<1xf32>
    %150 = vector.multi_reduction <add>, %149, %cst_145 [1] : vector<1x10xf32> to vector<1xf32>
    %151 = vector.shape_cast %150 : vector<1xf32> to vector<1x1xf32>
    %152 = math.log %151 : vector<1x1xf32>
    %153 = arith.addf %146, %152 : vector<1x1xf32>
    %154 = vector.broadcast %153 : vector<1x1xf32> to vector<1x10xf32>
    %155 = arith.subf %144, %154 : vector<1x10xf32>
    %c0_146 = arith.constant 0 : index
    %c0_147 = arith.constant 0 : index
    %c0_148 = arith.constant 0 : index
    %156 = vector.load %arg12[%c0_146, %c0_147, %c0_148] : memref<1x1x10xf32, #tpu.memory_space<vmem>>, vector<1x1x10xf32>
    %157 = vector.shape_cast %156 : vector<1x1x10xf32> to vector<1x10xf32>
    %158 = vector.shape_cast %155 : vector<1x10xf32> to vector<1x1x10xf32>
    tpu.vector_store %arg12[%c0_146, %c0_147, %c0_148], %158 {strides = array<i32>} : memref<1x1x10xf32, #tpu.memory_space<vmem>>, vector<1x1x10xf32>,
    return
  }
  func.func @transform_0(%arg0: i32) -> (i32, i32, i32) {
    %c0_i32 = arith.constant 0 : i32
    %c0_i32_0 = arith.constant 0 : i32
    %c0_i32_1 = arith.constant 0 : i32
    return %arg0, %c0_i32, %c0_i32_0 : i32, i32, i32
  }
  func.func @transform_1(%arg0: i32) -> (i32, i32, i32, i32) {
    %c0_i32 = arith.constant 0 : i32
    %c0_i32_0 = arith.constant 0 : i32
    %c0_i32_1 = arith.constant 0 : i32
    %c0_i32_2 = arith.constant 0 : i32
    %c0_i32_3 = arith.constant 0 : i32
    return %c0_i32, %c0_i32_0, %c0_i32_1, %c0_i32_2 : i32, i32, i32, i32
  }
  func.func @transform_2(%arg0: i32) -> (i32, i32, i32) {
    %c0_i32 = arith.constant 0 : i32
    %c0_i32_0 = arith.constant 0 : i32
    %c0_i32_1 = arith.constant 0 : i32
    %c0_i32_2 = arith.constant 0 : i32
    return %c0_i32, %c0_i32_0, %c0_i32_1 : i32, i32, i32
  }
  func.func @transform_3(%arg0: i32) -> (i32, i32) {
    %c0_i32 = arith.constant 0 : i32
    %c0_i32_0 = arith.constant 0 : i32
    %c0_i32_1 = arith.constant 0 : i32
    return %c0_i32, %c0_i32_0 : i32, i32
  }
  func.func @transform_4(%arg0: i32) -> (i32, i32, i32, i32) {
    %c0_i32 = arith.constant 0 : i32
    %c0_i32_0 = arith.constant 0 : i32
    %c0_i32_1 = arith.constant 0 : i32
    %c0_i32_2 = arith.constant 0 : i32
    %c0_i32_3 = arith.constant 0 : i32
    return %c0_i32, %c0_i32_0, %c0_i32_1, %c0_i32_2 : i32, i32, i32, i32
  }
  func.func @transform_5(%arg0: i32) -> (i32, i32, i32) {
    %c0_i32 = arith.constant 0 : i32
    %c0_i32_0 = arith.constant 0 : i32
    %c0_i32_1 = arith.constant 0 : i32
    %c0_i32_2 = arith.constant 0 : i32
    return %c0_i32, %c0_i32_0, %c0_i32_1 : i32, i32, i32
  }
  func.func @transform_6(%arg0: i32) -> (i32, i32) {
    %c0_i32 = arith.constant 0 : i32
    %c0_i32_0 = arith.constant 0 : i32
    %c0_i32_1 = arith.constant 0 : i32
    return %c0_i32, %c0_i32_0 : i32, i32
  }
  func.func @transform_7(%arg0: i32) -> (i32, i32) {
    %c0_i32 = arith.constant 0 : i32
    %c0_i32_0 = arith.constant 0 : i32
    %c0_i32_1 = arith.constant 0 : i32
    return %c0_i32, %c0_i32_0 : i32, i32
  }
  func.func @transform_8(%arg0: i32) -> (i32, i32) {
    %c0_i32 = arith.constant 0 : i32
    %c0_i32_0 = arith.constant 0 : i32
    %c0_i32_1 = arith.constant 0 : i32
    return %c0_i32, %c0_i32_0 : i32, i32
  }
  func.func @transform_9(%arg0: i32) -> (i32, i32) {
    %c0_i32 = arith.constant 0 : i32
    %c0_i32_0 = arith.constant 0 : i32
    %c0_i32_1 = arith.constant 0 : i32
    return %c0_i32, %c0_i32_0 : i32, i32
  }
  func.func @transform_10(%arg0: i32) -> (i32, i32) {
    %c0_i32 = arith.constant 0 : i32
    %c0_i32_0 = arith.constant 0 : i32
    %c0_i32_1 = arith.constant 0 : i32
    return %c0_i32, %c0_i32_0 : i32, i32
  }
  func.func @transform_11(%arg0: i32) -> (i32, i32, i32) {
    %c0_i32 = arith.constant 0 : i32
    %c0_i32_0 = arith.constant 0 : i32
    %c0_i32_1 = arith.constant 0 : i32
    return %arg0, %c0_i32, %c0_i32_0 : i32, i32, i32
  }
}

</mosaic_0001>

<bundles_post_ra>
// kernel: mnist_forward.1
= control target key start
LH: loop header
LB: loop body
LE: loop exit
PB: predicated region body
PF: predicated region fallthrough
CT: control target
= control target key end

     0   :  { %16 = vsyncpa [#allocation4], 0  ;;  %s15704_s0 = inlined_call_operand.vmem [shape: f32[2,30,30], index: 0, kind: input, shape index: {}]   ;;  %s15705_s1 = inlined_call_operand.vmem [shape: bf16[2,3,30,512], index: 1, kind: input, shape index: {}]   ;;  %s15706_s2 = inlined_call_operand.vmem [shape: f32[2,16,28], index: 2, kind: input, shape index: {}]   ;;  %s15707_s3 = inlined_call_operand.vmem [shape: f32[16,512], index: 3, kind: input, shape index: {}]   ;;  %s15708_s4 = inlined_call_operand.vmem [shape: bf16[2,3,512,448], index: 4, kind: input, shape index: {}]   ;;  %s15709_s5 = inlined_call_operand.vmem [shape: f32[2,7,14], index: 5, kind: input, shape index: {}]   ;;  %s15710_s6 = inlined_call_operand.vmem [shape: f32[1,448], index: 6, kind: input, shape index: {}]   ;;  %s15711_s7 = inlined_call_operand.vmem [shape: bf16[448,128], index: 7, kind: input, shape index: {}]   ;;  %s15712_s8 = inlined_call_operand.vmem [shape: f32[7,128], index: 8, kind: input, shape index: {}]   ;;  %s15713_s9 = inlined_call_operand.vmem [shape: f32[128,10], index: 9, kind: input, shape index: {}]   ;;  %s15714_s10 = inlined_call_operand.vmem [shape: f32[1,10], index: 10, kind: input, shape index: {}]   ;;  %s15715_s11 = inlined_call_operand.hbm [shape: f32[2,1,10], index: 11, kind: output, shape index: {}]  }
   0x1   :  { %18 = vsyncpa [#allocation4 + $0x1], 0  ;;  %s12486_s17 = smov 0   ;;  %s12488_s18 = smov 0  }
   0x2   :  { %s12490_s19 = smov 0   ;;  %s12492_s20 = smov 0  }
   0x3 LB: > { %s12507_s21 = sadd.s32 4294967295, %s12418_s20   ;;  %s9050_s22 = sadd.s32 4294967294, %s12418_s20   ;;  %s12418_s20 = sphi %s12492_s20, %s15727_s20   ;;  %s12414_s19 = sphi %s12490_s19, %s15726_s19   ;;  %s12410_s18 = sphi %s12488_s18, %s15725_s18   ;;  %s12406_s17 = sphi %s12486_s17, %s15724_s17  }
   0x4   : > { %s12511_s23 = sadd.s32 1, %s12418_s20   ;;  %s267_s24 = sadd.s32 1, %s12414_s19 }
   0x5   : > { %s264_s25 = ssub.s32 %s12418_s20, %s12511_s23  ;;  %p277_p0 = scmp.ne.s32.totalorder %s12414_s19, %s12410_s18 }
   0x6   : > { %p265_p1 = scmp.eq.s32.totalorder %s264_s25, 0  ;;  %p278_p2 = scmp.eq.s32.totalorder %s12507_s21, 1 }
   0x7   : > { %p283_p3 = scmp.ne.s32.totalorder %s12410_s18, %s12406_s17  ;;  %p284_p4 = scmp.eq.s32.totalorder %s9050_s22, 1 }
   0x8   : > { %s12522_s26 = scalar_select %p265_p1, %s12414_s19, %s267_s24  }
   0x9   : > { %p12524_p5 = por %p278_p2, %p277_p0  ;;  %p12528_p6 = por %p284_p4, %p283_p3 }
   0xa   : > { %15716 = sst [smem:[#allocation6_spill]] %s12522_s26  ;;  %p9053_p7 = scmp.ge.s32.totalorder %s12418_s20, 1 }
   0xb   : > { %p340_p8 = scmp.lt.s32.totalorder %s12418_s20, 3 }
   0xd   : > { %p341_p9 = pnand %p9053_p7, %p340_p8 }
   0xe   : > { %v11098_v0 = vld [vmem:[%s15705_s1 + $0x44] ss:$16 sps:$4 sm:$0xff] (!%p341_p9)   ;;  %vm463_vm0 = vcmask (!%p341_p9), 1046528   ;;  %v11100_v1 = vld [vmem:[%s15705_s1 + $0x40] ss:$16 sps:$4 sm:$0xff] (!%p341_p9)   ;;  %v12420_v2 = vmov (!%p341_p9), 0  }
   0xf   : > { %344 = sbr.rel (%p341_p9) target bundleno = 2971 (0xb9b), region = 64  ;;  %508 = vmatprep.mubr.bf16.mxu0 (!%p341_p9), %v12420_v2  ;;  %518 = vmatprep.mubr.bf16.mxu1 (!%p341_p9), %v12420_v2  ;;  %p379_p10 = scmp.lt.s32.totalorder (!%p341_p9), %s12507_s21, 1  ;;  %v11101_v3 = vld [vmem:[%s15705_s1 + $0x64] ss:$16 sps:$4 sm:$0x7f] (!%p341_p9)   ;;  %vm456_vm1 = vcmask (!%p341_p9), 244736  }
  0x10   : > { %476 = vmatprep.subr.bf16.mxu0 (!%p341_p9), %v11098_v0  ;;  %10906 = vmatprep.subr.bf16.mxu1 (!%p341_p9), %v11098_v0  ;;  %v11103_v4 = vld [vmem:[%s15705_s1 + $0x60] ss:$16 sps:$4 sm:$0x7f] (!%p341_p9)   ;;  %v11106_v6 = vld [vmem:[%s15705_s1 + $0x4c] ss:$16 sps:$4 sm:$0xff] (!%p341_p9)   ;;  %v12421_v49 = vmov (!%p341_p9), 0.0  }
  0x11   : > { %477 = vmatpush1.bf16.msra.mxu0 (!%p341_p9), %v11100_v1  ;;  %10908 = vmatpush1.bf16.msra.mxu1 (!%p341_p9), %v11100_v1  ;;  %v465_v5 = vsel (!%p341_p9), %vm463_vm0, %v11103_v4, 0  ;;  %v11104_v7 = vld [vmem:[%s15705_s1 + $0x48] ss:$16 sps:$4 sm:$0xff] (!%p341_p9)   ;;  %v11109_v8 = vld [vmem:[%s15705_s1] ss:$16 sps:$4 sm:$0xff] (!%p341_p9)   ;;  %vm944_vm2 = vcmask (!%p341_p9), 1043456  }
  0x12   : > { %9072 = vmatprep.subr.msk.bf16.mxu0 (!%p341_p9), %vm463_vm0, %v11101_v3  ;;  %10907 = vmatprep.subr.msk.bf16.mxu1 (!%p341_p9), %vm463_vm0, %v11101_v3  ;;  %v11111_v9 = vld [vmem:[%s15705_s1 + $0x4] ss:$16 sps:$4 sm:$0xff] (!%p341_p9)   ;;  %v11107_v13 = vld [vmem:[%s15705_s1 + $0x6c] ss:$16 sps:$4 sm:$0x7f] (!%p341_p9)   ;;  %vm12422_vm3 = vmmov (!%p341_p9), 1  }
  0x13   : > { %v11112_v16 = vld [vmem:[%s15705_s1 + $0x68] ss:$16 sps:$4 sm:$0x7f] (!%p341_p9)   ;;  %v11113_v18 = vld [vmem:[%s15705_s1 + $0x24] ss:$16 sps:$4 sm:$0x7f] (!%p341_p9)   ;;  %vm12689_vm4 = vmpackc.low (!%p341_p9), %vm944_vm2, %vm12422_vm3 }
  0x14   : > { %v11115_v19 = vld [vmem:[%s15705_s1 + $0x20] ss:$16 sps:$4 sm:$0x7f] (!%p341_p9)   ;;  %v11121_v21 = vld [vmem:[%s15705_s1 + $0x84] ss:$16 sps:$4 sm:$0xff] (!%p341_p9)   ;;  %v471_v22 = vsel (!%p341_p9), %vm463_vm0, %v11112_v16, 0 }
  0x15   : > { %479 = vmatpush1.bf16.msra.mxu0 (!%p341_p9), %v465_v5  ;;  %10909 = vmatpush1.bf16.msra.mxu1 (!%p341_p9), %v465_v5  ;;  %v625_v20 = vsel (!%p341_p9), %vm463_vm0, %v11115_v19, 0  ;;  %v11118_v23 = vld [vmem:[%s15705_s1 + $0xc] ss:$16 sps:$4 sm:$0xff] (!%p341_p9)   ;;  %v11116_v26 = vld [vmem:[%s15705_s1 + $0x8] ss:$16 sps:$4 sm:$0xff] (!%p341_p9)   ;;  %vm937_vm5 = vcmask (!%p341_p9), 228352  }
  0x16   : > { %s380_s24 = scalar_select %p379_p10, %s12507_s21, 1  ;;  %529 = vmatprep.subr.bf16.mxu1 %v11106_v6  ;;  %636 = vmatprep.subr.bf16.mxu0 %v11111_v9  ;;  %v11122_v27 = vld [vmem:[%s15705_s1 + $0x2c] ss:$16 sps:$4 sm:$0x7f]   ;;  %v11119_v30 = vld [vmem:[%s15705_s1 + $0x80] ss:$16 sps:$4 sm:$0xff]  }
  0x17   : > { %v11124_v28 = vld [vmem:[%s15705_s1 + $0x28] ss:$16 sps:$4 sm:$0x7f]   ;;  %v11125_v31 = vld [vmem:[%s15705_s1 + $0xa4] ss:$16 sps:$4 sm:$0x7f]  }
  0x18   : > { %s10679_s30 = sshll.u32 %s380_s24, 5  ;;  %v11127_v32 = vld [vmem:[%s15705_s1 + $0xa0] ss:$16 sps:$4 sm:$0x7f]   ;;  %v11130_v33 = vld [vmem:[%s15705_s1 + $0x8c] ss:$16 sps:$4 sm:$0xff]  }
  0x19   : > { %s12559_s14 = scalar_lea.vmem %s15704_s0, %s10679_s30  ;;  %v631_v36 = vsel %vm463_vm0, %v11124_v28, 0  ;;  %v794_v37 = vsel %vm463_vm0, %v11127_v32, 0  ;;  %v11128_v41 = vld [vmem:[%s15705_s1 + $0x88] ss:$16 sps:$4 sm:$0xff]   ;;  %v11196_v60 = vld [vmem:[%s15708_s4 + $0x484] ss:$16 sps:$4 sm:$0xff]  }
  0x1a   : > { %v391_v10 = vld [vmem:[%s12559_s14 + $0x1] sm:$0xff]  ;;  %v392_v11 = vld [vmem:[%s12559_s14 + $0x9] sm:$0xff]  ;;  %v393_v12 = vld [vmem:[%s12559_s14 + $0x11] sm:$0xff]  ;;  %vm5100_vm6 = vcmask 1045504   ;;  %vm5096_vm8 = vcmask 113664   ;;  %vm8785_vm9 = vcmask 523264  }
  0x1b   : > { %v12576_v14 = vpack.c.bf16 %v392_v11, %v391_v10  ;;  %v394_v15 = vld [vmem:[%s12559_s14 + $0x19] sm:$0xf]  ;;  %v385_v24 = vld [vmem:[%s12559_s14] sm:$0xff]  ;;  %v386_v25 = vld [vmem:[%s12559_s14 + $0x8] sm:$0xff]  ;;  %vm12424_vm10 = vmmov 0   ;;  %vm8958_vm11 = vcmask 79872  }
  0x1c   : > { %v12582_v17 = vpack.c.bf16 %v394_v15, %v393_v12  ;;  %v12617_v29 = vpack.c.bf16 %v386_v25, %v385_v24  ;;  %v387_v34 = vld [vmem:[%s12559_s14 + $0x10] sm:$0xff]  ;;  %v388_v35 = vld [vmem:[%s12559_s14 + $0x18] sm:$0xf]  ;;  %v397_v39 = vld [vmem:[%s12559_s14 + $0x2] sm:$0xff]  ;;  %vm8967_vm12 = vcmask 73728   ;;  %s377_s16 = sand.u32 1, %s12410_s18  }
  0x1d   : > { %9073 = vmatmul.mubr.msk.bf16.vlgmr.msra.gmra.mrb[0].mxu0 %vm456_vm1, %v12576_v14  ;;  %v12643_v38 = vpack.c.bf16 %v388_v35, %v387_v34  ;;  %v398_v40 = vld [vmem:[%s12559_s14 + $0xa] sm:$0xff]  ;;  %v399_v45 = vld [vmem:[%s12559_s14 + $0x12] sm:$0xff]  ;;  %v400_v46 = vld [vmem:[%s12559_s14 + $0x1a] sm:$0xf]  ;;  %s10676_s22 = sshll.u32 %s12507_s21, 4  ;;  %s378_s25 = scalar_lea.vmem [#allocation3], %s377_s16 }
  0x1e   : > { %9074 = vmatmul.mubr.msk.bf16.vlgmr.msra.gmra.mrb[0].mxu1 %vm456_vm1, %v12582_v17  ;;  %637 = vmatpush1.bf16.msra.mxu0 %v11109_v8  ;;  %v11131_v42 = vld [vmem:[%s15705_s1 + $0xac] ss:$16 sps:$4 sm:$0x7f]   ;;  %v11133_v43 = vld [vmem:[%s15705_s1 + $0xa8] ss:$16 sps:$4 sm:$0x7f]   ;;  %v12662_v44 = vpack.c.bf16 %v398_v40, %v397_v39  ;;  %v12674_v48 = vpack.c.bf16 %v400_v46, %v399_v45  ;;  %vm14218_vm7 = vmpackc.low %vm5100_vm6, %vm12422_vm3  ;;  %s15661_s14 = scalar_lea.hbm %s15715_s11, %s10676_s22 }
  0x1f   : > { %530 = vmatpush1.bf16.msra.mxu1 %v11104_v7  ;;  %561 = vmatprep.mubr.bf16.mxu1 %v12420_v2  ;;  %v800_v47 = vsel %vm463_vm0, %v11133_v43, 0  ;;  %v12696_v11 = vld [vmem:[%s15706_s2] sm:$0xff]  ;;  %v12705_v16 = vld [vmem:[%s15706_s2 + $0x8] sm:$0xff]  ;;  %s8995_s29 = sshll.u32 %s378_s25, 4  ;;  %s8983_s26 = scalar_lea.sflag [#allocation4], %s377_s16  ;;  %s15663_s29 = int_to_ptr.vmem [resolvable:$true] %s8995_s29 }
  0x20   : > { %9075 = vmatprep.subr.msk.bf16.mxu1 %vm463_vm0, %v11107_v13  ;;  %9086 = vmatprep.subr.msk.bf16.mxu0 %vm463_vm0, %v11113_v18  ;;  %v11136_v18 = vld [vmem:[%s15705_s1 + $0x104] ss:$16 sps:$4 sm:$0xff]   ;;  %v11143_v34 = vld [vmem:[%s15705_s1 + $0xc0] ss:$16 sps:$4 sm:$0xff]   ;;  %v11154_v43 = vld [vmem:[%s15705_s1 + $0xcc] ss:$16 sps:$4 sm:$0xff]  }
  0x21   : > { %668 = vmatprep.mubr.bf16.mxu0 %v12420_v2  ;;  %v11149_v35 = vld [vmem:[%s15705_s1 + $0xe4] ss:$16 sps:$4 sm:$0x7f]   ;;  %v11146_v39 = vld [vmem:[%s15705_s1 + $0x12c] ss:$16 sps:$4 sm:$0x7f]  }
  0x22   : > { %639 = vmatpush1.bf16.msra.mxu0 %v625_v20  ;;  %v11148_v40 = vld [vmem:[%s15705_s1 + $0x128] ss:$16 sps:$4 sm:$0x7f]   ;;  %s12356_s12 = scalar_lea.vmem %s15663_s29, 16  ;;  %s12425_s21 = smov [#allocation3]  }
  0x23   : > { %532 = vmatpush1.bf16.msra.mxu1 %v471_v22  ;;  %805 = vmatprep.subr.bf16.mxu0 %v11121_v21  ;;  %v12718_v22 = vld [vmem:[%s15706_s2 + $0x10] sm:$0xff]  ;;  %v1351_v45 = vsel %vm463_vm0, %v11148_v40, 0  ;;  %v11160_v46 = vld [vmem:[%s15705_s1 + $0xe8] ss:$16 sps:$4 sm:$0x7f]   ;;  %p12357_p11 = scmp.ne.s32.totalorder %s15663_s29, %s12356_s12  ;;  %s12360_s13 = sshll.u32 %s12425_s21, 4  ;;  %s12361_s13 = int_to_ptr.vmem [resolvable:$false] %s12360_s13 }
  0x24   : > { %689 = vmatprep.subr.bf16.mxu1 %v11118_v23  ;;  %v11134_v23 = vld [vmem:[%s15705_s1 + $0x100] ss:$16 sps:$4 sm:$0xff]   ;;  %s12362_s15 = scalar_lea.vmem %s12361_s13, 32  ;;  %p12363_p0 = scmp.lt.s32.totalorder %s15663_s29, %s12361_s13 }
  0x25   : > { %v12922_v40 = vld [vmem:[%s15707_s3 + $0x30] sm:$0xff]  ;;  %p12358_p12 = pnand %p12357_p11, %p12524_p5  ;;  %p12364_p1 = scmp.lt.s32.totalorder %s12362_s15, %s12356_s12 }
  0x26   : > { %9076 = vmatmul.mubr.msk.bf16.vlgmr.msra.gmra.mrb[4].mxu1 %vm456_vm1, %v12576_v14 }
  0x27   : > { %571 = vmatprep.mubr.bf16.mxu1 %v12420_v2  ;;  %690 = vmatpush1.bf16.msra.mxu1 %v11116_v26  ;;  %v11137_v26 = vld [vmem:[%s15705_s1 + $0x124] ss:$16 sps:$4 sm:$0x7f]   ;;  %p12359_p13 = pneg %p12358_p12  ;;  %p12365_p2 = por %p12364_p1, %p12363_p0 }
  0x28   : > { %9089 = vmatprep.subr.msk.bf16.mxu1 %vm463_vm0, %v11122_v27  ;;  %v11139_v27 = vld [vmem:[%s15705_s1 + $0x120] ss:$16 sps:$4 sm:$0x7f]  }
  0x29   : > { %9087 = vmatmul.mubr.msk.bf16.vlgmr.msra.gmra.mrb[0].mxu0 %vm456_vm1, %v12617_v29  ;;  %v1345_v32 = vsel %vm463_vm0, %v11139_v27, 0  ;;  %v12913_v27 = vld [vmem:[%s15707_s3 + $0x18] sm:$0xff]  ;;  %p12366_p3 = pnand %p12365_p2, %p12359_p13 }
  0x2a   : > { %806 = vmatpush1.bf16.msra.mxu0 %v11119_v30  ;;  %678 = vmatprep.mubr.bf16.mxu0 %v12420_v2  ;;  %v12739_v30 = vld [vmem:[%s15706_s2 + $0x18] sm:$0xff] }
  0x2b   : > { %692 = vmatpush1.bf16.msra.mxu1 %v631_v36  ;;  %9108 = vmatprep.subr.msk.bf16.mxu0 %vm463_vm0, %v11125_v31  ;;  %v11145_v31 = vld [vmem:[%s15705_s1 + $0xc4] ss:$16 sps:$4 sm:$0xff]   ;;  %v11151_v36 = vld [vmem:[%s15705_s1 + $0xe0] ss:$16 sps:$4 sm:$0x7f]  }
  0x2c   : > { %858 = vmatprep.subr.bf16.mxu1 %v11130_v33  ;;  %v11142_v33 = vld [vmem:[%s15705_s1 + $0x10c] ss:$16 sps:$4 sm:$0xff]  }
  0x2e   : > { %9077 = vmatmul.mubr.msk.bf16.gmra.mrb[8].mxu1 %vm456_vm1, %v12582_v17  ;;  %808 = vmatpush1.bf16.msra.mxu0 %v794_v37  ;;  %v11140_v37 = vld [vmem:[%s15705_s1 + $0x108] ss:$16 sps:$4 sm:$0xff]  }
  0x2f   : > { %721 = vmatprep.mubr.bf16.mxu1 %v12420_v2 }
  0x31   : > { %9088 = vmatmul.mubr.msk.bf16.gmra.mrb[4].mxu0 %vm456_vm1, %v12643_v38 }
  0x32   : > { %837 = vmatprep.mubr.bf16.mxu0 %v12420_v2 }
  0x36   : > { %9090 = vmatmul.mubr.msk.bf16.vlgmr.msra.gmra.mrb[4].mxu1 %vm456_vm1, %v12617_v29 }
  0x37   : > { %731 = vmatprep.mubr.bf16.mxu1 %v12420_v2  ;;  %859 = vmatpush1.bf16.msra.mxu1 %v11128_v41  ;;  %v11157_v41 = vld [vmem:[%s15705_s1 + $0x144] ss:$16 sps:$4 sm:$0xff]  }
  0x38   : > { %9111 = vmatprep.subr.msk.bf16.mxu1 %vm463_vm0, %v11131_v42  ;;  %v1499_v42 = vsel %vm463_vm0, %v11151_v36, 0 }
  0x39   : > { %9109 = vmatmul.mubr.msk.bf16.vlgmr.msra.gmra.mrb[0].mxu0 %vm456_vm1, %v12662_v44 }
  0x3a   : > { %847 = vmatprep.mubr.bf16.mxu0 %v12420_v2 }
  0x3b   : > { %861 = vmatpush1.bf16.msra.mxu1 %v800_v47  ;;  %v11163_v47 = vld [vmem:[%s15705_s1 + $0x160] ss:$16 sps:$4 sm:$0x7f]  }
  0x3e   : > { %9091 = vmatmul.mubr.msk.bf16.gmra.mrb[8].mxu1 %vm456_vm1, %v12643_v38 }
  0x3f   : > { %890 = vmatprep.mubr.bf16.mxu1 %v12420_v2 }
  0x41   : > { %9110 = vmatmul.mubr.msk.bf16.gmra.mrb[4].mxu0 %vm456_vm1, %v12674_v48 }
  0x42   : > { %1021 = vmatprep.mubr.f32.mxu0 %v12421_v49 }
  0x46   : > { %9112 = vmatmul.mubr.msk.bf16.vlgmr.msra.gmra.mrb[4].mxu1 %vm456_vm1, %v12662_v44 }
  0x47   : > { %900 = vmatprep.mubr.bf16.mxu1 %v12420_v2 }
  0x4e   : > { %9113 = vmatmul.mubr.msk.bf16.gmra.mrb[8].mxu1 %vm456_vm1, %v12674_v48 }
  0x4f   : > { %1098 = vmatprep.mubr.f32.mxu1 %v12421_v49 }
  0xf1   : > { %v520_v50 = vpop.f32.mrb[0].mxu1 }
  0xf2   : > { %v522_v51 = vpop.f32.mrb[1].mxu1 }
  0xf3   : > { %v524_v52 = vpop.f32.mrb[2].mxu1 }
  0xf4   : > { %v526_v53 = vpop.f32.mrb[3].mxu1 }
 0x10c   : > { %v839_v54 = vpop.f32.mrb[0].mxu0 }
 0x10d   : > { %v841_v55 = vpop.f32.mrb[1].mxu0 }
 0x10e   : > { %v843_v56 = vpop.f32.mrb[2].mxu0 }
 0x10f   : > { %v10756_v57 = vpack.c.bf16 %v843_v56, %v839_v54  ;;  %v845_v58 = vpop.f32.mrb[3].mxu0  ;;  %v1505_v54 = vsel %vm463_vm0, %v11160_v46, 0 }
 0x110   : > { %v10754_v59 = vpack.c.bf16 %v845_v58, %v841_v55  ;;  %v1662_v55 = vsel %vm463_vm0, %v11163_v47, 0  ;;  %v11164_v58 = vld [vmem:[%s15705_s1 + $0x148] ss:$16 sps:$4 sm:$0xff]  }
 0x112   : > { %10755 = vmatprep.subr.bf16.mxu0 %v10754_v59 }
 0x113   : > { %10757 = vmatpush1.bf16.msra.mxu0 %v10756_v57 }
 0x114   : > { %v849_v61 = vpop.f32.mrb[4].mxu0 }
 0x115   : > { %v10910_v62 = vadd.f32 %v849_v61, %v520_v50  ;;  %v851_v63 = vpop.f32.mrb[5].mxu0  ;;  %v11169_v50 = vld [vmem:[%s15705_s1 + $0x168] ss:$16 sps:$4 sm:$0x7f]  }
 0x116   : > { %v10911_v0 = vadd.f32 %v851_v63, %v522_v51  ;;  %v853_v1 = vpop.f32.mrb[6].mxu0  ;;  %v11152_v51 = vld [vmem:[%s15705_s1 + $0xc8] ss:$16 sps:$4 sm:$0xff]   ;;  %v1668_v56 = vsel %vm463_vm0, %v11169_v50, 0 }
 0x117   : > { %v10912_v3 = vadd.f32 %v853_v1, %v524_v52  ;;  %v855_v4 = vpop.f32.mrb[7].mxu0  ;;  %v11158_v52 = vld [vmem:[%s15705_s1 + $0xec] ss:$16 sps:$4 sm:$0x7f]  }
 0x118   : > { %v10913_v5 = vadd.f32 %v855_v4, %v526_v53  ;;  %v11155_v53 = vld [vmem:[%s15705_s1 + $0x140] ss:$16 sps:$4 sm:$0xff]  }
 0x119   : > { %v10761_v6 = vpack.c.bf16 %v10912_v3, %v10910_v62  ;;  %v892_v7 = vpop.f32.mrb[4].mxu1  ;;  %v12881_v62 = vld [vmem:[%s15707_s3 + $0x8] sm:$0xff] }
 0x11a   : > { %v10758_v8 = vpack.c.bf16 %v10913_v5, %v10911_v0  ;;  %v894_v9 = vpop.f32.mrb[5].mxu1  ;;  %v12888_v0 = vld [vmem:[%s15707_s3 + $0x20] sm:$0xff]  ;;  %v12893_v3 = vld [vmem:[%s15707_s3 + $0x28] sm:$0xff] }
 0x11b   : > { %v896_v10 = vpop.f32.mrb[6].mxu1 }
 0x11c   : > { %10760 = vmatprep.subr.msk.bf16.mxu0 %vm12689_vm4, %v10758_v8  ;;  %v10766_v12 = vpack.c.bf16 %v896_v10, %v892_v7  ;;  %v898_v13 = vpop.f32.mrb[7].mxu1 }
 0x11d   : > { %10763 = vmatpush1.bf16.msk.msra.mxu0 %vm12689_vm4, %v10761_v6  ;;  %v10764_v15 = vpack.c.bf16 %v898_v13, %v894_v9 }
 0x11e   : > { %10775 = vmatprep.subr.bf16.mxu0 %v10754_v59  ;;  %v11167_v59 = vld [vmem:[%s15705_s1 + $0x16c] ss:$16 sps:$4 sm:$0x7f]  }
 0x11f   : > { %10765 = vmatprep.subr.bf16.mxu1 %v10764_v15 }
 0x120   : > { %9116 = vmatmul.mubr.msk.f32.vlgmr.msra.gmra.mrb[8].mxu0 %vm937_vm5, %v12696_v11  ;;  %10767 = vmatpush1.bf16.msra.mxu1 %v10766_v12 }
 0x121   : > { %v902_v19 = vpop.f32.mrb[8].mxu1  ;;  %10777 = vmatpush1.bf16.msra.mxu0 %v10756_v57  ;;  %1027 = vmatprep.mubr.f32.mxu0 %v12421_v49  ;;  %v11161_v57 = vld [vmem:[%s15705_s1 + $0x164] ss:$16 sps:$4 sm:$0x7f]  }
 0x122   : > { %v904_v20 = vpop.f32.mrb[9].mxu1  ;;  %10780 = vmatprep.subr.msk.bf16.mxu0 %vm12689_vm4, %v10758_v8 }
 0x123   : > { %v906_v21 = vpop.f32.mrb[10].mxu1 }
 0x124   : > { %v10771_v24 = vpack.c.bf16 %v906_v21, %v902_v19  ;;  %v908_v25 = vpop.f32.mrb[11].mxu1  ;;  %9117 = vmatmul.mubr.msk.f32.gmra.mrb[10].mxu0 %vm937_vm5, %v12705_v16 }
 0x125   : > { %v10768_v28 = vpack.c.bf16 %v908_v25, %v904_v20  ;;  %10783 = vmatpush1.bf16.msk.msra.mxu0 %vm12689_vm4, %v10761_v6  ;;  %1192 = vmatprep.mubr.f32.mxu0 %v12421_v49 }
 0x126   : > { %1356 = vmatprep.subr.bf16.mxu0 %v11136_v18 }
 0x127   : > { %10770 = vmatprep.subr.msk.bf16.mxu1 %vm12689_vm4, %v10768_v28 }
 0x128   : > { %10773 = vmatpush1.bf16.msk.msra.mxu1 %vm12689_vm4, %v10771_v24  ;;  %9126 = vmatmul.mubr.msk.f32.vlgmr.msra.gmra.mrb[12].mxu0 %vm937_vm5, %v12718_v22 }
 0x129   : > { %1357 = vmatpush1.bf16.msra.mxu0 %v11134_v23  ;;  %10785 = vmatprep.subr.bf16.mxu1 %v10764_v15 }
 0x12a   : > { %1198 = vmatprep.mubr.f32.mxu0 %v12421_v49  ;;  %9156 = vmatprep.subr.msk.bf16.mxu0 %vm463_vm0, %v11137_v26 }
 0x12b   : > { %9120 = vmatmul.mubr.msk.f32.vlgmr.msra.gmra.mrb[12].mxu1 %vm937_vm5, %v12696_v11 }
 0x12c   : > { %10787 = vmatpush1.bf16.msra.mxu1 %v10766_v12  ;;  %9127 = vmatmul.mubr.msk.f32.gmra.mrb[14].mxu0 %vm937_vm5, %v12739_v30 }
 0x12d   : > { %1104 = vmatprep.mubr.f32.mxu1 %v12421_v49  ;;  %1359 = vmatpush1.bf16.msra.mxu0 %v1345_v32 }
 0x12e   : > { %10790 = vmatprep.subr.msk.bf16.mxu1 %vm12689_vm4, %v10768_v28  ;;  %1388 = vmatprep.mubr.bf16.mxu0 %v12420_v2 }
 0x12f   : > { %9121 = vmatmul.mubr.msk.f32.gmra.mrb[14].mxu1 %vm937_vm5, %v12705_v16  ;;  %1510 = vmatprep.subr.bf16.mxu0 %v11145_v31 }
 0x130   : > { %10793 = vmatpush1.bf16.msk.msra.mxu1 %vm12689_vm4, %v10771_v24  ;;  %9157 = vmatmul.mubr.msk.bf16.vlgmr.msra.gmra.mrb[16].mxu0 %vm456_vm1, %v12576_v14  ;;  %v12905_v24 = vld [vmem:[%s15707_s3 + $0x10] sm:$0xff] }
 0x131   : > { %1269 = vmatprep.mubr.f32.mxu1 %v12421_v49  ;;  %1409 = vmatprep.subr.bf16.mxu1 %v11142_v33 }
 0x132   : > { %1511 = vmatpush1.bf16.msra.mxu0 %v11143_v34  ;;  %1398 = vmatprep.mubr.bf16.mxu0 %v12420_v2 }
 0x133   : > { %9130 = vmatmul.mubr.msk.f32.vlgmr.msra.gmra.mrb[16].mxu1 %vm937_vm5, %v12718_v22  ;;  %9170 = vmatprep.subr.msk.bf16.mxu0 %vm463_vm0, %v11149_v35 }
 0x134   : > { %1410 = vmatpush1.bf16.msra.mxu1 %v11140_v37  ;;  %1275 = vmatprep.mubr.f32.mxu1 %v12421_v49 }
 0x135   : > { %9159 = vmatprep.subr.msk.bf16.mxu1 %vm463_vm0, %v11146_v39 }
 0x136   : > { %1513 = vmatpush1.bf16.msra.mxu0 %v1499_v42  ;;  %v12929_v42 = vld [vmem:[%s15707_s3 + $0x38] sm:$0xff] }
 0x137   : > { %9131 = vmatmul.mubr.msk.f32.gmra.mrb[18].mxu1 %vm937_vm5, %v12739_v30  ;;  %1673 = vmatprep.subr.bf16.mxu0 %v11157_v41 }
 0x138   : > { %1412 = vmatpush1.bf16.msra.mxu1 %v1351_v45  ;;  %9158 = vmatmul.mubr.msk.bf16.gmra.mrb[20].mxu0 %vm456_vm1, %v12582_v17 }
 0x139   : > { %1441 = vmatprep.mubr.bf16.mxu1 %v12420_v2  ;;  %1542 = vmatprep.mubr.bf16.mxu0 %v12420_v2 }
 0x13a   : > { %1563 = vmatprep.subr.bf16.mxu1 %v11154_v43 }
 0x13b   : > { %9160 = vmatmul.mubr.msk.bf16.vlgmr.msra.gmra.mrb[20].mxu1 %vm456_vm1, %v12576_v14  ;;  %v11166_v14 = vld [vmem:[%s15705_s1 + $0x14c] ss:$16 sps:$4 sm:$0xff]  }
 0x13c   : > { %1451 = vmatprep.mubr.bf16.mxu1 %v12420_v2  ;;  %1564 = vmatpush1.bf16.msra.mxu1 %v11152_v51 }
 0x13d   : > { %9173 = vmatprep.subr.msk.bf16.mxu1 %vm463_vm0, %v11158_v52 }
 0x140   : > { %9171 = vmatmul.mubr.msk.bf16.vlgmr.msra.gmra.mrb[16].mxu0 %vm456_vm1, %v12617_v29  ;;  %1566 = vmatpush1.bf16.msra.mxu1 %v1505_v54 }
 0x141   : > { %1674 = vmatpush1.bf16.msra.mxu0 %v11155_v53  ;;  %1552 = vmatprep.mubr.bf16.mxu0 %v12420_v2 }
 0x142   : > { %9192 = vmatprep.subr.msk.bf16.mxu0 %vm463_vm0, %v11161_v57  ;;  %1726 = vmatprep.subr.bf16.mxu1 %v11166_v14 }
 0x143   : > { %9161 = vmatmul.mubr.msk.bf16.gmra.mrb[24].mxu1 %vm456_vm1, %v12582_v17 }
 0x144   : > { %1595 = vmatprep.mubr.bf16.mxu1 %v12420_v2 }
 0x145   : > { %1676 = vmatpush1.bf16.msra.mxu0 %v1662_v55 }
 0x148   : > { %9172 = vmatmul.mubr.msk.bf16.gmra.mrb[20].mxu0 %vm456_vm1, %v12643_v38 }
 0x149   : > { %1705 = vmatprep.mubr.bf16.mxu0 %v12420_v2 }
 0x14b   : > { %9174 = vmatmul.mubr.msk.bf16.vlgmr.msra.gmra.mrb[20].mxu1 %vm456_vm1, %v12617_v29 }
 0x14c   : > { %1605 = vmatprep.mubr.bf16.mxu1 %v12420_v2  ;;  %1727 = vmatpush1.bf16.msra.mxu1 %v11164_v58 }
 0x14d   : > { %9195 = vmatprep.subr.msk.bf16.mxu1 %vm463_vm0, %v11167_v59 }
 0x150   : > { %9193 = vmatmul.mubr.msk.bf16.vlgmr.msra.gmra.mrb[16].mxu0 %vm456_vm1, %v12662_v44  ;;  %1729 = vmatpush1.bf16.msra.mxu1 %v1668_v56 }
 0x151   : > { %1715 = vmatprep.mubr.bf16.mxu0 %v12420_v2 }
 0x153   : > { %9175 = vmatmul.mubr.msk.bf16.gmra.mrb[24].mxu1 %vm456_vm1, %v12643_v38  ;;  %v12876_v38 = vld [vmem:[%s15707_s3] sm:$0xff] }
 0x154   : > { %1758 = vmatprep.mubr.bf16.mxu1 %v12420_v2 }
 0x158   : > { %9194 = vmatmul.mubr.msk.bf16.gmra.mrb[20].mxu0 %vm456_vm1, %v12674_v48 }
 0x159   : > { %1871 = vmatprep.mubr.f32.mxu0 %v12421_v49 }
 0x15b   : > { %9196 = vmatmul.mubr.msk.bf16.vlgmr.msra.gmra.mrb[20].mxu1 %vm456_vm1, %v12662_v44 }
 0x15c   : > { %1768 = vmatprep.mubr.bf16.mxu1 %v12420_v2 }
 0x163   : > { %9197 = vmatmul.mubr.msk.bf16.gmra.mrb[24].mxu1 %vm456_vm1, %v12674_v48 }
 0x164   : > { %1948 = vmatprep.mubr.f32.mxu1 %v12421_v49 }
 0x1f3   : > { %v1023_v17 = vpop.f32.mrb[8].mxu0 }
 0x1f4   : > { %v1025_v29 = vpop.f32.mrb[9].mxu0  ;;  %v1024_v63 = vadd.f32 %v1023_v17, %v12876_v38 }
 0x1f5   : > { %v1026_v48 = vadd.f32 %v1025_v29, %v12881_v62 }
 0x1f6   : > { %v1111_v7 = vmax.f32 %v1024_v63, 0.0 }
 0x1f7   : > { %v1029_v61 = vpop.f32.mrb[10].mxu0  ;;  %v1112_v12 = vmax.f32 %v1026_v48, 0.0 }
 0x1f8   : > { %v1031_v44 = vpop.f32.mrb[11].mxu0  ;;  %v1030_v8 = vadd.f32 %v1029_v61, %v12888_v0 }
 0x1f9   : > { %v1032_v13 = vadd.f32 %v1031_v44, %v12893_v3 }
 0x1fa   : > { %v1115_v28 = vmax.f32 %v1030_v8, 0.0 }
 0x1fb   : > { %v1194_v1 = vpop.f32.mrb[12].mxu0  ;;  %v1116_v33 = vmax.f32 %v1032_v13, 0.0 }
 0x1fc   : > { %v1195_v4 = vadd.f32 %v1194_v1, %v12876_v38  ;;  %v1196_v5 = vpop.f32.mrb[13].mxu0 }
 0x1fd   : > { %v1197_v6 = vadd.f32 %v1196_v5, %v12881_v62 }
 0x1fe   : > { %v1282_v9 = vmax.f32 %v1195_v4, 0.0  ;;  %v1100_v10 = vpop.f32.mrb[12].mxu1 }
 0x1ff   : > { %v1283_v15 = vmax.f32 %v1197_v6, 0.0  ;;  %v1200_v18 = vpop.f32.mrb[14].mxu0  ;;  %v1102_v19 = vpop.f32.mrb[13].mxu1  ;;  %v1101_v35 = vadd.f32 %v1100_v10, %v12905_v24 }
 0x200   : > { %v12899_v20 = vmax.f32 %v1111_v7, %v1282_v9  ;;  %v1201_v21 = vadd.f32 %v1200_v18, %v12888_v0  ;;  %v1202_v23 = vpop.f32.mrb[15].mxu0  ;;  %v1103_v39 = vadd.f32 %v1102_v19, %v12913_v27 }
 0x201   : > { %v12907_v25 = vmax.f32 %v1112_v12, %v1283_v15  ;;  %v1203_v26 = vadd.f32 %v1202_v23, %v12893_v3  ;;  %v1113_v45 = vmax.f32 %v1101_v35, 0.0  ;;  %v11172_v35 = vld [vmem:[%s15708_s4 + $0x404] ss:$16 sps:$4 sm:$0xff]  }
 0x202   : > { %v1286_v31 = vmax.f32 %v1201_v21, 0.0  ;;  %v1106_v32 = vpop.f32.mrb[14].mxu1  ;;  %v1114_v51 = vmax.f32 %v1103_v39, 0.0 }
 0x203   : > { %v1287_v34 = vmax.f32 %v1203_v26, 0.0  ;;  %v1108_v36 = vpop.f32.mrb[15].mxu1  ;;  %v1107_v46 = vadd.f32 %v1106_v32, %v12922_v40 }
 0x204   : > { %v12916_v37 = vmax.f32 %v1115_v28, %v1286_v31  ;;  %v1109_v52 = vadd.f32 %v1108_v36, %v12929_v42 }
 0x205   : > { %v12924_v41 = vmax.f32 %v1116_v33, %v1287_v34  ;;  %v1117_v57 = vmax.f32 %v1107_v46, 0.0  ;;  %v11170_v46 = vld [vmem:[%s15708_s4 + $0x400] ss:$16 sps:$4 sm:$0xff]  }
 0x206   : > { %v1271_v43 = vpop.f32.mrb[16].mxu1  ;;  %v1118_v17 = vmax.f32 %v1109_v52, 0.0  ;;  %v11175_v52 = vld [vmem:[%s15708_s4 + $0x40c] ss:$16 sps:$4 sm:$0xff]  }
 0x207   : > { %v1272_v47 = vadd.f32 %v1271_v43, %v12905_v24  ;;  %v1273_v50 = vpop.f32.mrb[17].mxu1 }
 0x208   : > { %v1274_v53 = vadd.f32 %v1273_v50, %v12913_v27  ;;  %v11176_v50 = vld [vmem:[%s15708_s4 + $0x420] ss:$16 sps:$4 sm:$0xff]  }
 0x209   : > { %v1284_v54 = vmax.f32 %v1272_v47, 0.0  ;;  %v11178_v47 = vld [vmem:[%s15708_s4 + $0x424] ss:$16 sps:$4 sm:$0xff]  }
 0x20a   : > { %v1285_v55 = vmax.f32 %v1274_v53, 0.0  ;;  %v1277_v56 = vpop.f32.mrb[18].mxu1  ;;  %v11190_v53 = vld [vmem:[%s15708_s4 + $0x464] ss:$16 sps:$4 sm:$0xff]  }
 0x20b   : > { %v12935_v14 = vmax.f32 %v1113_v45, %v1284_v54  ;;  %v1278_v58 = vadd.f32 %v1277_v56, %v12922_v40  ;;  %v1279_v59 = vpop.f32.mrb[19].mxu1  ;;  %v11173_v54 = vld [vmem:[%s15708_s4 + $0x408] ss:$16 sps:$4 sm:$0xff]  }
 0x20c   : > { %v12938_v29 = vmax.f32 %v1114_v51, %v1285_v55  ;;  %v1280_v61 = vadd.f32 %v1279_v59, %v12929_v42  ;;  %v11184_v51 = vld [vmem:[%s15708_s4 + $0x444] ss:$16 sps:$4 sm:$0xff]   ;;  %v11181_v55 = vld [vmem:[%s15708_s4 + $0x42c] ss:$16 sps:$4 sm:$0xff]   ;;  %v11179_v56 = vld [vmem:[%s15708_s4 + $0x428] ss:$16 sps:$4 sm:$0xff]  }
 0x20d   : > { %v1288_v44 = vmax.f32 %v1278_v58, 0.0  ;;  %v11202_v58 = vld [vmem:[%s15708_s4 + $0x4a4] ss:$16 sps:$4 sm:$0xff]   ;;  %v11185_v59 = vld [vmem:[%s15708_s4 + $0x448] ss:$16 sps:$4 sm:$0xff]  }
 0x20e   : > { %v1289_v63 = vmax.f32 %v1280_v61, 0.0  ;;  %v11208_v61 = vld [vmem:[%s15708_s4 + $0x4c4] ss:$16 sps:$4 sm:$0xff]  }
 0x20f   : > { %v12941_v48 = vmax.f32 %v1117_v57, %v1288_v44  ;;  %v11187_v57 = vld [vmem:[%s15708_s4 + $0x44c] ss:$16 sps:$4 sm:$0xff]   ;;  %v11191_v44 = vld [vmem:[%s15708_s4 + $0x468] ss:$16 sps:$4 sm:$0xff]  }
 0x210   : > { %v12943_v1 = vmax.f32 %v1118_v17, %v1289_v63  ;;  %v11193_v17 = vld [vmem:[%s15708_s4 + $0x46c] ss:$16 sps:$4 sm:$0xff]  }
 0x211   : > { %v11199_v63 = vld [vmem:[%s15708_s4 + $0x48c] ss:$16 sps:$4 sm:$0xff]  }
 0x223   : > { %v1707_v4 = vpop.f32.mrb[16].mxu0 }
 0x224   : > { %v1709_v5 = vpop.f32.mrb[17].mxu0 }
 0x225   : > { %v1711_v6 = vpop.f32.mrb[18].mxu0 }
 0x226   : > { %v10796_v7 = vpack.c.bf16 %v1711_v6, %v1707_v4  ;;  %v1713_v8 = vpop.f32.mrb[19].mxu0  ;;  %v11206_v4 = vld [vmem:[%s15708_s4 + $0x4c0] ss:$16 sps:$4 sm:$0xff]   ;;  %v11205_v6 = vld [vmem:[%s15708_s4 + $0x4ac] ss:$16 sps:$4 sm:$0xff]  }
 0x227   : > { %v10794_v9 = vpack.c.bf16 %v1713_v8, %v1709_v5  ;;  %v11197_v5 = vld [vmem:[%s15708_s4 + $0x488] ss:$16 sps:$4 sm:$0xff]   ;;  %v11211_v8 = vld [vmem:[%s15708_s4 + $0x4cc] ss:$16 sps:$4 sm:$0xff]  }
 0x229   : > { %10795 = vmatprep.subr.bf16.mxu0 %v10794_v9 }
 0x22a   : > { %10797 = vmatpush1.bf16.msra.mxu0 %v10796_v7 }
 0x22b   : > { %v1717_v10 = vpop.f32.mrb[20].mxu0 }
 0x22c   : > { %v1719_v12 = vpop.f32.mrb[21].mxu0 }
 0x22d   : > { %v1721_v13 = vpop.f32.mrb[22].mxu0 }
 0x22e   : > { %v10801_v15 = vpack.c.bf16 %v1721_v13, %v1717_v10  ;;  %v1723_v18 = vpop.f32.mrb[23].mxu0  ;;  %v1760_v19 = vpop.f32.mrb[20].mxu1  ;;  %v11214_v10 = vld [vmem:[%s15708_s4 + $0x4e4] ss:$16 sps:$4 sm:$0xff]   ;;  %v11212_v13 = vld [vmem:[%s15708_s4 + $0x4e0] ss:$16 sps:$4 sm:$0xff]  }
 0x22f   : > { %v10798_v21 = vpack.c.bf16 %v1723_v18, %v1719_v12  ;;  %v1762_v23 = vpop.f32.mrb[21].mxu1  ;;  %v11217_v12 = vld [vmem:[%s15708_s4 + $0x4ec] ss:$16 sps:$4 sm:$0xff]   ;;  %v11220_v18 = vld [vmem:[%s15708_s4 + $0x504] ss:$16 sps:$4 sm:$0xff]  }
 0x230   : > { %v1764_v26 = vpop.f32.mrb[22].mxu1 }
 0x231   : > { %10800 = vmatprep.subr.msk.bf16.mxu0 %vm12689_vm4, %v10798_v21  ;;  %v10806_v28 = vpack.c.bf16 %v1764_v26, %v1760_v19  ;;  %v1766_v31 = vpop.f32.mrb[23].mxu1  ;;  %v11223_v19 = vld [vmem:[%s15708_s4 + $0x50c] ss:$16 sps:$4 sm:$0xff]   ;;  %v11226_v26 = vld [vmem:[%s15708_s4 + $0x524] ss:$16 sps:$4 sm:$0xff]  }
 0x232   : > { %10803 = vmatpush1.bf16.msk.msra.mxu0 %vm12689_vm4, %v10801_v15  ;;  %v10804_v32 = vpack.c.bf16 %v1766_v31, %v1762_v23  ;;  %v11221_v23 = vld [vmem:[%s15708_s4 + $0x508] ss:$16 sps:$4 sm:$0xff]   ;;  %v11224_v31 = vld [vmem:[%s15708_s4 + $0x520] ss:$16 sps:$4 sm:$0xff]  }
 0x233   : > { %10815 = vmatprep.subr.bf16.mxu0 %v10794_v9  ;;  %v11209_v9 = vld [vmem:[%s15708_s4 + $0x4c8] ss:$16 sps:$4 sm:$0xff]  }
 0x234   : > { %10805 = vmatprep.subr.bf16.mxu1 %v10804_v32 }
 0x235   : > { %9200 = vmatmul.mubr.msk.f32.vlgmr.msra.gmra.mrb[24].mxu0 %vm937_vm5, %v12696_v11  ;;  %10807 = vmatpush1.bf16.msra.mxu1 %v10806_v28 }
 0x236   : > { %v1770_v33 = vpop.f32.mrb[24].mxu1  ;;  %10817 = vmatpush1.bf16.msra.mxu0 %v10796_v7  ;;  %1877 = vmatprep.mubr.f32.mxu0 %v12421_v49  ;;  %v11203_v7 = vld [vmem:[%s15708_s4 + $0x4a8] ss:$16 sps:$4 sm:$0xff]  }
 0x237   : > { %v1772_v34 = vpop.f32.mrb[25].mxu1  ;;  %10820 = vmatprep.subr.msk.bf16.mxu0 %vm12689_vm4, %v10798_v21  ;;  %v11218_v21 = vld [vmem:[%s15708_s4 + $0x500] ss:$16 sps:$4 sm:$0xff]  }
 0x238   : > { %v1774_v36 = vpop.f32.mrb[26].mxu1 }
 0x239   : > { %v10811_v39 = vpack.c.bf16 %v1774_v36, %v1770_v33  ;;  %v1776_v43 = vpop.f32.mrb[27].mxu1  ;;  %9201 = vmatmul.mubr.msk.f32.gmra.mrb[26].mxu0 %vm937_vm5, %v12705_v16  ;;  %v11232_v33 = vld [vmem:[%s15708_s4 + $0x544] ss:$16 sps:$4 sm:$0xff]   ;;  %v11233_v36 = vld [vmem:[%s15708_s4 + $0x548] ss:$16 sps:$4 sm:$0xff]  }
 0x23a   : > { %v10808_v45 = vpack.c.bf16 %v1776_v43, %v1772_v34  ;;  %10823 = vmatpush1.bf16.msk.msra.mxu0 %vm12689_vm4, %v10801_v15  ;;  %2033 = vmatprep.mubr.f32.mxu0 %v12421_v49  ;;  %v11215_v15 = vld [vmem:[%s15708_s4 + $0x4e8] ss:$16 sps:$4 sm:$0xff]   ;;  %v11235_v34 = vld [vmem:[%s15708_s4 + $0x54c] ss:$16 sps:$4 sm:$0xff]  }
 0x23b   : > { %3128 = vmatprep.subr.bf16.mxu0 %v11172_v35  ;;  %v11230_v35 = vld [vmem:[%s15708_s4 + $0x540] ss:$16 sps:$4 sm:$0xff]   ;;  %v11241_v43 = vld [vmem:[%s15708_s4 + $0x56c] ss:$16 sps:$4 sm:$0xff]  }
 0x23c   : > { %10810 = vmatprep.subr.msk.bf16.mxu1 %vm12689_vm4, %v10808_v45 }
 0x23d   : > { %10813 = vmatpush1.bf16.msk.msra.mxu1 %vm12689_vm4, %v10811_v39  ;;  %9208 = vmatmul.mubr.msk.f32.vlgmr.msra.gmra.mrb[28].mxu0 %vm937_vm5, %v12718_v22 }
 0x23e   : > { %10825 = vmatprep.subr.bf16.mxu1 %v10804_v32  ;;  %2039 = vmatprep.mubr.f32.mxu0 %v12421_v49  ;;  %v11227_v32 = vld [vmem:[%s15708_s4 + $0x528] ss:$16 sps:$4 sm:$0xff]  }
 0x23f   : > { %3129 = vmatpush1.bf16.msra.mxu0 %v11170_v46  ;;  %v11239_v46 = vld [vmem:[%s15708_s4 + $0x568] ss:$16 sps:$4 sm:$0xff]  }
 0x240   : > { %9204 = vmatmul.mubr.msk.f32.vlgmr.msra.gmra.mrb[28].mxu1 %vm937_vm5, %v12696_v11  ;;  %3130 = vmatprep.subr.bf16.mxu0 %v11178_v47  ;;  %v11182_v11 = vld [vmem:[%s15708_s4 + $0x440] ss:$16 sps:$4 sm:$0xff]   ;;  %v11244_v47 = vld [vmem:[%s15708_s4 + $0x584] ss:$16 sps:$4 sm:$0xff]  }
 0x241   : > { %10827 = vmatpush1.bf16.msra.mxu1 %v10806_v28  ;;  %9209 = vmatmul.mubr.msk.f32.gmra.mrb[30].mxu0 %vm937_vm5, %v12739_v30  ;;  %v11229_v28 = vld [vmem:[%s15708_s4 + $0x52c] ss:$16 sps:$4 sm:$0xff]  }
 0x242   : > { %1954 = vmatprep.mubr.f32.mxu1 %v12421_v49  ;;  %10830 = vmatprep.subr.msk.bf16.mxu1 %vm12689_vm4, %v10808_v45  ;;  %v11236_v45 = vld [vmem:[%s15708_s4 + $0x560] ss:$16 sps:$4 sm:$0xff]  }
 0x243   : > { %3131 = vmatpush1.bf16.msra.mxu0 %v11176_v50  ;;  %v11247_v50 = vld [vmem:[%s15708_s4 + $0x58c] ss:$16 sps:$4 sm:$0xff]  }
 0x244   : > { %9205 = vmatmul.mubr.msk.f32.gmra.mrb[30].mxu1 %vm937_vm5, %v12705_v16  ;;  %3132 = vmatprep.subr.bf16.mxu0 %v11184_v51  ;;  %v11188_v16 = vld [vmem:[%s15708_s4 + $0x460] ss:$16 sps:$4 sm:$0xff]  }
 0x245   : > { %10833 = vmatpush1.bf16.msk.msra.mxu1 %vm12689_vm4, %v10811_v39  ;;  %2110 = vmatprep.mubr.f32.mxu1 %v12421_v49  ;;  %v11238_v39 = vld [vmem:[%s15708_s4 + $0x564] ss:$16 sps:$4 sm:$0xff]   ;;  %v11242_v51 = vld [vmem:[%s15708_s4 + $0x580] ss:$16 sps:$4 sm:$0xff]  }
 0x246   : > { %3214 = vmatprep.subr.bf16.mxu1 %v11175_v52  ;;  %v11245_v52 = vld [vmem:[%s15708_s4 + $0x588] ss:$16 sps:$4 sm:$0xff]  }
 0x247   : > { %3133 = vmatpush1.bf16.msra.mxu0 %v11182_v11  ;;  %v11250_v11 = vld [vmem:[%s15708_s4 + $0x5a4] ss:$16 sps:$4 sm:$0xff]  }
 0x248   : > { %9212 = vmatmul.mubr.msk.f32.vlgmr.msra.gmra.mrb[32].mxu1 %vm937_vm5, %v12718_v22  ;;  %3134 = vmatprep.subr.bf16.mxu0 %v11190_v53  ;;  %v11194_v22 = vld [vmem:[%s15708_s4 + $0x480] ss:$16 sps:$4 sm:$0xff]   ;;  %v11253_v53 = vld [vmem:[%s15708_s4 + $0x5ac] ss:$16 sps:$4 sm:$0xff]  }
 0x249   : > { %2116 = vmatprep.mubr.f32.mxu1 %v12421_v49  ;;  %3215 = vmatpush1.bf16.msra.mxu1 %v11173_v54  ;;  %v11248_v54 = vld [vmem:[%s15708_s4 + $0x5a0] ss:$16 sps:$4 sm:$0xff]  }
 0x24a   : > { %3216 = vmatprep.subr.bf16.mxu1 %v11181_v55  ;;  %v11251_v55 = vld [vmem:[%s15708_s4 + $0x5a8] ss:$16 sps:$4 sm:$0xff]  }
 0x24b   : > { %3135 = vmatpush1.bf16.msra.mxu0 %v11188_v16  ;;  %v11256_v16 = vld [vmem:[%s15708_s4 + $0x5c4] ss:$16 sps:$4 sm:$0xff]  }
 0x24c   : > { %9213 = vmatmul.mubr.msk.f32.gmra.mrb[34].mxu1 %vm937_vm5, %v12739_v30  ;;  %3136 = vmatprep.subr.bf16.mxu0 %v11196_v60  ;;  %v11200_v30 = vld [vmem:[%s15708_s4 + $0x4a0] ss:$16 sps:$4 sm:$0xff]   ;;  %v11259_v60 = vld [vmem:[%s15708_s4 + $0x5cc] ss:$16 sps:$4 sm:$0xff]  }
 0x24d   : > { %3217 = vmatpush1.bf16.msra.mxu1 %v11179_v56  ;;  %v11254_v56 = vld [vmem:[%s15708_s4 + $0x5c0] ss:$16 sps:$4 sm:$0xff]  }
 0x24e   : > { %3218 = vmatprep.subr.bf16.mxu1 %v11187_v57  ;;  %v11257_v57 = vld [vmem:[%s15708_s4 + $0x5c8] ss:$16 sps:$4 sm:$0xff]  }
 0x24f   : > { %3137 = vmatpush1.bf16.msra.mxu0 %v11194_v22  ;;  %v11260_v22 = vld [vmem:[%s15708_s4 + $0x5e0] ss:$16 sps:$4 sm:$0xff]  }
 0x250   : > { %3138 = vmatprep.subr.bf16.mxu0 %v11202_v58  ;;  %v11262_v58 = vld [vmem:[%s15708_s4 + $0x5e4] ss:$16 sps:$4 sm:$0xff]  }
 0x251   : > { %3219 = vmatpush1.bf16.msra.mxu1 %v11185_v59  ;;  %v11263_v59 = vld [vmem:[%s15708_s4 + $0x5e8] ss:$16 sps:$4 sm:$0xff]  }
 0x252   : > { %3220 = vmatprep.subr.bf16.mxu1 %v11193_v17  ;;  %v11265_v17 = vld [vmem:[%s15708_s4 + $0x5ec] ss:$16 sps:$4 sm:$0xff]  }
 0x253   : > { %3139 = vmatpush1.bf16.msra.mxu0 %v11200_v30  ;;  %v11268_v30 = vld [vmem:[%s15708_s4 + $0x604] ss:$16 sps:$4 sm:$0xff]  }
 0x254   : > { %3140 = vmatprep.subr.bf16.mxu0 %v11208_v61  ;;  %v11271_v61 = vld [vmem:[%s15708_s4 + $0x60c] ss:$16 sps:$4 sm:$0xff]  }
 0x255   : > { %3221 = vmatpush1.bf16.msra.mxu1 %v11191_v44 }
 0x256   : > { %3222 = vmatprep.subr.bf16.mxu1 %v11199_v63 }
 0x257   : > { %3141 = vmatpush1.bf16.msra.mxu0 %v11206_v4 }
 0x258   : > { %3142 = vmatprep.subr.bf16.mxu0 %v11214_v10 }
 0x259   : > { %3223 = vmatpush1.bf16.msra.mxu1 %v11197_v5 }
 0x25a   : > { %3224 = vmatprep.subr.bf16.mxu1 %v11205_v6 }
 0x25b   : > { %3143 = vmatpush1.bf16.msra.mxu0 %v11212_v13 }
 0x25c   : > { %3144 = vmatprep.subr.bf16.mxu0 %v11220_v18 }
 0x25d   : > { %3225 = vmatpush1.bf16.msra.mxu1 %v11203_v7 }
 0x25e   : > { %3226 = vmatprep.subr.bf16.mxu1 %v11211_v8 }
 0x25f   : > { %3145 = vmatpush1.bf16.msra.mxu0 %v11218_v21 }
 0x260   : > { %3146 = vmatprep.subr.bf16.mxu0 %v11226_v26 }
 0x261   : > { %3227 = vmatpush1.bf16.msra.mxu1 %v11209_v9 }
 0x262   : > { %3228 = vmatprep.subr.bf16.mxu1 %v11217_v12 }
 0x263   : > { %3147 = vmatpush1.bf16.msra.mxu0 %v11224_v31 }
 0x264   : > { %3148 = vmatprep.subr.bf16.mxu0 %v11232_v33 }
 0x265   : > { %3229 = vmatpush1.bf16.msra.mxu1 %v11215_v15 }
 0x266   : > { %3230 = vmatprep.subr.bf16.mxu1 %v11223_v19 }
 0x267   : > { %3149 = vmatpush1.bf16.msra.mxu0 %v11230_v35 }
 0x268   : > { %3150 = vmatprep.subr.bf16.mxu0 %v11238_v39 }
 0x269   : > { %3231 = vmatpush1.bf16.msra.mxu1 %v11221_v23 }
 0x26a   : > { %3232 = vmatprep.subr.bf16.mxu1 %v11229_v28 }
 0x26b   : > { %3151 = vmatpush1.bf16.msra.mxu0 %v11236_v45 }
 0x26c   : > { %3152 = vmatprep.subr.bf16.mxu0 %v11244_v47 }
 0x26d   : > { %3233 = vmatpush1.bf16.msra.mxu1 %v11227_v32 }
 0x26e   : > { %3234 = vmatprep.subr.bf16.mxu1 %v11235_v34 }
 0x26f   : > { %3153 = vmatpush1.bf16.msra.mxu0 %v11242_v51 }
 0x270   : > { %3154 = vmatprep.subr.bf16.mxu0 %v11250_v11 }
 0x271   : > { %3235 = vmatpush1.bf16.msra.mxu1 %v11233_v36 }
 0x272   : > { %3236 = vmatprep.subr.bf16.mxu1 %v11241_v43 }
 0x273   : > { %3155 = vmatpush1.bf16.msra.mxu0 %v11248_v54 }
 0x274   : > { %3156 = vmatprep.subr.bf16.mxu0 %v11256_v16 }
 0x275   : > { %3237 = vmatpush1.bf16.msra.mxu1 %v11239_v46 }
 0x276   : > { %3238 = vmatprep.subr.bf16.mxu1 %v11247_v50 }
 0x277   : > { %3157 = vmatpush1.bf16.msra.mxu0 %v11254_v56 }
 0x278   : > { %3158 = vmatprep.subr.bf16.mxu0 %v11262_v58 }
 0x279   : > { %3239 = vmatpush1.bf16.msra.mxu1 %v11245_v52 }
 0x27a   : > { %3240 = vmatprep.subr.bf16.mxu1 %v11253_v53 }
 0x27b   : > { %3159 = vmatpush1.bf16.msra.mxu0 %v11260_v22 }
 0x27c   : > { %3171 = vmatprep.subr.bf16.mxu0 %v11268_v30 }
 0x27d   : > { %3241 = vmatpush1.bf16.msra.mxu1 %v11251_v55 }
 0x27e   : > { %3242 = vmatprep.subr.bf16.mxu1 %v11259_v60 }
 0x281   : > { %3243 = vmatpush1.bf16.msra.mxu1 %v11257_v57 }
 0x282   : > { %3244 = vmatprep.subr.bf16.mxu1 %v11265_v17 }
 0x285   : > { %3245 = vmatpush1.bf16.msra.mxu1 %v11263_v59 }
 0x286   : > { %3257 = vmatprep.subr.bf16.mxu1 %v11271_v61 }
 0x308   : > { %v1873_v44 = vpop.f32.mrb[24].mxu0 }
 0x309   : > { %v1875_v63 = vpop.f32.mrb[25].mxu0  ;;  %v1874_v6 = vadd.f32 %v1873_v44, %v12876_v38 }
 0x30a   : > { %v1876_v7 = vadd.f32 %v1875_v63, %v12881_v62 }
 0x30b   : > { %v1961_v13 = vmax.f32 %v1874_v6, 0.0 }
 0x30c   : > { %v1879_v4 = vpop.f32.mrb[26].mxu0  ;;  %v1962_v21 = vmax.f32 %v1876_v7, 0.0 }
 0x30d   : > { %v1881_v5 = vpop.f32.mrb[27].mxu0  ;;  %v1880_v15 = vadd.f32 %v1879_v4, %v12888_v0 }
 0x30e   : > { %v1882_v23 = vadd.f32 %v1881_v5, %v12893_v3 }
 0x30f   : > { %v1965_v36 = vmax.f32 %v1880_v15, 0.0 }
 0x310   : > { %v2035_v8 = vpop.f32.mrb[28].mxu0  ;;  %v1966_v45 = vmax.f32 %v1882_v23, 0.0 }
 0x311   : > { %v2036_v9 = vadd.f32 %v2035_v8, %v12876_v38  ;;  %v2037_v10 = vpop.f32.mrb[29].mxu0 }
 0x312   : > { %v2038_v12 = vadd.f32 %v2037_v10, %v12881_v62 }
 0x313   : > { %v2123_v18 = vmax.f32 %v2036_v9, 0.0  ;;  %v1950_v19 = vpop.f32.mrb[28].mxu1 }
 0x314   : > { %v2124_v26 = vmax.f32 %v2038_v12, 0.0  ;;  %v2041_v28 = vpop.f32.mrb[30].mxu0  ;;  %v1952_v31 = vpop.f32.mrb[29].mxu1  ;;  %v1951_v50 = vadd.f32 %v1950_v19, %v12905_v24 }
 0x315   : > { %v2139_v32 = vmax.f32 %v1961_v13, %v2123_v18  ;;  %v2042_v33 = vadd.f32 %v2041_v28, %v12888_v0  ;;  %v2043_v34 = vpop.f32.mrb[31].mxu0  ;;  %v1953_v0 = vadd.f32 %v1952_v31, %v12913_v27  ;;  %v11266_v28 = vld [vmem:[%s15708_s4 + $0x600] ss:$16 sps:$4 sm:$0xff]  }
 0x316   : > { %v2140_v35 = vmax.f32 %v1962_v21, %v2124_v26  ;;  %v2044_v38 = vadd.f32 %v2043_v34, %v12893_v3  ;;  %v1963_v54 = vmax.f32 %v1951_v50, 0.0  ;;  %v11275_v34 = vld [vmem:[%s15708_s4 + $0x628] ss:$16 sps:$4 sm:$0xff]  }
 0x317   : > { %v2147_v62 = vmax.f32 %v12899_v20, %v2139_v32  ;;  %v2127_v39 = vmax.f32 %v2042_v33, 0.0  ;;  %v1956_v43 = vpop.f32.mrb[30].mxu1  ;;  %v1964_v60 = vmax.f32 %v1953_v0, 0.0  ;;  %v11277_v32 = vld [vmem:[%s15708_s4 + $0x62c] ss:$16 sps:$4 sm:$0xff]  }
 0x318   : > { %v13191_v46 = vmax.f32 %v12907_v25, %v2140_v35  ;;  %v2128_v47 = vmax.f32 %v2044_v38, 0.0  ;;  %v1958_v51 = vpop.f32.mrb[31].mxu1  ;;  %v1957_v25 = vadd.f32 %v1956_v43, %v12922_v40  ;;  %v11272_v33 = vld [vmem:[%s15708_s4 + $0x620] ss:$16 sps:$4 sm:$0xff]   ;;  %v11289_v0 = vld [vmem:[%s15708_s4 + $0x66c] ss:$16 sps:$4 sm:$0xff]  }
 0x319   : > { %2155 = vst [vmem:[#allocation2] sm:$0xff] %v2147_v62  ;;  %v2143_v52 = vmax.f32 %v1965_v36, %v2127_v39  ;;  %v1959_v56 = vadd.f32 %v1958_v51, %v12929_v42  ;;  %v11280_v36 = vld [vmem:[%s15708_s4 + $0x644] ss:$16 sps:$4 sm:$0xff]   ;;  %v11283_v62 = vld [vmem:[%s15708_s4 + $0x64c] ss:$16 sps:$4 sm:$0xff]  }
 0x31a   : > { %2156 = vst [vmem:[#allocation2 + $0x8] sm:$0xff] %v13191_v46  ;;  %v2144_v3 = vmax.f32 %v1966_v45, %v2128_v47  ;;  %v11278_v45 = vld [vmem:[%s15708_s4 + $0x640] ss:$16 sps:$4 sm:$0xff]   ;;  %v11281_v47 = vld [vmem:[%s15708_s4 + $0x648] ss:$16 sps:$4 sm:$0xff]  }
 0x31b   : > { %v2151_v11 = vmax.f32 %v12916_v37, %v2143_v52  ;;  %v2112_v20 = vpop.f32.mrb[32].mxu1  ;;  %v1967_v37 = vmax.f32 %v1957_v25, 0.0  ;;  %v1968_v61 = vmax.f32 %v1959_v56, 0.0  ;;  %v11286_v52 = vld [vmem:[%s15708_s4 + $0x664] ss:$16 sps:$4 sm:$0xff]  }
 0x31c   : > { %v2152_v53 = vmax.f32 %v12924_v41, %v2144_v3  ;;  %v2113_v55 = vadd.f32 %v2112_v20, %v12905_v24  ;;  %v2114_v16 = vpop.f32.mrb[33].mxu1  ;;  %v11287_v20 = vld [vmem:[%s15708_s4 + $0x668] ss:$16 sps:$4 sm:$0xff]   ;;  %v11290_v25 = vld [vmem:[%s15708_s4 + $0x680] ss:$16 sps:$4 sm:$0xff]  }
 0x31d   : > { %2159 = vst [vmem:[#allocation2 + $0x20] sm:$0xff] %v2151_v11  ;;  %v2115_v57 = vadd.f32 %v2114_v16, %v12913_v27  ;;  %v11284_v11 = vld [vmem:[%s15708_s4 + $0x660] ss:$16 sps:$4 sm:$0xff]   ;;  %v11298_v16 = vld [vmem:[%s15708_s4 + $0x6a4] ss:$16 sps:$4 sm:$0xff]  }
 0x31e   : > { %2160 = vst [vmem:[#allocation2 + $0x28] sm:$0xff] %v2152_v53  ;;  %v2125_v22 = vmax.f32 %v2113_v55, 0.0  ;;  %v11292_v53 = vld [vmem:[%s15708_s4 + $0x684] ss:$16 sps:$4 sm:$0xff]   ;;  %v11293_v55 = vld [vmem:[%s15708_s4 + $0x688] ss:$16 sps:$4 sm:$0xff]  }
 0x31f   : > { %v2126_v58 = vmax.f32 %v2115_v57, 0.0  ;;  %v2118_v59 = vpop.f32.mrb[34].mxu1  ;;  %v11296_v56 = vld [vmem:[%s15708_s4 + $0x6a0] ss:$16 sps:$4 sm:$0xff]   ;;  %v11299_v57 = vld [vmem:[%s15708_s4 + $0x6a8] ss:$16 sps:$4 sm:$0xff]  }
 0x320   : > { %v2141_v17 = vmax.f32 %v1963_v54, %v2125_v22  ;;  %v2119_v41 = vadd.f32 %v2118_v59, %v12922_v40  ;;  %v2120_v30 = vpop.f32.mrb[35].mxu1  ;;  %v2175_v7 = vld [vmem:[#allocation2] sm:$0xfe]  ;;  %v11295_v54 = vld [vmem:[%s15708_s4 + $0x68c] ss:$16 sps:$4 sm:$0xff]  }
 0x321   : > { %v2142_v44 = vmax.f32 %v1964_v60, %v2126_v58  ;;  %v2121_v24 = vadd.f32 %v2120_v30, %v12929_v42  ;;  %v2176_v40 = vld [vmem:[#allocation2 + $0x8] sm:$0xfe]  ;;  %v11304_v22 = vld [vmem:[%s15708_s4 + $0x6c4] ss:$16 sps:$4 sm:$0xff]   ;;  %v11302_v59 = vld [vmem:[%s15708_s4 + $0x6c0] ss:$16 sps:$4 sm:$0xff]  }
 0x322   : > { %v2149_v63 = vmax.f32 %v12935_v14, %v2141_v17  ;;  %v2129_v4 = vmax.f32 %v2119_v41, 0.0  ;;  %v11301_v60 = vld [vmem:[%s15708_s4 + $0x6ac] ss:$16 sps:$4 sm:$0xff]   ;;  %v11310_v17 = vld [vmem:[%s15708_s4 + $0x6e4] ss:$16 sps:$4 sm:$0xff]  }
 0x323   : > { %v13206_v5 = vmax.f32 %v12938_v29, %v2142_v44  ;;  %v2130_v27 = vmax.f32 %v2121_v24, 0.0  ;;  %v11307_v58 = vld [vmem:[%s15708_s4 + $0x6cc] ss:$16 sps:$4 sm:$0xff]   ;;  %v11308_v30 = vld [vmem:[%s15708_s4 + $0x6e0] ss:$16 sps:$4 sm:$0xff]  }
 0x324   : > { %2157 = vst [vmem:[#allocation2 + $0x10] sm:$0xff] %v2149_v63  ;;  %v2145_v6 = vmax.f32 %v1967_v37, %v2129_v4  ;;  %v2179_v8 = vld [vmem:[#allocation2 + $0x20] sm:$0x7f]  ;;  %v11305_v37 = vld [vmem:[%s15708_s4 + $0x6c8] ss:$16 sps:$4 sm:$0xff]  }
 0x325   : > { %2158 = vst [vmem:[#allocation2 + $0x18] sm:$0xff] %v13206_v5  ;;  %v2146_v9 = vmax.f32 %v1968_v61, %v2130_v27  ;;  %v2180_v10 = vld [vmem:[#allocation2 + $0x28] sm:$0x7f]  ;;  %v2183_v12 = vpack.c.bf16 %v2179_v8, %v2175_v7  ;;  %v11316_v44 = vld [vmem:[%s15708_s4 + $0x704] ss:$16 sps:$4 sm:$0xff]  }
 0x326   : > { %v2153_v13 = vmax.f32 %v12941_v48, %v2145_v6  ;;  %v2184_v42 = vpack.c.bf16 %v2180_v10, %v2176_v40  ;;  %v11269_v48 = vld [vmem:[%s15708_s4 + $0x608] ss:$16 sps:$4 sm:$0xff]   ;;  %v11313_v41 = vld [vmem:[%s15708_s4 + $0x6ec] ss:$16 sps:$4 sm:$0xff]   ;;  %v11314_v63 = vld [vmem:[%s15708_s4 + $0x700] ss:$16 sps:$4 sm:$0xff]  }
 0x327   : > { %v2154_v14 = vmax.f32 %v12943_v1, %v2146_v9  ;;  %v2459_v15 = vshll.u32 %v2183_v12, 16  ;;  %v2457_v23 = vshrl.u32 %v2183_v12, 16  ;;  %v11274_v1 = vld [vmem:[%s15708_s4 + $0x624] ss:$16 sps:$4 sm:$0xff]   ;;  %v11311_v61 = vld [vmem:[%s15708_s4 + $0x6e8] ss:$16 sps:$4 sm:$0xff]  }
 0x328   : > { %2161 = vst [vmem:[#allocation2 + $0x30] sm:$0xff] %v2153_v13  ;;  %v2466_v29 = vshll.u32 %v2184_v42, 16  ;;  %v2464_v19 = vshrl.u32 %v2184_v42, 16  ;;  %v11319_v24 = vld [vmem:[%s15708_s4 + $0x70c] ss:$16 sps:$4 sm:$0xff]  }
 0x329   : > { %2162 = vst [vmem:[#allocation2 + $0x38] sm:$0xff] %v2154_v14  ;;  %v2461_v18 = vrot.slane %v2459_v15, 1  ;;  %v11317_v4 = vld [vmem:[%s15708_s4 + $0x708] ss:$16 sps:$4 sm:$0xff]   ;;  %v11322_v27 = vld [vmem:[%s15708_s4 + $0x724] ss:$16 sps:$4 sm:$0xff]  }
 0x32a   : > { %v2468_v21 = vrot.slane %v2466_v29, 1  ;;  %v11325_v6 = vld [vmem:[%s15708_s4 + $0x72c] ss:$16 sps:$4 sm:$0xff]   ;;  %v11320_v7 = vld [vmem:[%s15708_s4 + $0x720] ss:$16 sps:$4 sm:$0xff]  }
 0x32b   : > { %v13219_v31 = vor.u32 %v2461_v18, %v2457_v23  ;;  %v11323_v8 = vld [vmem:[%s15708_s4 + $0x728] ss:$16 sps:$4 sm:$0xff]   ;;  %v11328_v9 = vld [vmem:[%s15708_s4 + $0x744] ss:$16 sps:$4 sm:$0xff]   ;;  %v11331_v40 = vld [vmem:[%s15708_s4 + $0x74c] ss:$16 sps:$4 sm:$0xff]  }
 0x32c   : > { %v13211_v26 = vor.u32 %v2468_v21, %v2464_v19  ;;  %v2178_v35 = vld [vmem:[#allocation2 + $0x18] sm:$0xfe]  ;;  %v11326_v10 = vld [vmem:[%s15708_s4 + $0x740] ss:$16 sps:$4 sm:$0xff]   ;;  %v11334_v13 = vld [vmem:[%s15708_s4 + $0x764] ss:$16 sps:$4 sm:$0xff]  }
 0x32d   : > { %v11329_v12 = vld [vmem:[%s15708_s4 + $0x748] ss:$16 sps:$4 sm:$0xff]   ;;  %v11337_v42 = vld [vmem:[%s15708_s4 + $0x76c] ss:$16 sps:$4 sm:$0xff]   ;;  %v11332_v14 = vld [vmem:[%s15708_s4 + $0x760] ss:$16 sps:$4 sm:$0xff]  }
 0x32e   : > { %3160 = vmatprep.mubr.bf16.mxu0 %v13211_v26  ;;  %3246 = vmatprep.mubr.bf16.mxu1 %v13211_v26  ;;  %v11335_v15 = vld [vmem:[%s15708_s4 + $0x768] ss:$16 sps:$4 sm:$0xff]   ;;  %v11340_v29 = vld [vmem:[%s15708_s4 + $0x784] ss:$16 sps:$4 sm:$0xff]   ;;  %v11343_v18 = vld [vmem:[%s15708_s4 + $0x78c] ss:$16 sps:$4 sm:$0xff]  }
 0x32f   : > { %3161 = vmatmul.mubr.bf16.vlgmr.msra.gmra.mrb[32].mxu0 %v13219_v31  ;;  %3247 = vmatmul.mubr.bf16.vlgmr.msra.gmra.mrb[36].mxu1 %v13219_v31  ;;  %v11338_v19 = vld [vmem:[%s15708_s4 + $0x780] ss:$16 sps:$4 sm:$0xff]   ;;  %v11341_v21 = vld [vmem:[%s15708_s4 + $0x788] ss:$16 sps:$4 sm:$0xff]   ;;  %v11346_v23 = vld [vmem:[%s15708_s4 + $0x7a4] ss:$16 sps:$4 sm:$0xff]  }
 0x330   : > { %3172 = vmatpush1.bf16.msra.mxu0 %v11266_v28  ;;  %3258 = vmatpush1.bf16.msra.mxu1 %v11269_v48  ;;  %v2182_v38 = vld [vmem:[#allocation2 + $0x38] sm:$0x7f]  ;;  %v2181_v48 = vld [vmem:[#allocation2 + $0x30] sm:$0x7f] }
 0x331   : > { %3173 = vmatprep.subr.bf16.mxu0 %v11274_v1  ;;  %3259 = vmatprep.subr.bf16.mxu1 %v11277_v32  ;;  %v2186_v39 = vpack.c.bf16 %v2182_v38, %v2178_v35  ;;  %v11349_v28 = vld [vmem:[%s15708_s4 + $0x7ac] ss:$16 sps:$4 sm:$0xff]   ;;  %v11344_v1 = vld [vmem:[%s15708_s4 + $0x7a0] ss:$16 sps:$4 sm:$0xff]   ;;  %v11347_v32 = vld [vmem:[%s15708_s4 + $0x7a8] ss:$16 sps:$4 sm:$0xff]  }
 0x332   : > { %v11355_v35 = vld [vmem:[%s15708_s4 + $0x7cc] ss:$16 sps:$4 sm:$0xff]  }
 0x333   : > { %v2480_v43 = vshll.u32 %v2186_v39, 16  ;;  %v2478_v50 = vshrl.u32 %v2186_v39, 16  ;;  %v11358_v39 = vld [vmem:[%s15708_s4 + $0x7e4] ss:$16 sps:$4 sm:$0xff]  }
 0x334   : > { %3174 = vmatpush1.bf16.msra.mxu0 %v11272_v33  ;;  %3260 = vmatpush1.bf16.msra.mxu1 %v11275_v34  ;;  %v2177_v33 = vld [vmem:[#allocation2 + $0x10] sm:$0xfe] }
 0x335   : > { %3175 = vmatprep.subr.bf16.mxu0 %v11280_v36  ;;  %3261 = vmatprep.subr.bf16.mxu1 %v11283_v62  ;;  %v2482_v51 = vrot.slane %v2480_v43, 1  ;;  %v11352_v34 = vld [vmem:[%s15708_s4 + $0x7c4] ss:$16 sps:$4 sm:$0xff]   ;;  %v2185_v38 = vpack.c.bf16 %v2181_v48, %v2177_v33  ;;  %v11350_v36 = vld [vmem:[%s15708_s4 + $0x7c0] ss:$16 sps:$4 sm:$0xff]  }
 0x336   : > { %v11353_v62 = vld [vmem:[%s15708_s4 + $0x7c8] ss:$16 sps:$4 sm:$0xff]   ;;  %v11361_v43 = vld [vmem:[%s15708_s4 + $0x7ec] ss:$16 sps:$4 sm:$0xff]   ;;  %v11422_v33 = vld [vmem:[%s15708_s4 + $0x140] ss:$16 sps:$4 sm:$0xff]  }
 0x337   : > { %v13255_v3 = vor.u32 %v2482_v51, %v2478_v50  ;;  %v11359_v50 = vld [vmem:[%s15708_s4 + $0x7e8] ss:$16 sps:$4 sm:$0xff]  }
 0x338   : > { %3176 = vmatpush1.bf16.msra.mxu0 %v11278_v45  ;;  %3262 = vmatpush1.bf16.msra.mxu1 %v11281_v47  ;;  %v2473_v45 = vshll.u32 %v2185_v38, 16  ;;  %v11356_v47 = vld [vmem:[%s15708_s4 + $0x7e0] ss:$16 sps:$4 sm:$0xff]   ;;  %v11419_v48 = vld [vmem:[%s15708_s4 + $0x128] ss:$16 sps:$4 sm:$0xff]  }
 0x339   : > { %3203 = vmatprep.mubr.bf16.mxu0 %v13255_v3  ;;  %3289 = vmatprep.mubr.bf16.mxu1 %v13255_v3 }
 0x33a   : > { %3177 = vmatprep.subr.bf16.mxu0 %v11286_v52  ;;  %3263 = vmatprep.subr.bf16.mxu1 %v11289_v0  ;;  %v2475_v51 = vrot.slane %v2473_v45, 1  ;;  %v11364_v52 = vld [vmem:[%s15708_s4 + $0x4] ss:$16 sps:$4 sm:$0xff]   ;;  %v11367_v0 = vld [vmem:[%s15708_s4 + $0xc] ss:$16 sps:$4 sm:$0xff]  }
 0x33b   : > { %v11434_v45 = vld [vmem:[%s15708_s4 + $0x180] ss:$16 sps:$4 sm:$0xff]  }
 0x33c   : > { %3178 = vmatpush1.bf16.msra.mxu0 %v11284_v11  ;;  %3264 = vmatpush1.bf16.msra.mxu1 %v11287_v20  ;;  %v2471_v11 = vshrl.u32 %v2185_v38, 16  ;;  %v2168_v20 = vld [vmem:[#allocation2 + $0x28] sm:$0x3f] }
 0x33d   : > { %3179 = vmatprep.subr.bf16.mxu0 %v11292_v53  ;;  %3265 = vmatprep.subr.bf16.mxu1 %v11295_v54  ;;  %v11362_v53 = vld [vmem:[%s15708_s4] ss:$16 sps:$4 sm:$0xff]   ;;  %v11433_v38 = vld [vmem:[%s15708_s4 + $0x16c] ss:$16 sps:$4 sm:$0xff]  }
 0x33e   : > { %v13418_v54 = vor.u32 %v2475_v51, %v2471_v11  ;;  %v11445_v51 = vld [vmem:[%s15708_s4 + $0x1ac] ss:$16 sps:$4 sm:$0xff]   ;;  %v11448_v11 = vld [vmem:[%s15708_s4 + $0x1c4] ss:$16 sps:$4 sm:$0xff]  }
 0x340   : > { %3180 = vmatpush1.bf16.msra.mxu0 %v11290_v25  ;;  %3266 = vmatpush1.bf16.msra.mxu1 %v11293_v55  ;;  %v11365_v25 = vld [vmem:[%s15708_s4 + $0x8] ss:$16 sps:$4 sm:$0xff]   ;;  %v13424_v55 = vpack.c.bf16 %v2168_v20, %v13191_v46  ;;  %v11368_v46 = vld [vmem:[%s15708_s4 + $0x20] ss:$16 sps:$4 sm:$0xff]   ;;  %v11451_v20 = vld [vmem:[%s15708_s4 + $0x1cc] ss:$16 sps:$4 sm:$0xff]  }
 0x341   : > { %3181 = vmatprep.subr.bf16.mxu0 %v11298_v16  ;;  %3267 = vmatprep.subr.bf16.mxu1 %v11301_v60  ;;  %v11370_v16 = vld [vmem:[%s15708_s4 + $0x24] ss:$16 sps:$4 sm:$0xff]   ;;  %v11373_v60 = vld [vmem:[%s15708_s4 + $0x2c] ss:$16 sps:$4 sm:$0xff]  }
 0x344   : > { %3182 = vmatpush1.bf16.msra.mxu0 %v11296_v56  ;;  %3268 = vmatpush1.bf16.msra.mxu1 %v11299_v57  ;;  %v11371_v56 = vld [vmem:[%s15708_s4 + $0x28] ss:$16 sps:$4 sm:$0xff]   ;;  %v11376_v57 = vld [vmem:[%s15708_s4 + $0x44] ss:$16 sps:$4 sm:$0xff]  }
 0x345   : > { %3183 = vmatprep.subr.bf16.mxu0 %v11304_v22  ;;  %3269 = vmatprep.subr.bf16.mxu1 %v11307_v58  ;;  %v11379_v22 = vld [vmem:[%s15708_s4 + $0x4c] ss:$16 sps:$4 sm:$0xff]   ;;  %v11374_v58 = vld [vmem:[%s15708_s4 + $0x40] ss:$16 sps:$4 sm:$0xff]  }
 0x348   : > { %3184 = vmatpush1.bf16.msra.mxu0 %v11302_v59  ;;  %3270 = vmatpush1.bf16.msra.mxu1 %v11305_v37  ;;  %v11377_v59 = vld [vmem:[%s15708_s4 + $0x48] ss:$16 sps:$4 sm:$0xff]   ;;  %v11382_v37 = vld [vmem:[%s15708_s4 + $0x64] ss:$16 sps:$4 sm:$0xff]  }
 0x349   : > { %3185 = vmatprep.subr.bf16.mxu0 %v11310_v17  ;;  %3271 = vmatprep.subr.bf16.mxu1 %v11313_v41  ;;  %v11385_v17 = vld [vmem:[%s15708_s4 + $0x6c] ss:$16 sps:$4 sm:$0xff]   ;;  %v11380_v41 = vld [vmem:[%s15708_s4 + $0x60] ss:$16 sps:$4 sm:$0xff]  }
 0x34c   : > { %3186 = vmatpush1.bf16.msra.mxu0 %v11308_v30  ;;  %3272 = vmatpush1.bf16.msra.mxu1 %v11311_v61  ;;  %v11383_v30 = vld [vmem:[%s15708_s4 + $0x68] ss:$16 sps:$4 sm:$0xff]   ;;  %v11388_v61 = vld [vmem:[%s15708_s4 + $0x84] ss:$16 sps:$4 sm:$0xff]  }
 0x34d   : > { %3187 = vmatprep.subr.bf16.mxu0 %v11316_v44  ;;  %3273 = vmatprep.subr.bf16.mxu1 %v11319_v24  ;;  %v11391_v44 = vld [vmem:[%s15708_s4 + $0x8c] ss:$16 sps:$4 sm:$0xff]   ;;  %v11386_v24 = vld [vmem:[%s15708_s4 + $0x80] ss:$16 sps:$4 sm:$0xff]  }
 0x350   : > { %3188 = vmatpush1.bf16.msra.mxu0 %v11314_v63  ;;  %3274 = vmatpush1.bf16.msra.mxu1 %v11317_v4  ;;  %v11389_v63 = vld [vmem:[%s15708_s4 + $0x88] ss:$16 sps:$4 sm:$0xff]   ;;  %v11394_v4 = vld [vmem:[%s15708_s4 + $0xa4] ss:$16 sps:$4 sm:$0xff]  }
 0x351   : > { %3189 = vmatprep.subr.bf16.mxu0 %v11322_v27  ;;  %3275 = vmatprep.subr.bf16.mxu1 %v11325_v6  ;;  %v11397_v27 = vld [vmem:[%s15708_s4 + $0xac] ss:$16 sps:$4 sm:$0xff]   ;;  %v11392_v6 = vld [vmem:[%s15708_s4 + $0xa0] ss:$16 sps:$4 sm:$0xff]  }
 0x354   : > { %3190 = vmatpush1.bf16.msra.mxu0 %v11320_v7  ;;  %3276 = vmatpush1.bf16.msra.mxu1 %v11323_v8  ;;  %v11395_v7 = vld [vmem:[%s15708_s4 + $0xa8] ss:$16 sps:$4 sm:$0xff]   ;;  %v11400_v8 = vld [vmem:[%s15708_s4 + $0xc4] ss:$16 sps:$4 sm:$0xff]  }
 0x355   : > { %3191 = vmatprep.subr.bf16.mxu0 %v11328_v9  ;;  %3277 = vmatprep.subr.bf16.mxu1 %v11331_v40  ;;  %v11403_v9 = vld [vmem:[%s15708_s4 + $0xcc] ss:$16 sps:$4 sm:$0xff]   ;;  %v11398_v40 = vld [vmem:[%s15708_s4 + $0xc0] ss:$16 sps:$4 sm:$0xff]  }
 0x358   : > { %3192 = vmatpush1.bf16.msra.mxu0 %v11326_v10  ;;  %3278 = vmatpush1.bf16.msra.mxu1 %v11329_v12  ;;  %v11401_v10 = vld [vmem:[%s15708_s4 + $0xc8] ss:$16 sps:$4 sm:$0xff]   ;;  %v11406_v12 = vld [vmem:[%s15708_s4 + $0xe4] ss:$16 sps:$4 sm:$0xff]  }
 0x359   : > { %3193 = vmatprep.subr.bf16.mxu0 %v11334_v13  ;;  %3279 = vmatprep.subr.bf16.mxu1 %v11337_v42  ;;  %v11409_v13 = vld [vmem:[%s15708_s4 + $0xec] ss:$16 sps:$4 sm:$0xff]   ;;  %v11404_v42 = vld [vmem:[%s15708_s4 + $0xe0] ss:$16 sps:$4 sm:$0xff]  }
 0x35c   : > { %3194 = vmatpush1.bf16.msra.mxu0 %v11332_v14  ;;  %3280 = vmatpush1.bf16.msra.mxu1 %v11335_v15  ;;  %v11407_v14 = vld [vmem:[%s15708_s4 + $0xe8] ss:$16 sps:$4 sm:$0xff]   ;;  %v11412_v15 = vld [vmem:[%s15708_s4 + $0x104] ss:$16 sps:$4 sm:$0xff]  }
 0x35d   : > { %3195 = vmatprep.subr.bf16.mxu0 %v11340_v29  ;;  %3281 = vmatprep.subr.bf16.mxu1 %v11343_v18  ;;  %v11415_v29 = vld [vmem:[%s15708_s4 + $0x10c] ss:$16 sps:$4 sm:$0xff]   ;;  %v11410_v18 = vld [vmem:[%s15708_s4 + $0x100] ss:$16 sps:$4 sm:$0xff]  }
 0x360   : > { %3196 = vmatpush1.bf16.msra.mxu0 %v11338_v19  ;;  %3282 = vmatpush1.bf16.msra.mxu1 %v11341_v21  ;;  %v11413_v19 = vld [vmem:[%s15708_s4 + $0x108] ss:$16 sps:$4 sm:$0xff]   ;;  %v11418_v21 = vld [vmem:[%s15708_s4 + $0x124] ss:$16 sps:$4 sm:$0xff]  }
 0x361   : > { %3197 = vmatprep.subr.bf16.mxu0 %v11346_v23  ;;  %3283 = vmatprep.subr.bf16.mxu1 %v11349_v28  ;;  %v11421_v23 = vld [vmem:[%s15708_s4 + $0x12c] ss:$16 sps:$4 sm:$0xff]   ;;  %v11416_v28 = vld [vmem:[%s15708_s4 + $0x120] ss:$16 sps:$4 sm:$0xff]  }
 0x364   : > { %3198 = vmatpush1.bf16.msra.mxu0 %v11344_v1  ;;  %3284 = vmatpush1.bf16.msra.mxu1 %v11347_v32  ;;  %v11424_v1 = vld [vmem:[%s15708_s4 + $0x144] ss:$16 sps:$4 sm:$0xff]   ;;  %v11427_v32 = vld [vmem:[%s15708_s4 + $0x14c] ss:$16 sps:$4 sm:$0xff]  }
 0x365   : > { %3199 = vmatprep.subr.bf16.mxu0 %v11352_v34  ;;  %3285 = vmatprep.subr.bf16.mxu1 %v11355_v35  ;;  %v11425_v34 = vld [vmem:[%s15708_s4 + $0x148] ss:$16 sps:$4 sm:$0xff]   ;;  %v11430_v35 = vld [vmem:[%s15708_s4 + $0x164] ss:$16 sps:$4 sm:$0xff]  }
 0x368   : > { %3200 = vmatpush1.bf16.msra.mxu0 %v11350_v36  ;;  %3286 = vmatpush1.bf16.msra.mxu1 %v11353_v62  ;;  %v11428_v36 = vld [vmem:[%s15708_s4 + $0x160] ss:$16 sps:$4 sm:$0xff]   ;;  %v11431_v62 = vld [vmem:[%s15708_s4 + $0x168] ss:$16 sps:$4 sm:$0xff]  }
 0x369   : > { %3201 = vmatprep.subr.bf16.mxu0 %v11358_v39  ;;  %3287 = vmatprep.subr.bf16.mxu1 %v11361_v43  ;;  %v11436_v39 = vld [vmem:[%s15708_s4 + $0x184] ss:$16 sps:$4 sm:$0xff]   ;;  %v11439_v43 = vld [vmem:[%s15708_s4 + $0x18c] ss:$16 sps:$4 sm:$0xff]  }
 0x36c   : > { %3202 = vmatpush1.bf16.msra.mxu0 %v11356_v47  ;;  %3288 = vmatpush1.bf16.msra.mxu1 %v11359_v50  ;;  %v11437_v47 = vld [vmem:[%s15708_s4 + $0x188] ss:$16 sps:$4 sm:$0xff]   ;;  %v11442_v50 = vld [vmem:[%s15708_s4 + $0x1a4] ss:$16 sps:$4 sm:$0xff]  }
 0x36d   : > { %3940 = vmatprep.subr.bf16.mxu0 %v11364_v52  ;;  %4026 = vmatprep.subr.bf16.mxu1 %v11367_v0  ;;  %v11440_v52 = vld [vmem:[%s15708_s4 + $0x1a0] ss:$16 sps:$4 sm:$0xff]   ;;  %v11443_v0 = vld [vmem:[%s15708_s4 + $0x1a8] ss:$16 sps:$4 sm:$0xff]  }
 0x36f   : > { %3204 = vmatmul.mubr.bf16.vlgmr.msra.gmra.mrb[32].mxu0 %v13418_v54  ;;  %3290 = vmatmul.mubr.bf16.vlgmr.msra.gmra.mrb[36].mxu1 %v13418_v54 }
 0x370   : > { %3941 = vmatpush1.bf16.msra.mxu0 %v11362_v53  ;;  %3972 = vmatprep.mubr.bf16.mxu0 %v13424_v55  ;;  %v11446_v53 = vld [vmem:[%s15708_s4 + $0x1c0] ss:$16 sps:$4 sm:$0xff]  }
 0x371   : > { %4027 = vmatpush1.bf16.msra.mxu1 %v11365_v25  ;;  %4058 = vmatprep.mubr.bf16.mxu1 %v13424_v55  ;;  %v11449_v25 = vld [vmem:[%s15708_s4 + $0x1c8] ss:$16 sps:$4 sm:$0xff]  }
 0x372   : > { %3942 = vmatprep.subr.bf16.mxu0 %v11370_v16  ;;  %4028 = vmatprep.subr.bf16.mxu1 %v11373_v60  ;;  %v11454_v16 = vld [vmem:[%s15708_s4 + $0x1e4] ss:$16 sps:$4 sm:$0xff]   ;;  %v11457_v60 = vld [vmem:[%s15708_s4 + $0x1ec] ss:$16 sps:$4 sm:$0xff]  }
 0x374   : > { %3943 = vmatpush1.bf16.msra.mxu0 %v11368_v46  ;;  %v11452_v46 = vld [vmem:[%s15708_s4 + $0x1e0] ss:$16 sps:$4 sm:$0xff]  }
 0x375   : > { %4029 = vmatpush1.bf16.msra.mxu1 %v11371_v56  ;;  %3944 = vmatprep.subr.bf16.mxu0 %v11376_v57  ;;  %v11455_v56 = vld [vmem:[%s15708_s4 + $0x1e8] ss:$16 sps:$4 sm:$0xff]   ;;  %v11460_v57 = vld [vmem:[%s15708_s4 + $0x204] ss:$16 sps:$4 sm:$0xff]  }
 0x376   : > { %4030 = vmatprep.subr.bf16.mxu1 %v11379_v22  ;;  %v2167_v22 = vld [vmem:[#allocation2 + $0x20] sm:$0x3f] }
 0x378   : > { %3945 = vmatpush1.bf16.msra.mxu0 %v11374_v58  ;;  %v11463_v58 = vld [vmem:[%s15708_s4 + $0x20c] ss:$16 sps:$4 sm:$0xff]  }
 0x379   : > { %4031 = vmatpush1.bf16.msra.mxu1 %v11377_v59  ;;  %3946 = vmatprep.subr.bf16.mxu0 %v11382_v37  ;;  %v2163_v59 = vld [vmem:[#allocation2] sm:$0xff] }
 0x37a   : > { %4032 = vmatprep.subr.bf16.mxu1 %v11385_v17  ;;  %v11458_v37 = vld [vmem:[%s15708_s4 + $0x200] ss:$16 sps:$4 sm:$0xff]   ;;  %v2170_v17 = vld [vmem:[#allocation2 + $0x38] sm:$0x3f] }
 0x37c   : > { %3947 = vmatpush1.bf16.msra.mxu0 %v11380_v41  ;;  %v13619_v41 = vpack.c.bf16 %v2167_v22, %v2163_v59  ;;  %v11541_v22 = vld [vmem:[%s15708_s4 + $0x3ac] ss:$16 sps:$4 sm:$0xff]   ;;  %v11539_v59 = vld [vmem:[%s15708_s4 + $0x3a8] ss:$16 sps:$4 sm:$0xff]  }
 0x37d   : > { %4033 = vmatpush1.bf16.msra.mxu1 %v11383_v30  ;;  %3948 = vmatprep.subr.bf16.mxu0 %v11388_v61  ;;  %v11461_v30 = vld [vmem:[%s15708_s4 + $0x208] ss:$16 sps:$4 sm:$0xff]   ;;  %v11466_v61 = vld [vmem:[%s15708_s4 + $0x224] ss:$16 sps:$4 sm:$0xff]  }
 0x37e   : > { %4034 = vmatprep.subr.bf16.mxu1 %v11391_v44  ;;  %v13629_v44 = vpack.c.bf16 %v2170_v17, %v13206_v5  ;;  %v11472_v5 = vld [vmem:[%s15708_s4 + $0x244] ss:$16 sps:$4 sm:$0xff]   ;;  %v11547_v17 = vld [vmem:[%s15708_s4 + $0x3cc] ss:$16 sps:$4 sm:$0xff]  }
 0x380   : > { %3949 = vmatpush1.bf16.msra.mxu0 %v11386_v24  ;;  %v11469_v24 = vld [vmem:[%s15708_s4 + $0x22c] ss:$16 sps:$4 sm:$0xff]  }
 0x381   : > { %4035 = vmatpush1.bf16.msra.mxu1 %v11389_v63  ;;  %3950 = vmatprep.subr.bf16.mxu0 %v11394_v4  ;;  %v11464_v63 = vld [vmem:[%s15708_s4 + $0x220] ss:$16 sps:$4 sm:$0xff]   ;;  %v11467_v4 = vld [vmem:[%s15708_s4 + $0x228] ss:$16 sps:$4 sm:$0xff]  }
 0x382   : > { %4036 = vmatprep.subr.bf16.mxu1 %v11397_v27  ;;  %v11475_v27 = vld [vmem:[%s15708_s4 + $0x24c] ss:$16 sps:$4 sm:$0xff]  }
 0x384   : > { %3951 = vmatpush1.bf16.msra.mxu0 %v11392_v6  ;;  %v11470_v6 = vld [vmem:[%s15708_s4 + $0x240] ss:$16 sps:$4 sm:$0xff]  }
 0x385   : > { %4037 = vmatpush1.bf16.msra.mxu1 %v11395_v7  ;;  %3952 = vmatprep.subr.bf16.mxu0 %v11400_v8  ;;  %v11473_v7 = vld [vmem:[%s15708_s4 + $0x248] ss:$16 sps:$4 sm:$0xff]   ;;  %v11478_v8 = vld [vmem:[%s15708_s4 + $0x264] ss:$16 sps:$4 sm:$0xff]  }
 0x386   : > { %4038 = vmatprep.subr.bf16.mxu1 %v11403_v9  ;;  %v11481_v9 = vld [vmem:[%s15708_s4 + $0x26c] ss:$16 sps:$4 sm:$0xff]  }
 0x388   : > { %3953 = vmatpush1.bf16.msra.mxu0 %v11398_v40  ;;  %v11476_v40 = vld [vmem:[%s15708_s4 + $0x260] ss:$16 sps:$4 sm:$0xff]  }
 0x389   : > { %4039 = vmatpush1.bf16.msra.mxu1 %v11401_v10  ;;  %3954 = vmatprep.subr.bf16.mxu0 %v11406_v12  ;;  %v11479_v10 = vld [vmem:[%s15708_s4 + $0x268] ss:$16 sps:$4 sm:$0xff]   ;;  %v11484_v12 = vld [vmem:[%s15708_s4 + $0x284] ss:$16 sps:$4 sm:$0xff]  }
 0x38a   : > { %4040 = vmatprep.subr.bf16.mxu1 %v11409_v13  ;;  %v11487_v13 = vld [vmem:[%s15708_s4 + $0x28c] ss:$16 sps:$4 sm:$0xff]  }
 0x38c   : > { %3955 = vmatpush1.bf16.msra.mxu0 %v11404_v42  ;;  %v11482_v42 = vld [vmem:[%s15708_s4 + $0x280] ss:$16 sps:$4 sm:$0xff]  }
 0x38d   : > { %4041 = vmatpush1.bf16.msra.mxu1 %v11407_v14  ;;  %3956 = vmatprep.subr.bf16.mxu0 %v11412_v15  ;;  %v11485_v14 = vld [vmem:[%s15708_s4 + $0x288] ss:$16 sps:$4 sm:$0xff]   ;;  %v11490_v15 = vld [vmem:[%s15708_s4 + $0x2a4] ss:$16 sps:$4 sm:$0xff]  }
 0x38e   : > { %4042 = vmatprep.subr.bf16.mxu1 %v11415_v29  ;;  %v11493_v29 = vld [vmem:[%s15708_s4 + $0x2ac] ss:$16 sps:$4 sm:$0xff]  }
 0x390   : > { %3957 = vmatpush1.bf16.msra.mxu0 %v11410_v18  ;;  %v11488_v18 = vld [vmem:[%s15708_s4 + $0x2a0] ss:$16 sps:$4 sm:$0xff]  }
 0x391   : > { %4043 = vmatpush1.bf16.msra.mxu1 %v11413_v19  ;;  %3958 = vmatprep.subr.bf16.mxu0 %v11418_v21  ;;  %v11491_v19 = vld [vmem:[%s15708_s4 + $0x2a8] ss:$16 sps:$4 sm:$0xff]   ;;  %v11496_v21 = vld [vmem:[%s15708_s4 + $0x2c4] ss:$16 sps:$4 sm:$0xff]  }
 0x392   : > { %4044 = vmatprep.subr.bf16.mxu1 %v11421_v23  ;;  %v11499_v23 = vld [vmem:[%s15708_s4 + $0x2cc] ss:$16 sps:$4 sm:$0xff]  }
 0x394   : > { %3959 = vmatpush1.bf16.msra.mxu0 %v11416_v28  ;;  %v11494_v28 = vld [vmem:[%s15708_s4 + $0x2c0] ss:$16 sps:$4 sm:$0xff]  }
 0x395   : > { %4045 = vmatpush1.bf16.msra.mxu1 %v11419_v48  ;;  %3960 = vmatprep.subr.bf16.mxu0 %v11424_v1  ;;  %v11497_v48 = vld [vmem:[%s15708_s4 + $0x2c8] ss:$16 sps:$4 sm:$0xff]   ;;  %v11502_v1 = vld [vmem:[%s15708_s4 + $0x2e4] ss:$16 sps:$4 sm:$0xff]  }
 0x396   : > { %4046 = vmatprep.subr.bf16.mxu1 %v11427_v32  ;;  %v11505_v32 = vld [vmem:[%s15708_s4 + $0x2ec] ss:$16 sps:$4 sm:$0xff]  }
 0x398   : > { %3961 = vmatpush1.bf16.msra.mxu0 %v11422_v33  ;;  %v11500_v33 = vld [vmem:[%s15708_s4 + $0x2e0] ss:$16 sps:$4 sm:$0xff]  }
 0x399   : > { %4047 = vmatpush1.bf16.msra.mxu1 %v11425_v34  ;;  %3962 = vmatprep.subr.bf16.mxu0 %v11430_v35  ;;  %v11503_v34 = vld [vmem:[%s15708_s4 + $0x2e8] ss:$16 sps:$4 sm:$0xff]   ;;  %v11508_v35 = vld [vmem:[%s15708_s4 + $0x304] ss:$16 sps:$4 sm:$0xff]  }
 0x39a   : > { %4048 = vmatprep.subr.bf16.mxu1 %v11433_v38  ;;  %v11511_v38 = vld [vmem:[%s15708_s4 + $0x30c] ss:$16 sps:$4 sm:$0xff]  }
 0x39c   : > { %3963 = vmatpush1.bf16.msra.mxu0 %v11428_v36  ;;  %v11506_v36 = vld [vmem:[%s15708_s4 + $0x300] ss:$16 sps:$4 sm:$0xff]  }
 0x39d   : > { %4049 = vmatpush1.bf16.msra.mxu1 %v11431_v62  ;;  %3964 = vmatprep.subr.bf16.mxu0 %v11436_v39  ;;  %v11509_v62 = vld [vmem:[%s15708_s4 + $0x308] ss:$16 sps:$4 sm:$0xff]   ;;  %v11514_v39 = vld [vmem:[%s15708_s4 + $0x324] ss:$16 sps:$4 sm:$0xff]  }
 0x39e   : > { %4050 = vmatprep.subr.bf16.mxu1 %v11439_v43  ;;  %v11517_v43 = vld [vmem:[%s15708_s4 + $0x32c] ss:$16 sps:$4 sm:$0xff]  }
 0x3a0   : > { %3965 = vmatpush1.bf16.msra.mxu0 %v11434_v45  ;;  %v11512_v45 = vld [vmem:[%s15708_s4 + $0x320] ss:$16 sps:$4 sm:$0xff]  }
 0x3a1   : > { %4051 = vmatpush1.bf16.msra.mxu1 %v11437_v47  ;;  %3966 = vmatprep.subr.bf16.mxu0 %v11442_v50  ;;  %v11515_v47 = vld [vmem:[%s15708_s4 + $0x328] ss:$16 sps:$4 sm:$0xff]   ;;  %v11520_v50 = vld [vmem:[%s15708_s4 + $0x344] ss:$16 sps:$4 sm:$0xff]  }
 0x3a2   : > { %4052 = vmatprep.subr.bf16.mxu1 %v11445_v51  ;;  %v11523_v51 = vld [vmem:[%s15708_s4 + $0x34c] ss:$16 sps:$4 sm:$0xff]  }
 0x3a4   : > { %3967 = vmatpush1.bf16.msra.mxu0 %v11440_v52  ;;  %v11518_v52 = vld [vmem:[%s15708_s4 + $0x340] ss:$16 sps:$4 sm:$0xff]  }
 0x3a5   : > { %4053 = vmatpush1.bf16.msra.mxu1 %v11443_v0  ;;  %3968 = vmatprep.subr.bf16.mxu0 %v11448_v11  ;;  %v11521_v0 = vld [vmem:[%s15708_s4 + $0x348] ss:$16 sps:$4 sm:$0xff]   ;;  %v11526_v11 = vld [vmem:[%s15708_s4 + $0x364] ss:$16 sps:$4 sm:$0xff]  }
 0x3a6   : > { %4054 = vmatprep.subr.bf16.mxu1 %v11451_v20  ;;  %v11529_v20 = vld [vmem:[%s15708_s4 + $0x36c] ss:$16 sps:$4 sm:$0xff]  }
 0x3a8   : > { %3969 = vmatpush1.bf16.msra.mxu0 %v11446_v53  ;;  %v11524_v53 = vld [vmem:[%s15708_s4 + $0x360] ss:$16 sps:$4 sm:$0xff]  }
 0x3a9   : > { %4055 = vmatpush1.bf16.msra.mxu1 %v11449_v25  ;;  %3970 = vmatprep.subr.bf16.mxu0 %v11454_v16  ;;  %v11527_v25 = vld [vmem:[%s15708_s4 + $0x368] ss:$16 sps:$4 sm:$0xff]   ;;  %v11532_v16 = vld [vmem:[%s15708_s4 + $0x384] ss:$16 sps:$4 sm:$0xff]  }
 0x3aa   : > { %4056 = vmatprep.subr.bf16.mxu1 %v11457_v60  ;;  %v11535_v60 = vld [vmem:[%s15708_s4 + $0x38c] ss:$16 sps:$4 sm:$0xff]  }
 0x3ac   : > { %3971 = vmatpush1.bf16.msra.mxu0 %v11452_v46  ;;  %v11530_v46 = vld [vmem:[%s15708_s4 + $0x380] ss:$16 sps:$4 sm:$0xff]  }
 0x3ad   : > { %4057 = vmatpush1.bf16.msra.mxu1 %v11455_v56  ;;  %3983 = vmatprep.subr.bf16.mxu0 %v11460_v57  ;;  %v11533_v56 = vld [vmem:[%s15708_s4 + $0x388] ss:$16 sps:$4 sm:$0xff]   ;;  %v11538_v57 = vld [vmem:[%s15708_s4 + $0x3a4] ss:$16 sps:$4 sm:$0xff]  }
 0x3ae   : > { %4069 = vmatprep.subr.bf16.mxu1 %v11463_v58  ;;  %v11536_v58 = vld [vmem:[%s15708_s4 + $0x3a0] ss:$16 sps:$4 sm:$0xff]  }
 0x3af   : > { %3973 = vmatmul.mubr.bf16.vlgmr.msra.gmra.mrb[32].mxu0 %v13619_v41 }
 0x3b0   : > { %4059 = vmatmul.mubr.bf16.vlgmr.msra.gmra.mrb[36].mxu1 %v13619_v41  ;;  %3984 = vmatpush1.bf16.msra.mxu0 %v11458_v37  ;;  %v11544_v37 = vld [vmem:[%s15708_s4 + $0x3c4] ss:$16 sps:$4 sm:$0xff]  }
 0x3b1   : > { %4015 = vmatprep.mubr.bf16.mxu0 %v13629_v44  ;;  %4070 = vmatpush1.bf16.msra.mxu1 %v11461_v30  ;;  %v11542_v30 = vld [vmem:[%s15708_s4 + $0x3c0] ss:$16 sps:$4 sm:$0xff]  }
 0x3b2   : > { %4101 = vmatprep.mubr.bf16.mxu1 %v13629_v44  ;;  %3985 = vmatprep.subr.bf16.mxu0 %v11466_v61  ;;  %v11545_v61 = vld [vmem:[%s15708_s4 + $0x3c8] ss:$16 sps:$4 sm:$0xff]  }
 0x3b3   : > { %4071 = vmatprep.subr.bf16.mxu1 %v11469_v24  ;;  %v11550_v24 = vld [vmem:[%s15708_s4 + $0x3e4] ss:$16 sps:$4 sm:$0xff]  }
 0x3b4   : > { %3986 = vmatpush1.bf16.msra.mxu0 %v11464_v63  ;;  %v11553_v63 = vld [vmem:[%s15708_s4 + $0x3ec] ss:$16 sps:$4 sm:$0xff]  }
 0x3b5   : > { %4072 = vmatpush1.bf16.msra.mxu1 %v11467_v4  ;;  %3987 = vmatprep.subr.bf16.mxu0 %v11472_v5  ;;  %v11548_v4 = vld [vmem:[%s15708_s4 + $0x3e0] ss:$16 sps:$4 sm:$0xff]   ;;  %v2192_v5 = vld [vmem:[#allocation2 + $0x28] sm:$0xff] }
 0x3b6   : > { %4073 = vmatprep.subr.bf16.mxu1 %v11475_v27  ;;  %v11551_v27 = vld [vmem:[%s15708_s4 + $0x3e8] ss:$16 sps:$4 sm:$0xff]  }
 0x3b8   : > { %3988 = vmatpush1.bf16.msra.mxu0 %v11470_v6  ;;  %v11556_v6 = vld [vmem:[%s15708_s4 + $0x804] ss:$16 sps:$4 sm:$0xff]  }
 0x3b9   : > { %4074 = vmatpush1.bf16.msra.mxu1 %v11473_v7  ;;  %3989 = vmatprep.subr.bf16.mxu0 %v11478_v8  ;;  %v2169_v7 = vld [vmem:[#allocation2 + $0x30] sm:$0x3f]  ;;  %v11559_v8 = vld [vmem:[%s15708_s4 + $0x80c] ss:$16 sps:$4 sm:$0xff]  }
 0x3ba   : > { %4075 = vmatprep.subr.bf16.mxu1 %v11481_v9  ;;  %v2188_v9 = vld [vmem:[#allocation2 + $0x8] sm:$0xfc] }
 0x3bc   : > { %3990 = vmatpush1.bf16.msra.mxu0 %v11476_v40  ;;  %v2196_v40 = vpack.c.bf16 %v2192_v5, %v2188_v9  ;;  %v11623_v5 = vld [vmem:[%s15708_s4 + $0x968] ss:$16 sps:$4 sm:$0xff]   ;;  %v11634_v9 = vld [vmem:[%s15708_s4 + $0x9a4] ss:$16 sps:$4 sm:$0xff]  }
 0x3bd   : > { %4076 = vmatpush1.bf16.msra.mxu1 %v11479_v10  ;;  %3991 = vmatprep.subr.bf16.mxu0 %v11484_v12  ;;  %v2165_v10 = vld [vmem:[#allocation2 + $0x10] sm:$0xff] }
 0x3be   : > { %4077 = vmatprep.subr.bf16.mxu1 %v11487_v13  ;;  %v11554_v12 = vld [vmem:[%s15708_s4 + $0x800] ss:$16 sps:$4 sm:$0xff]   ;;  %v13820_v13 = vpack.c.bf16 %v2169_v7, %v2165_v10 }
 0x3bf   : > { %v11626_v7 = vld [vmem:[%s15708_s4 + $0x980] ss:$16 sps:$4 sm:$0xff]  }
 0x3c0   : > { %3992 = vmatpush1.bf16.msra.mxu0 %v11482_v42  ;;  %v11557_v42 = vld [vmem:[%s15708_s4 + $0x808] ss:$16 sps:$4 sm:$0xff]   ;;  %v11632_v10 = vld [vmem:[%s15708_s4 + $0x9a0] ss:$16 sps:$4 sm:$0xff]  }
 0x3c1   : > { %4078 = vmatpush1.bf16.msra.mxu1 %v11485_v14  ;;  %3993 = vmatprep.subr.bf16.mxu0 %v11490_v15  ;;  %v11562_v14 = vld [vmem:[%s15708_s4 + $0x824] ss:$16 sps:$4 sm:$0xff]   ;;  %v13829_v15 = vrot.slane %v2196_v40, 1  ;;  %v11637_v40 = vld [vmem:[%s15708_s4 + $0x9ac] ss:$16 sps:$4 sm:$0xff]  }
 0x3c2   : > { %4079 = vmatprep.subr.bf16.mxu1 %v11493_v29  ;;  %v11565_v29 = vld [vmem:[%s15708_s4 + $0x82c] ss:$16 sps:$4 sm:$0xff]  }
 0x3c4   : > { %3994 = vmatpush1.bf16.msra.mxu0 %v11488_v18  ;;  %v11560_v18 = vld [vmem:[%s15708_s4 + $0x820] ss:$16 sps:$4 sm:$0xff]  }
 0x3c5   : > { %4080 = vmatpush1.bf16.msra.mxu1 %v11491_v19  ;;  %3995 = vmatprep.subr.bf16.mxu0 %v11496_v21  ;;  %v11563_v19 = vld [vmem:[%s15708_s4 + $0x828] ss:$16 sps:$4 sm:$0xff]   ;;  %v11568_v21 = vld [vmem:[%s15708_s4 + $0x844] ss:$16 sps:$4 sm:$0xff]  }
 0x3c6   : > { %4081 = vmatprep.subr.bf16.mxu1 %v11499_v23  ;;  %v11571_v23 = vld [vmem:[%s15708_s4 + $0x84c] ss:$16 sps:$4 sm:$0xff]  }
 0x3c8   : > { %3996 = vmatpush1.bf16.msra.mxu0 %v11494_v28  ;;  %v11566_v28 = vld [vmem:[%s15708_s4 + $0x840] ss:$16 sps:$4 sm:$0xff]  }
 0x3c9   : > { %4082 = vmatpush1.bf16.msra.mxu1 %v11497_v48  ;;  %3997 = vmatprep.subr.bf16.mxu0 %v11502_v1  ;;  %v11569_v48 = vld [vmem:[%s15708_s4 + $0x848] ss:$16 sps:$4 sm:$0xff]   ;;  %v11574_v1 = vld [vmem:[%s15708_s4 + $0x864] ss:$16 sps:$4 sm:$0xff]  }
 0x3ca   : > { %4083 = vmatprep.subr.bf16.mxu1 %v11505_v32  ;;  %v11577_v32 = vld [vmem:[%s15708_s4 + $0x86c] ss:$16 sps:$4 sm:$0xff]  }
 0x3cc   : > { %3998 = vmatpush1.bf16.msra.mxu0 %v11500_v33  ;;  %v11572_v33 = vld [vmem:[%s15708_s4 + $0x860] ss:$16 sps:$4 sm:$0xff]  }
 0x3cd   : > { %4084 = vmatpush1.bf16.msra.mxu1 %v11503_v34  ;;  %3999 = vmatprep.subr.bf16.mxu0 %v11508_v35  ;;  %v11575_v34 = vld [vmem:[%s15708_s4 + $0x868] ss:$16 sps:$4 sm:$0xff]   ;;  %v11580_v35 = vld [vmem:[%s15708_s4 + $0x884] ss:$16 sps:$4 sm:$0xff]  }
 0x3ce   : > { %4085 = vmatprep.subr.bf16.mxu1 %v11511_v38  ;;  %v11583_v38 = vld [vmem:[%s15708_s4 + $0x88c] ss:$16 sps:$4 sm:$0xff]  }
 0x3d0   : > { %4000 = vmatpush1.bf16.msra.mxu0 %v11506_v36  ;;  %v11578_v36 = vld [vmem:[%s15708_s4 + $0x880] ss:$16 sps:$4 sm:$0xff]  }
 0x3d1   : > { %4086 = vmatpush1.bf16.msra.mxu1 %v11509_v62  ;;  %4001 = vmatprep.subr.bf16.mxu0 %v11514_v39  ;;  %v11581_v62 = vld [vmem:[%s15708_s4 + $0x888] ss:$16 sps:$4 sm:$0xff]   ;;  %v11586_v39 = vld [vmem:[%s15708_s4 + $0x8a4] ss:$16 sps:$4 sm:$0xff]  }
 0x3d2   : > { %4087 = vmatprep.subr.bf16.mxu1 %v11517_v43  ;;  %v11589_v43 = vld [vmem:[%s15708_s4 + $0x8ac] ss:$16 sps:$4 sm:$0xff]  }
 0x3d4   : > { %4002 = vmatpush1.bf16.msra.mxu0 %v11512_v45  ;;  %v11584_v45 = vld [vmem:[%s15708_s4 + $0x8a0] ss:$16 sps:$4 sm:$0xff]  }
 0x3d5   : > { %4088 = vmatpush1.bf16.msra.mxu1 %v11515_v47  ;;  %4003 = vmatprep.subr.bf16.mxu0 %v11520_v50  ;;  %v11587_v47 = vld [vmem:[%s15708_s4 + $0x8a8] ss:$16 sps:$4 sm:$0xff]   ;;  %v11592_v50 = vld [vmem:[%s15708_s4 + $0x8c4] ss:$16 sps:$4 sm:$0xff]  }
 0x3d6   : > { %4089 = vmatprep.subr.bf16.mxu1 %v11523_v51  ;;  %v11595_v51 = vld [vmem:[%s15708_s4 + $0x8cc] ss:$16 sps:$4 sm:$0xff]  }
 0x3d8   : > { %4004 = vmatpush1.bf16.msra.mxu0 %v11518_v52  ;;  %v11590_v52 = vld [vmem:[%s15708_s4 + $0x8c0] ss:$16 sps:$4 sm:$0xff]  }
 0x3d9   : > { %4090 = vmatpush1.bf16.msra.mxu1 %v11521_v0  ;;  %4005 = vmatprep.subr.bf16.mxu0 %v11526_v11  ;;  %v11593_v0 = vld [vmem:[%s15708_s4 + $0x8c8] ss:$16 sps:$4 sm:$0xff]   ;;  %v11598_v11 = vld [vmem:[%s15708_s4 + $0x8e4] ss:$16 sps:$4 sm:$0xff]  }
 0x3da   : > { %4091 = vmatprep.subr.bf16.mxu1 %v11529_v20  ;;  %v11601_v20 = vld [vmem:[%s15708_s4 + $0x8ec] ss:$16 sps:$4 sm:$0xff]  }
 0x3dc   : > { %4006 = vmatpush1.bf16.msra.mxu0 %v11524_v53  ;;  %v11596_v53 = vld [vmem:[%s15708_s4 + $0x8e0] ss:$16 sps:$4 sm:$0xff]  }
 0x3dd   : > { %4092 = vmatpush1.bf16.msra.mxu1 %v11527_v25  ;;  %4007 = vmatprep.subr.bf16.mxu0 %v11532_v16  ;;  %v11599_v25 = vld [vmem:[%s15708_s4 + $0x8e8] ss:$16 sps:$4 sm:$0xff]   ;;  %v11604_v16 = vld [vmem:[%s15708_s4 + $0x904] ss:$16 sps:$4 sm:$0xff]  }
 0x3de   : > { %4093 = vmatprep.subr.bf16.mxu1 %v11535_v60  ;;  %v11607_v60 = vld [vmem:[%s15708_s4 + $0x90c] ss:$16 sps:$4 sm:$0xff]  }
 0x3e0   : > { %4008 = vmatpush1.bf16.msra.mxu0 %v11530_v46  ;;  %v11602_v46 = vld [vmem:[%s15708_s4 + $0x900] ss:$16 sps:$4 sm:$0xff]  }
 0x3e1   : > { %4094 = vmatpush1.bf16.msra.mxu1 %v11533_v56  ;;  %4009 = vmatprep.subr.bf16.mxu0 %v11538_v57  ;;  %v11605_v56 = vld [vmem:[%s15708_s4 + $0x908] ss:$16 sps:$4 sm:$0xff]   ;;  %v11610_v57 = vld [vmem:[%s15708_s4 + $0x924] ss:$16 sps:$4 sm:$0xff]  }
 0x3e2   : > { %4095 = vmatprep.subr.bf16.mxu1 %v11541_v22  ;;  %v11613_v22 = vld [vmem:[%s15708_s4 + $0x92c] ss:$16 sps:$4 sm:$0xff]  }
 0x3e4   : > { %4010 = vmatpush1.bf16.msra.mxu0 %v11536_v58  ;;  %v11608_v58 = vld [vmem:[%s15708_s4 + $0x920] ss:$16 sps:$4 sm:$0xff]  }
 0x3e5   : > { %4096 = vmatpush1.bf16.msra.mxu1 %v11539_v59  ;;  %4011 = vmatprep.subr.bf16.mxu0 %v11544_v37  ;;  %v11611_v59 = vld [vmem:[%s15708_s4 + $0x928] ss:$16 sps:$4 sm:$0xff]   ;;  %v11616_v37 = vld [vmem:[%s15708_s4 + $0x944] ss:$16 sps:$4 sm:$0xff]  }
 0x3e6   : > { %4097 = vmatprep.subr.bf16.mxu1 %v11547_v17  ;;  %v11619_v17 = vld [vmem:[%s15708_s4 + $0x94c] ss:$16 sps:$4 sm:$0xff]  }
 0x3e8   : > { %4012 = vmatpush1.bf16.msra.mxu0 %v11542_v30  ;;  %v11614_v30 = vld [vmem:[%s15708_s4 + $0x940] ss:$16 sps:$4 sm:$0xff]  }
 0x3e9   : > { %4098 = vmatpush1.bf16.msra.mxu1 %v11545_v61  ;;  %4013 = vmatprep.subr.bf16.mxu0 %v11550_v24  ;;  %v11617_v61 = vld [vmem:[%s15708_s4 + $0x948] ss:$16 sps:$4 sm:$0xff]   ;;  %v11622_v24 = vld [vmem:[%s15708_s4 + $0x964] ss:$16 sps:$4 sm:$0xff]  }
 0x3ea   : > { %4099 = vmatprep.subr.bf16.mxu1 %v11553_v63  ;;  %v11625_v63 = vld [vmem:[%s15708_s4 + $0x96c] ss:$16 sps:$4 sm:$0xff]  }
 0x3ec   : > { %4014 = vmatpush1.bf16.msra.mxu0 %v11548_v4  ;;  %v11620_v4 = vld [vmem:[%s15708_s4 + $0x960] ss:$16 sps:$4 sm:$0xff]  }
 0x3ed   : > { %4100 = vmatpush1.bf16.msra.mxu1 %v11551_v27  ;;  %4893 = vmatprep.subr.bf16.mxu0 %v11556_v6  ;;  %v11628_v27 = vld [vmem:[%s15708_s4 + $0x984] ss:$16 sps:$4 sm:$0xff]   ;;  %v11631_v6 = vld [vmem:[%s15708_s4 + $0x98c] ss:$16 sps:$4 sm:$0xff]  }
 0x3ee   : > { %4979 = vmatprep.subr.bf16.mxu1 %v11559_v8  ;;  %v11629_v8 = vld [vmem:[%s15708_s4 + $0x988] ss:$16 sps:$4 sm:$0xff]  }
 0x3ef   : > { %4016 = vmatmul.mubr.bf16.vlgmr.msra.gmra.mrb[32].mxu0 %v13820_v13 }
 0x3f0   : > { %4102 = vmatmul.mubr.bf16.vlgmr.msra.gmra.mrb[36].mxu1 %v13820_v13  ;;  %4894 = vmatpush1.bf16.msra.mxu0 %v11554_v12  ;;  %v11635_v12 = vld [vmem:[%s15708_s4 + $0x9a8] ss:$16 sps:$4 sm:$0xff]  }
 0x3f1   : > { %4925 = vmatprep.mubr.bf16.mxu0 %v13829_v15  ;;  %4980 = vmatpush1.bf16.msra.mxu1 %v11557_v42  ;;  %v11640_v42 = vld [vmem:[%s15708_s4 + $0x9c4] ss:$16 sps:$4 sm:$0xff]  }
 0x3f2   : > { %5011 = vmatprep.mubr.bf16.mxu1 %v13829_v15  ;;  %4895 = vmatprep.subr.bf16.mxu0 %v11562_v14  ;;  %v11643_v14 = vld [vmem:[%s15708_s4 + $0x9cc] ss:$16 sps:$4 sm:$0xff]  }
 0x3f3   : > { %4981 = vmatprep.subr.bf16.mxu1 %v11565_v29  ;;  %v11638_v29 = vld [vmem:[%s15708_s4 + $0x9c0] ss:$16 sps:$4 sm:$0xff]  }
 0x3f4   : > { %4896 = vmatpush1.bf16.msra.mxu0 %v11560_v18  ;;  %v11641_v18 = vld [vmem:[%s15708_s4 + $0x9c8] ss:$16 sps:$4 sm:$0xff]  }
 0x3f5   : > { %4982 = vmatpush1.bf16.msra.mxu1 %v11563_v19  ;;  %4897 = vmatprep.subr.bf16.mxu0 %v11568_v21  ;;  %v11646_v19 = vld [vmem:[%s15708_s4 + $0x9e4] ss:$16 sps:$4 sm:$0xff]   ;;  %v11649_v21 = vld [vmem:[%s15708_s4 + $0x9ec] ss:$16 sps:$4 sm:$0xff]  }
 0x3f6   : > { %4983 = vmatprep.subr.bf16.mxu1 %v11571_v23  ;;  %v2191_v23 = vld [vmem:[#allocation2 + $0x20] sm:$0xff] }
 0x3f8   : > { %4898 = vmatpush1.bf16.msra.mxu0 %v11566_v28  ;;  %v11644_v28 = vld [vmem:[%s15708_s4 + $0x9e0] ss:$16 sps:$4 sm:$0xff]  }
 0x3f9   : > { %4984 = vmatpush1.bf16.msra.mxu1 %v11569_v48  ;;  %4899 = vmatprep.subr.bf16.mxu0 %v11574_v1  ;;  %v2187_v48 = vld [vmem:[#allocation2] sm:$0xfc]  ;;  %v2194_v1 = vld [vmem:[#allocation2 + $0x38] sm:$0xff] }
 0x3fa   : > { %4985 = vmatprep.subr.bf16.mxu1 %v11577_v32  ;;  %v11647_v32 = vld [vmem:[%s15708_s4 + $0x9e8] ss:$16 sps:$4 sm:$0xff]  }
 0x3fc   : > { %4900 = vmatpush1.bf16.msra.mxu0 %v11572_v33  ;;  %v2195_v33 = vpack.c.bf16 %v2191_v23, %v2187_v48  ;;  %v11713_v23 = vld [vmem:[%s15708_s4 + $0xb48] ss:$16 sps:$4 sm:$0xff]   ;;  %v11721_v48 = vld [vmem:[%s15708_s4 + $0xb6c] ss:$16 sps:$4 sm:$0xff]  }
 0x3fd   : > { %4986 = vmatpush1.bf16.msra.mxu1 %v11575_v34  ;;  %4901 = vmatprep.subr.bf16.mxu0 %v11580_v35  ;;  %v11652_v34 = vld [vmem:[%s15708_s4 + $0xa04] ss:$16 sps:$4 sm:$0xff]   ;;  %v11655_v35 = vld [vmem:[%s15708_s4 + $0xa0c] ss:$16 sps:$4 sm:$0xff]  }
 0x3fe   : > { %4987 = vmatprep.subr.bf16.mxu1 %v11583_v38  ;;  %v2190_v38 = vld [vmem:[#allocation2 + $0x18] sm:$0xfc] }
 0x400   : > { %4902 = vmatpush1.bf16.msra.mxu0 %v11578_v36  ;;  %v2198_v36 = vpack.c.bf16 %v2194_v1, %v2190_v38  ;;  %v11716_v1 = vld [vmem:[%s15708_s4 + $0xb60] ss:$16 sps:$4 sm:$0xff]   ;;  %v11725_v38 = vld [vmem:[%s15708_s4 + $0xb88] ss:$16 sps:$4 sm:$0xff]  }
 0x401   : > { %4988 = vmatpush1.bf16.msra.mxu1 %v11581_v62  ;;  %4903 = vmatprep.subr.bf16.mxu0 %v11586_v39  ;;  %v11650_v62 = vld [vmem:[%s15708_s4 + $0xa00] ss:$16 sps:$4 sm:$0xff]   ;;  %v14020_v39 = vrot.slane %v2195_v33, 1  ;;  %v11724_v33 = vld [vmem:[%s15708_s4 + $0xb84] ss:$16 sps:$4 sm:$0xff]  }
 0x402   : > { %4989 = vmatprep.subr.bf16.mxu1 %v11589_v43  ;;  %v11653_v43 = vld [vmem:[%s15708_s4 + $0xa08] ss:$16 sps:$4 sm:$0xff]  }
 0x404   : > { %4904 = vmatpush1.bf16.msra.mxu0 %v11584_v45  ;;  %v11658_v45 = vld [vmem:[%s15708_s4 + $0xa24] ss:$16 sps:$4 sm:$0xff]  }
 0x405   : > { %4990 = vmatpush1.bf16.msra.mxu1 %v11587_v47  ;;  %4905 = vmatprep.subr.bf16.mxu0 %v11592_v50  ;;  %v14029_v47 = vrot.slane %v2198_v36, 1  ;;  %v11661_v50 = vld [vmem:[%s15708_s4 + $0xa2c] ss:$16 sps:$4 sm:$0xff]   ;;  %v11730_v36 = vld [vmem:[%s15708_s4 + $0xba4] ss:$16 sps:$4 sm:$0xff]  }
 0x406   : > { %4991 = vmatprep.subr.bf16.mxu1 %v11595_v51  ;;  %v11656_v51 = vld [vmem:[%s15708_s4 + $0xa20] ss:$16 sps:$4 sm:$0xff]  }
 0x408   : > { %4906 = vmatpush1.bf16.msra.mxu0 %v11590_v52  ;;  %v11659_v52 = vld [vmem:[%s15708_s4 + $0xa28] ss:$16 sps:$4 sm:$0xff]  }
 0x409   : > { %4992 = vmatpush1.bf16.msra.mxu1 %v11593_v0  ;;  %4907 = vmatprep.subr.bf16.mxu0 %v11598_v11  ;;  %v11664_v0 = vld [vmem:[%s15708_s4 + $0xa44] ss:$16 sps:$4 sm:$0xff]   ;;  %v11667_v11 = vld [vmem:[%s15708_s4 + $0xa4c] ss:$16 sps:$4 sm:$0xff]  }
 0x40a   : > { %4993 = vmatprep.subr.bf16.mxu1 %v11601_v20  ;;  %v11662_v20 = vld [vmem:[%s15708_s4 + $0xa40] ss:$16 sps:$4 sm:$0xff]  }
 0x40c   : > { %4908 = vmatpush1.bf16.msra.mxu0 %v11596_v53  ;;  %v11665_v53 = vld [vmem:[%s15708_s4 + $0xa48] ss:$16 sps:$4 sm:$0xff]  }
 0x40d   : > { %4994 = vmatpush1.bf16.msra.mxu1 %v11599_v25  ;;  %4909 = vmatprep.subr.bf16.mxu0 %v11604_v16  ;;  %v11670_v25 = vld [vmem:[%s15708_s4 + $0xa64] ss:$16 sps:$4 sm:$0xff]   ;;  %v11673_v16 = vld [vmem:[%s15708_s4 + $0xa6c] ss:$16 sps:$4 sm:$0xff]  }
 0x40e   : > { %4995 = vmatprep.subr.bf16.mxu1 %v11607_v60  ;;  %v11668_v60 = vld [vmem:[%s15708_s4 + $0xa60] ss:$16 sps:$4 sm:$0xff]  }
 0x410   : > { %4910 = vmatpush1.bf16.msra.mxu0 %v11602_v46  ;;  %v11671_v46 = vld [vmem:[%s15708_s4 + $0xa68] ss:$16 sps:$4 sm:$0xff]  }
 0x411   : > { %4996 = vmatpush1.bf16.msra.mxu1 %v11605_v56  ;;  %4911 = vmatprep.subr.bf16.mxu0 %v11610_v57  ;;  %v11676_v56 = vld [vmem:[%s15708_s4 + $0xa84] ss:$16 sps:$4 sm:$0xff]   ;;  %v11679_v57 = vld [vmem:[%s15708_s4 + $0xa8c] ss:$16 sps:$4 sm:$0xff]  }
 0x412   : > { %4997 = vmatprep.subr.bf16.mxu1 %v11613_v22  ;;  %v11674_v22 = vld [vmem:[%s15708_s4 + $0xa80] ss:$16 sps:$4 sm:$0xff]  }
 0x414   : > { %4912 = vmatpush1.bf16.msra.mxu0 %v11608_v58  ;;  %v11677_v58 = vld [vmem:[%s15708_s4 + $0xa88] ss:$16 sps:$4 sm:$0xff]  }
 0x415   : > { %4998 = vmatpush1.bf16.msra.mxu1 %v11611_v59  ;;  %4913 = vmatprep.subr.bf16.mxu0 %v11616_v37  ;;  %v11682_v59 = vld [vmem:[%s15708_s4 + $0xaa4] ss:$16 sps:$4 sm:$0xff]   ;;  %v11685_v37 = vld [vmem:[%s15708_s4 + $0xaac] ss:$16 sps:$4 sm:$0xff]  }
 0x416   : > { %4999 = vmatprep.subr.bf16.mxu1 %v11619_v17  ;;  %v11680_v17 = vld [vmem:[%s15708_s4 + $0xaa0] ss:$16 sps:$4 sm:$0xff]  }
 0x418   : > { %4914 = vmatpush1.bf16.msra.mxu0 %v11614_v30  ;;  %v11683_v30 = vld [vmem:[%s15708_s4 + $0xaa8] ss:$16 sps:$4 sm:$0xff]  }
 0x419   : > { %5000 = vmatpush1.bf16.msra.mxu1 %v11617_v61  ;;  %4915 = vmatprep.subr.bf16.mxu0 %v11622_v24  ;;  %v11688_v61 = vld [vmem:[%s15708_s4 + $0xac4] ss:$16 sps:$4 sm:$0xff]   ;;  %v11691_v24 = vld [vmem:[%s15708_s4 + $0xacc] ss:$16 sps:$4 sm:$0xff]  }
 0x41a   : > { %5001 = vmatprep.subr.bf16.mxu1 %v11625_v63  ;;  %v11686_v63 = vld [vmem:[%s15708_s4 + $0xac0] ss:$16 sps:$4 sm:$0xff]  }
 0x41c   : > { %4916 = vmatpush1.bf16.msra.mxu0 %v11620_v4  ;;  %v11689_v4 = vld [vmem:[%s15708_s4 + $0xac8] ss:$16 sps:$4 sm:$0xff]  }
 0x41d   : > { %5002 = vmatpush1.bf16.msra.mxu1 %v11623_v5  ;;  %4917 = vmatprep.subr.bf16.mxu0 %v11628_v27  ;;  %v11694_v5 = vld [vmem:[%s15708_s4 + $0xae4] ss:$16 sps:$4 sm:$0xff]   ;;  %v11697_v27 = vld [vmem:[%s15708_s4 + $0xaec] ss:$16 sps:$4 sm:$0xff]  }
 0x41e   : > { %5003 = vmatprep.subr.bf16.mxu1 %v11631_v6  ;;  %v11692_v6 = vld [vmem:[%s15708_s4 + $0xae0] ss:$16 sps:$4 sm:$0xff]  }
 0x420   : > { %4918 = vmatpush1.bf16.msra.mxu0 %v11626_v7  ;;  %v11695_v7 = vld [vmem:[%s15708_s4 + $0xae8] ss:$16 sps:$4 sm:$0xff]  }
 0x421   : > { %5004 = vmatpush1.bf16.msra.mxu1 %v11629_v8  ;;  %4919 = vmatprep.subr.bf16.mxu0 %v11634_v9  ;;  %v11700_v8 = vld [vmem:[%s15708_s4 + $0xb04] ss:$16 sps:$4 sm:$0xff]   ;;  %v11703_v9 = vld [vmem:[%s15708_s4 + $0xb0c] ss:$16 sps:$4 sm:$0xff]  }
 0x422   : > { %5005 = vmatprep.subr.bf16.mxu1 %v11637_v40  ;;  %v11698_v40 = vld [vmem:[%s15708_s4 + $0xb00] ss:$16 sps:$4 sm:$0xff]  }
 0x424   : > { %4920 = vmatpush1.bf16.msra.mxu0 %v11632_v10  ;;  %v11701_v10 = vld [vmem:[%s15708_s4 + $0xb08] ss:$16 sps:$4 sm:$0xff]  }
 0x425   : > { %5006 = vmatpush1.bf16.msra.mxu1 %v11635_v12  ;;  %4921 = vmatprep.subr.bf16.mxu0 %v11640_v42  ;;  %v11706_v12 = vld [vmem:[%s15708_s4 + $0xb24] ss:$16 sps:$4 sm:$0xff]   ;;  %v11709_v42 = vld [vmem:[%s15708_s4 + $0xb2c] ss:$16 sps:$4 sm:$0xff]  }
 0x426   : > { %5007 = vmatprep.subr.bf16.mxu1 %v11643_v14  ;;  %v11704_v14 = vld [vmem:[%s15708_s4 + $0xb20] ss:$16 sps:$4 sm:$0xff]  }
 0x428   : > { %4922 = vmatpush1.bf16.msra.mxu0 %v11638_v29  ;;  %v11707_v29 = vld [vmem:[%s15708_s4 + $0xb28] ss:$16 sps:$4 sm:$0xff]  }
 0x429   : > { %5008 = vmatpush1.bf16.msra.mxu1 %v11641_v18  ;;  %4923 = vmatprep.subr.bf16.mxu0 %v11646_v19  ;;  %v11712_v18 = vld [vmem:[%s15708_s4 + $0xb44] ss:$16 sps:$4 sm:$0xff]   ;;  %v11715_v19 = vld [vmem:[%s15708_s4 + $0xb4c] ss:$16 sps:$4 sm:$0xff]  }
 0x42a   : > { %5009 = vmatprep.subr.bf16.mxu1 %v11649_v21  ;;  %v11710_v21 = vld [vmem:[%s15708_s4 + $0xb40] ss:$16 sps:$4 sm:$0xff]  }
 0x42c   : > { %4924 = vmatpush1.bf16.msra.mxu0 %v11644_v28  ;;  %v11718_v28 = vld [vmem:[%s15708_s4 + $0xb64] ss:$16 sps:$4 sm:$0xff]  }
 0x42d   : > { %5010 = vmatpush1.bf16.msra.mxu1 %v11647_v32  ;;  %4936 = vmatprep.subr.bf16.mxu0 %v11652_v34  ;;  %v11719_v32 = vld [vmem:[%s15708_s4 + $0xb68] ss:$16 sps:$4 sm:$0xff]   ;;  %v11727_v34 = vld [vmem:[%s15708_s4 + $0xb8c] ss:$16 sps:$4 sm:$0xff]  }
 0x42e   : > { %5022 = vmatprep.subr.bf16.mxu1 %v11655_v35  ;;  %v11722_v35 = vld [vmem:[%s15708_s4 + $0xb80] ss:$16 sps:$4 sm:$0xff]  }
 0x42f   : > { %4926 = vmatmul.mubr.bf16.vlgmr.msra.gmra.mrb[32].mxu0 %v14020_v39 }
 0x430   : > { %5012 = vmatmul.mubr.bf16.vlgmr.msra.gmra.mrb[36].mxu1 %v14020_v39  ;;  %4937 = vmatpush1.bf16.msra.mxu0 %v11650_v62  ;;  %v11733_v62 = vld [vmem:[%s15708_s4 + $0xbac] ss:$16 sps:$4 sm:$0xff]  }
 0x431   : > { %4968 = vmatprep.mubr.bf16.mxu0 %v14029_v47  ;;  %5023 = vmatpush1.bf16.msra.mxu1 %v11653_v43  ;;  %v11728_v43 = vld [vmem:[%s15708_s4 + $0xba0] ss:$16 sps:$4 sm:$0xff]  }
 0x432   : > { %5054 = vmatprep.mubr.bf16.mxu1 %v14029_v47  ;;  %4938 = vmatprep.subr.bf16.mxu0 %v11658_v45  ;;  %v11731_v45 = vld [vmem:[%s15708_s4 + $0xba8] ss:$16 sps:$4 sm:$0xff]  }
 0x433   : > { %5024 = vmatprep.subr.bf16.mxu1 %v11661_v50  ;;  %v11736_v50 = vld [vmem:[%s15708_s4 + $0xbc4] ss:$16 sps:$4 sm:$0xff]  }
 0x434   : > { %4939 = vmatpush1.bf16.msra.mxu0 %v11656_v51  ;;  %v11739_v51 = vld [vmem:[%s15708_s4 + $0xbcc] ss:$16 sps:$4 sm:$0xff]  }
 0x435   : > { %5025 = vmatpush1.bf16.msra.mxu1 %v11659_v52  ;;  %4940 = vmatprep.subr.bf16.mxu0 %v11664_v0  ;;  %v11734_v52 = vld [vmem:[%s15708_s4 + $0xbc0] ss:$16 sps:$4 sm:$0xff]   ;;  %v11737_v0 = vld [vmem:[%s15708_s4 + $0xbc8] ss:$16 sps:$4 sm:$0xff]  }
 0x436   : > { %5026 = vmatprep.subr.bf16.mxu1 %v11667_v11  ;;  %v11742_v11 = vld [vmem:[%s15708_s4 + $0xbe4] ss:$16 sps:$4 sm:$0xff]  }
 0x438   : > { %4941 = vmatpush1.bf16.msra.mxu0 %v11662_v20  ;;  %v11745_v20 = vld [vmem:[%s15708_s4 + $0xbec] ss:$16 sps:$4 sm:$0xff]  }
 0x439   : > { %5027 = vmatpush1.bf16.msra.mxu1 %v11665_v53  ;;  %4942 = vmatprep.subr.bf16.mxu0 %v11670_v25  ;;  %v2193_v53 = vld [vmem:[#allocation2 + $0x30] sm:$0xff] }
 0x43a   : > { %5028 = vmatprep.subr.bf16.mxu1 %v11673_v16  ;;  %v11740_v25 = vld [vmem:[%s15708_s4 + $0xbe0] ss:$16 sps:$4 sm:$0xff]  }
 0x43b   : > { %v2189_v16 = vld [vmem:[#allocation2 + $0x10] sm:$0xfc] }
 0x43c   : > { %4943 = vmatpush1.bf16.msra.mxu0 %v11668_v60  ;;  %v11743_v60 = vld [vmem:[%s15708_s4 + $0xbe8] ss:$16 sps:$4 sm:$0xff]  }
 0x43d   : > { %5029 = vmatpush1.bf16.msra.mxu1 %v11671_v46  ;;  %4944 = vmatprep.subr.bf16.mxu0 %v11676_v56  ;;  %v2197_v46 = vpack.c.bf16 %v2193_v53, %v2189_v16  ;;  %v11791_v53 = vld [vmem:[%s15708_s4 + $0x10e8] ss:$16 sps:$4 sm:$0xff]   ;;  %v11799_v16 = vld [vmem:[%s15708_s4 + $0x110c] ss:$16 sps:$4 sm:$0xff]  }
 0x43e   : > { %5030 = vmatprep.subr.bf16.mxu1 %v11679_v57 }
 0x43f   : > { %v14211_v56 = vrot.slane %v2197_v46, 1  ;;  %v11797_v46 = vld [vmem:[%s15708_s4 + $0x1108] ss:$16 sps:$4 sm:$0xff]  }
 0x440   : > { %4945 = vmatpush1.bf16.msra.mxu0 %v11674_v22 }
 0x441   : > { %5031 = vmatpush1.bf16.msra.mxu1 %v11677_v58  ;;  %4946 = vmatprep.subr.bf16.mxu0 %v11682_v59 }
 0x442   : > { %5032 = vmatprep.subr.bf16.mxu1 %v11685_v37 }
 0x444   : > { %4947 = vmatpush1.bf16.msra.mxu0 %v11680_v17 }
 0x445   : > { %5033 = vmatpush1.bf16.msra.mxu1 %v11683_v30  ;;  %4948 = vmatprep.subr.bf16.mxu0 %v11688_v61 }
 0x446   : > { %5034 = vmatprep.subr.bf16.mxu1 %v11691_v24  ;;  %v12330_v24 = vld [vmem:[%s15711_s7 + $0x8] sm:$0xff]  }
 0x448   : > { %4949 = vmatpush1.bf16.msra.mxu0 %v11686_v63 }
 0x449   : > { %5035 = vmatpush1.bf16.msra.mxu1 %v11689_v4  ;;  %4950 = vmatprep.subr.bf16.mxu0 %v11694_v5 }
 0x44a   : > { %5036 = vmatprep.subr.bf16.mxu1 %v11697_v27 }
 0x44c   : > { %4951 = vmatpush1.bf16.msra.mxu0 %v11692_v6  ;;  %v5073_v6 = vld [vmem:[%s15709_s5] sm:$0x7f] }
 0x44d   : > { %5037 = vmatpush1.bf16.msra.mxu1 %v11695_v7  ;;  %4952 = vmatprep.subr.bf16.mxu0 %v11700_v8  ;;  %v11748_v7 = vld [vmem:[%s15708_s4 + $0x1004] ss:$16 sps:$4 sm:$0xff]   ;;  %v11751_v8 = vld [vmem:[%s15708_s4 + $0x100c] ss:$16 sps:$4 sm:$0xff]  }
 0x44e   : > { %5038 = vmatprep.subr.bf16.mxu1 %v11703_v9  ;;  %v9860_v9 = vld [vmem:[%s15709_s5 + $0x8] sm:$0x7f] }
 0x450   : > { %4953 = vmatpush1.bf16.msra.mxu0 %v11698_v40  ;;  %v11746_v40 = vld [vmem:[%s15708_s4 + $0x1000] ss:$16 sps:$4 sm:$0xff]  }
 0x451   : > { %5039 = vmatpush1.bf16.msra.mxu1 %v11701_v10  ;;  %4954 = vmatprep.subr.bf16.mxu0 %v11706_v12  ;;  %v11749_v10 = vld [vmem:[%s15708_s4 + $0x1008] ss:$16 sps:$4 sm:$0xff]   ;;  %v11754_v12 = vld [vmem:[%s15708_s4 + $0x1024] ss:$16 sps:$4 sm:$0xff]  }
 0x452   : > { %5040 = vmatprep.subr.bf16.mxu1 %v11709_v42  ;;  %v11757_v42 = vld [vmem:[%s15708_s4 + $0x102c] ss:$16 sps:$4 sm:$0xff]  }
 0x454   : > { %4955 = vmatpush1.bf16.msra.mxu0 %v11704_v14  ;;  %v11752_v14 = vld [vmem:[%s15708_s4 + $0x1020] ss:$16 sps:$4 sm:$0xff]  }
 0x455   : > { %5041 = vmatpush1.bf16.msra.mxu1 %v11707_v29  ;;  %4956 = vmatprep.subr.bf16.mxu0 %v11712_v18  ;;  %v11755_v29 = vld [vmem:[%s15708_s4 + $0x1028] ss:$16 sps:$4 sm:$0xff]   ;;  %v11760_v18 = vld [vmem:[%s15708_s4 + $0x1044] ss:$16 sps:$4 sm:$0xff]  }
 0x456   : > { %5042 = vmatprep.subr.bf16.mxu1 %v11715_v19  ;;  %v11763_v19 = vld [vmem:[%s15708_s4 + $0x104c] ss:$16 sps:$4 sm:$0xff]  }
 0x458   : > { %4957 = vmatpush1.bf16.msra.mxu0 %v11710_v21  ;;  %v11758_v21 = vld [vmem:[%s15708_s4 + $0x1040] ss:$16 sps:$4 sm:$0xff]  }
 0x459   : > { %5043 = vmatpush1.bf16.msra.mxu1 %v11713_v23  ;;  %4958 = vmatprep.subr.bf16.mxu0 %v11718_v28  ;;  %v11761_v23 = vld [vmem:[%s15708_s4 + $0x1048] ss:$16 sps:$4 sm:$0xff]   ;;  %v11769_v28 = vld [vmem:[%s15708_s4 + $0x106c] ss:$16 sps:$4 sm:$0xff]  }
 0x45a   : > { %5044 = vmatprep.subr.bf16.mxu1 %v11721_v48  ;;  %v11764_v48 = vld [vmem:[%s15708_s4 + $0x1060] ss:$16 sps:$4 sm:$0xff]  }
 0x45c   : > { %4959 = vmatpush1.bf16.msra.mxu0 %v11716_v1  ;;  %v11767_v1 = vld [vmem:[%s15708_s4 + $0x1068] ss:$16 sps:$4 sm:$0xff]  }
 0x45d   : > { %5045 = vmatpush1.bf16.msra.mxu1 %v11719_v32  ;;  %4960 = vmatprep.subr.bf16.mxu0 %v11724_v33  ;;  %v11772_v32 = vld [vmem:[%s15708_s4 + $0x1084] ss:$16 sps:$4 sm:$0xff]   ;;  %v11775_v33 = vld [vmem:[%s15708_s4 + $0x108c] ss:$16 sps:$4 sm:$0xff]  }
 0x45e   : > { %5046 = vmatprep.subr.bf16.mxu1 %v11727_v34  ;;  %v11770_v34 = vld [vmem:[%s15708_s4 + $0x1080] ss:$16 sps:$4 sm:$0xff]  }
 0x460   : > { %4961 = vmatpush1.bf16.msra.mxu0 %v11722_v35  ;;  %v11773_v35 = vld [vmem:[%s15708_s4 + $0x1088] ss:$16 sps:$4 sm:$0xff]  }
 0x461   : > { %5047 = vmatpush1.bf16.msra.mxu1 %v11725_v38  ;;  %4962 = vmatprep.subr.bf16.mxu0 %v11730_v36  ;;  %v11778_v38 = vld [vmem:[%s15708_s4 + $0x10a4] ss:$16 sps:$4 sm:$0xff]   ;;  %v11781_v36 = vld [vmem:[%s15708_s4 + $0x10ac] ss:$16 sps:$4 sm:$0xff]  }
 0x462   : > { %5048 = vmatprep.subr.bf16.mxu1 %v11733_v62  ;;  %v11776_v62 = vld [vmem:[%s15708_s4 + $0x10a0] ss:$16 sps:$4 sm:$0xff]  }
 0x464   : > { %4963 = vmatpush1.bf16.msra.mxu0 %v11728_v43  ;;  %v11779_v43 = vld [vmem:[%s15708_s4 + $0x10a8] ss:$16 sps:$4 sm:$0xff]  }
 0x465   : > { %5049 = vmatpush1.bf16.msra.mxu1 %v11731_v45  ;;  %4964 = vmatprep.subr.bf16.mxu0 %v11736_v50  ;;  %v11784_v45 = vld [vmem:[%s15708_s4 + $0x10c4] ss:$16 sps:$4 sm:$0xff]   ;;  %v11787_v50 = vld [vmem:[%s15708_s4 + $0x10cc] ss:$16 sps:$4 sm:$0xff]  }
 0x466   : > { %5050 = vmatprep.subr.bf16.mxu1 %v11739_v51  ;;  %v11782_v51 = vld [vmem:[%s15708_s4 + $0x10c0] ss:$16 sps:$4 sm:$0xff]  }
 0x468   : > { %4965 = vmatpush1.bf16.msra.mxu0 %v11734_v52  ;;  %v11785_v52 = vld [vmem:[%s15708_s4 + $0x10c8] ss:$16 sps:$4 sm:$0xff]  }
 0x469   : > { %5051 = vmatpush1.bf16.msra.mxu1 %v11737_v0  ;;  %4966 = vmatprep.subr.bf16.mxu0 %v11742_v11  ;;  %v11790_v0 = vld [vmem:[%s15708_s4 + $0x10e4] ss:$16 sps:$4 sm:$0xff]   ;;  %v11793_v11 = vld [vmem:[%s15708_s4 + $0x10ec] ss:$16 sps:$4 sm:$0xff]  }
 0x46a   : > { %5052 = vmatprep.subr.bf16.mxu1 %v11745_v20  ;;  %v11788_v20 = vld [vmem:[%s15708_s4 + $0x10e0] ss:$16 sps:$4 sm:$0xff]  }
 0x46c   : > { %4967 = vmatpush1.bf16.msra.mxu0 %v11740_v25  ;;  %v11796_v25 = vld [vmem:[%s15708_s4 + $0x1104] ss:$16 sps:$4 sm:$0xff]  }
 0x46d   : > { %5053 = vmatpush1.bf16.msra.mxu1 %v11743_v60  ;;  %v11794_v60 = vld [vmem:[%s15708_s4 + $0x1100] ss:$16 sps:$4 sm:$0xff]  }
 0x46f   : > { %4969 = vmatmul.mubr.bf16.vlgmr.msra.gmra.mrb[32].mxu0 %v14211_v56 }
 0x470   : > { %5055 = vmatmul.mubr.bf16.vlgmr.msra.gmra.mrb[36].mxu1 %v14211_v56  ;;  %5177 = vmatprep.mubr.f32.mxu0 %v12421_v49 }
 0x471   : > { %5248 = vmatprep.mubr.f32.mxu1 %v12421_v49 }
 0x542   : > { %v4970_v57 = vpop.f32.mrb[32].mxu0 }
 0x543   : > { %v5056_v22 = vpop.f32.mrb[36].mxu1  ;;  %v4972_v58 = vpop.f32.mrb[33].mxu0 }
 0x544   : > { %v5058_v59 = vpop.f32.mrb[37].mxu1  ;;  %v4974_v37 = vpop.f32.mrb[34].mxu0 }
 0x545   : > { %v10837_v17 = vpack.c.bf16 %v4974_v37, %v4970_v57  ;;  %v5060_v30 = vpop.f32.mrb[38].mxu1  ;;  %v4976_v61 = vpop.f32.mrb[35].mxu0  ;;  %v11802_v57 = vld [vmem:[%s15708_s4 + $0x1124] ss:$16 sps:$4 sm:$0xff]  }
 0x546   : > { %v10843_v63 = vpack.c.bf16 %v5060_v30, %v5056_v22  ;;  %v10834_v4 = vpack.c.bf16 %v4976_v61, %v4972_v58  ;;  %v5062_v5 = vpop.f32.mrb[39].mxu1  ;;  %v11805_v22 = vld [vmem:[%s15708_s4 + $0x112c] ss:$16 sps:$4 sm:$0xff]   ;;  %v11800_v58 = vld [vmem:[%s15708_s4 + $0x1120] ss:$16 sps:$4 sm:$0xff]  }
 0x547   : > { %v10840_v27 = vpack.c.bf16 %v5062_v5, %v5058_v59  ;;  %v11803_v59 = vld [vmem:[%s15708_s4 + $0x1128] ss:$16 sps:$4 sm:$0xff]   ;;  %v11808_v37 = vld [vmem:[%s15708_s4 + $0x1144] ss:$16 sps:$4 sm:$0xff]   ;;  %v11806_v30 = vld [vmem:[%s15708_s4 + $0x1140] ss:$16 sps:$4 sm:$0xff]  }
 0x548   : > { %10836 = vmatprep.subr.msk.bf16.mxu0 %vm14218_vm7, %v10834_v4  ;;  %v11809_v61 = vld [vmem:[%s15708_s4 + $0x1148] ss:$16 sps:$4 sm:$0xff]   ;;  %v11812_v5 = vld [vmem:[%s15708_s4 + $0x1160] ss:$16 sps:$4 sm:$0xff]  }
 0x549   : > { %10842 = vmatprep.subr.msk.bf16.mxu1 %vm14218_vm7, %v10840_v27  ;;  %10839 = vmatpush1.bf16.msk.msra.mxu0 %vm14218_vm7, %v10837_v17 }
 0x54a   : > { %10845 = vmatpush1.bf16.msk.msra.mxu1 %vm14218_vm7, %v10843_v63  ;;  %10848 = vmatprep.subr.msk.bf16.mxu0 %vm14218_vm7, %v10834_v4  ;;  %v11817_v4 = vld [vmem:[%s15708_s4 + $0x116c] ss:$16 sps:$4 sm:$0xff]  }
 0x54b   : > { %10854 = vmatprep.subr.msk.bf16.mxu1 %vm14218_vm7, %v10840_v27  ;;  %v11815_v27 = vld [vmem:[%s15708_s4 + $0x1168] ss:$16 sps:$4 sm:$0xff]  }
 0x54c   : > { %9856 = vmatmul.mubr.msk.f32.vlgmr.msra.gmra.mrb[36].mxu0 %vm5096_vm8, %v5073_v6 }
 0x54d   : > { %9859 = vmatmul.mubr.msk.f32.vlgmr.msra.gmra.mrb[40].mxu1 %vm5096_vm8, %v5073_v6  ;;  %10851 = vmatpush1.bf16.msk.msra.mxu0 %vm14218_vm7, %v10837_v17  ;;  %v11811_v17 = vld [vmem:[%s15708_s4 + $0x114c] ss:$16 sps:$4 sm:$0xff]   ;;  %v11820_v6 = vld [vmem:[%s15708_s4 + $0x1184] ss:$16 sps:$4 sm:$0xff]  }
 0x54e   : > { %10857 = vmatpush1.bf16.msk.msra.mxu1 %vm14218_vm7, %v10843_v63  ;;  %5328 = vmatprep.mubr.f32.mxu0 %v12421_v49  ;;  %v11814_v63 = vld [vmem:[%s15708_s4 + $0x1164] ss:$16 sps:$4 sm:$0xff]  }
 0x54f   : > { %5399 = vmatprep.mubr.f32.mxu1 %v12421_v49  ;;  %6308 = vmatprep.subr.bf16.mxu0 %v11748_v7  ;;  %v11823_v7 = vld [vmem:[%s15708_s4 + $0x118c] ss:$16 sps:$4 sm:$0xff]  }
 0x550   : > { %9863 = vmatmul.mubr.msk.f32.vlgmr.msra.gmra.mrb[38].mxu0 %vm5096_vm8, %v9860_v9  ;;  %6394 = vmatprep.subr.bf16.mxu1 %v11751_v8  ;;  %v11818_v8 = vld [vmem:[%s15708_s4 + $0x1180] ss:$16 sps:$4 sm:$0xff]  }
 0x551   : > { %9866 = vmatmul.mubr.msk.f32.vlgmr.msra.gmra.mrb[42].mxu1 %vm5096_vm8, %v9860_v9  ;;  %6309 = vmatpush1.bf16.msra.mxu0 %v11746_v40  ;;  %v11821_v9 = vld [vmem:[%s15708_s4 + $0x1188] ss:$16 sps:$4 sm:$0xff]   ;;  %v11826_v40 = vld [vmem:[%s15708_s4 + $0x11a4] ss:$16 sps:$4 sm:$0xff]  }
 0x552   : > { %6340 = vmatprep.mubr.bf16.mxu0 %v13211_v26  ;;  %6395 = vmatpush1.bf16.msra.mxu1 %v11749_v10  ;;  %v11829_v10 = vld [vmem:[%s15708_s4 + $0x11ac] ss:$16 sps:$4 sm:$0xff]  }
 0x553   : > { %6426 = vmatprep.mubr.bf16.mxu1 %v13211_v26  ;;  %6310 = vmatprep.subr.bf16.mxu0 %v11754_v12  ;;  %v11766_v26 = vld [vmem:[%s15708_s4 + $0x1064] ss:$16 sps:$4 sm:$0xff]   ;;  %v11824_v12 = vld [vmem:[%s15708_s4 + $0x11a0] ss:$16 sps:$4 sm:$0xff]  }
 0x554   : > { %6396 = vmatprep.subr.bf16.mxu1 %v11757_v42  ;;  %v11827_v42 = vld [vmem:[%s15708_s4 + $0x11a8] ss:$16 sps:$4 sm:$0xff]  }
 0x555   : > { %6311 = vmatpush1.bf16.msra.mxu0 %v11752_v14  ;;  %v11832_v14 = vld [vmem:[%s15708_s4 + $0x11c4] ss:$16 sps:$4 sm:$0xff]  }
 0x556   : > { %6397 = vmatpush1.bf16.msra.mxu1 %v11755_v29  ;;  %6312 = vmatprep.subr.bf16.mxu0 %v11760_v18  ;;  %v11835_v29 = vld [vmem:[%s15708_s4 + $0x11cc] ss:$16 sps:$4 sm:$0xff]   ;;  %v11830_v18 = vld [vmem:[%s15708_s4 + $0x11c0] ss:$16 sps:$4 sm:$0xff]  }
 0x557   : > { %6398 = vmatprep.subr.bf16.mxu1 %v11763_v19  ;;  %v11833_v19 = vld [vmem:[%s15708_s4 + $0x11c8] ss:$16 sps:$4 sm:$0xff]  }
 0x559   : > { %6313 = vmatpush1.bf16.msra.mxu0 %v11758_v21  ;;  %v11838_v21 = vld [vmem:[%s15708_s4 + $0x11e4] ss:$16 sps:$4 sm:$0xff]  }
 0x55a   : > { %6399 = vmatpush1.bf16.msra.mxu1 %v11761_v23  ;;  %6314 = vmatprep.subr.bf16.mxu0 %v11766_v26  ;;  %v11841_v23 = vld [vmem:[%s15708_s4 + $0x11ec] ss:$16 sps:$4 sm:$0xff]   ;;  %v11836_v26 = vld [vmem:[%s15708_s4 + $0x11e0] ss:$16 sps:$4 sm:$0xff]  }
 0x55b   : > { %6400 = vmatprep.subr.bf16.mxu1 %v11769_v28  ;;  %v11839_v28 = vld [vmem:[%s15708_s4 + $0x11e8] ss:$16 sps:$4 sm:$0xff]  }
 0x55d   : > { %6315 = vmatpush1.bf16.msra.mxu0 %v11764_v48  ;;  %v11844_v48 = vld [vmem:[%s15708_s4 + $0x1204] ss:$16 sps:$4 sm:$0xff]  }
 0x55e   : > { %6401 = vmatpush1.bf16.msra.mxu1 %v11767_v1  ;;  %6316 = vmatprep.subr.bf16.mxu0 %v11772_v32  ;;  %v11847_v1 = vld [vmem:[%s15708_s4 + $0x120c] ss:$16 sps:$4 sm:$0xff]   ;;  %v11842_v32 = vld [vmem:[%s15708_s4 + $0x1200] ss:$16 sps:$4 sm:$0xff]  }
 0x55f   : > { %6402 = vmatprep.subr.bf16.mxu1 %v11775_v33  ;;  %v11845_v33 = vld [vmem:[%s15708_s4 + $0x1208] ss:$16 sps:$4 sm:$0xff]  }
 0x561   : > { %6317 = vmatpush1.bf16.msra.mxu0 %v11770_v34  ;;  %v11850_v34 = vld [vmem:[%s15708_s4 + $0x1224] ss:$16 sps:$4 sm:$0xff]  }
 0x562   : > { %6403 = vmatpush1.bf16.msra.mxu1 %v11773_v35  ;;  %6318 = vmatprep.subr.bf16.mxu0 %v11778_v38  ;;  %v11853_v35 = vld [vmem:[%s15708_s4 + $0x122c] ss:$16 sps:$4 sm:$0xff]   ;;  %v11848_v38 = vld [vmem:[%s15708_s4 + $0x1220] ss:$16 sps:$4 sm:$0xff]  }
 0x563   : > { %6404 = vmatprep.subr.bf16.mxu1 %v11781_v36  ;;  %v11851_v36 = vld [vmem:[%s15708_s4 + $0x1228] ss:$16 sps:$4 sm:$0xff]  }
 0x565   : > { %6319 = vmatpush1.bf16.msra.mxu0 %v11776_v62  ;;  %v11856_v62 = vld [vmem:[%s15708_s4 + $0x1244] ss:$16 sps:$4 sm:$0xff]  }
 0x566   : > { %6405 = vmatpush1.bf16.msra.mxu1 %v11779_v43  ;;  %6320 = vmatprep.subr.bf16.mxu0 %v11784_v45  ;;  %v11854_v43 = vld [vmem:[%s15708_s4 + $0x1240] ss:$16 sps:$4 sm:$0xff]   ;;  %v11857_v45 = vld [vmem:[%s15708_s4 + $0x1248] ss:$16 sps:$4 sm:$0xff]  }
 0x567   : > { %6406 = vmatprep.subr.bf16.mxu1 %v11787_v50  ;;  %v11865_v50 = vld [vmem:[%s15708_s4 + $0x126c] ss:$16 sps:$4 sm:$0xff]  }
 0x569   : > { %6321 = vmatpush1.bf16.msra.mxu0 %v11782_v51  ;;  %v11860_v51 = vld [vmem:[%s15708_s4 + $0x1260] ss:$16 sps:$4 sm:$0xff]  }
 0x56a   : > { %6407 = vmatpush1.bf16.msra.mxu1 %v11785_v52  ;;  %6322 = vmatprep.subr.bf16.mxu0 %v11790_v0  ;;  %v11863_v52 = vld [vmem:[%s15708_s4 + $0x1268] ss:$16 sps:$4 sm:$0xff]   ;;  %v11868_v0 = vld [vmem:[%s15708_s4 + $0x1284] ss:$16 sps:$4 sm:$0xff]  }
 0x56b   : > { %6408 = vmatprep.subr.bf16.mxu1 %v11793_v11  ;;  %v11871_v11 = vld [vmem:[%s15708_s4 + $0x128c] ss:$16 sps:$4 sm:$0xff]  }
 0x56d   : > { %6323 = vmatpush1.bf16.msra.mxu0 %v11788_v20  ;;  %v11866_v20 = vld [vmem:[%s15708_s4 + $0x1280] ss:$16 sps:$4 sm:$0xff]  }
 0x56e   : > { %6409 = vmatpush1.bf16.msra.mxu1 %v11791_v53  ;;  %6324 = vmatprep.subr.bf16.mxu0 %v11796_v25  ;;  %v11869_v53 = vld [vmem:[%s15708_s4 + $0x1288] ss:$16 sps:$4 sm:$0xff]   ;;  %v11874_v25 = vld [vmem:[%s15708_s4 + $0x12a4] ss:$16 sps:$4 sm:$0xff]  }
 0x56f   : > { %6410 = vmatprep.subr.bf16.mxu1 %v11799_v16  ;;  %v11877_v16 = vld [vmem:[%s15708_s4 + $0x12ac] ss:$16 sps:$4 sm:$0xff]  }
 0x571   : > { %6325 = vmatpush1.bf16.msra.mxu0 %v11794_v60  ;;  %v11872_v60 = vld [vmem:[%s15708_s4 + $0x12a0] ss:$16 sps:$4 sm:$0xff]  }
 0x572   : > { %6411 = vmatpush1.bf16.msra.mxu1 %v11797_v46  ;;  %6326 = vmatprep.subr.bf16.mxu0 %v11802_v57  ;;  %v11875_v46 = vld [vmem:[%s15708_s4 + $0x12a8] ss:$16 sps:$4 sm:$0xff]   ;;  %v11880_v57 = vld [vmem:[%s15708_s4 + $0x12c4] ss:$16 sps:$4 sm:$0xff]  }
 0x573   : > { %6412 = vmatprep.subr.bf16.mxu1 %v11805_v22  ;;  %v11883_v22 = vld [vmem:[%s15708_s4 + $0x12cc] ss:$16 sps:$4 sm:$0xff]  }
 0x575   : > { %6327 = vmatpush1.bf16.msra.mxu0 %v11800_v58  ;;  %v11878_v58 = vld [vmem:[%s15708_s4 + $0x12c0] ss:$16 sps:$4 sm:$0xff]  }
 0x576   : > { %6413 = vmatpush1.bf16.msra.mxu1 %v11803_v59  ;;  %6328 = vmatprep.subr.bf16.mxu0 %v11808_v37  ;;  %v11881_v59 = vld [vmem:[%s15708_s4 + $0x12c8] ss:$16 sps:$4 sm:$0xff]   ;;  %v11886_v37 = vld [vmem:[%s15708_s4 + $0x12e4] ss:$16 sps:$4 sm:$0xff]  }
 0x577   : > { %6414 = vmatprep.subr.bf16.mxu1 %v11811_v17  ;;  %v11889_v17 = vld [vmem:[%s15708_s4 + $0x12ec] ss:$16 sps:$4 sm:$0xff]  }
 0x579   : > { %6329 = vmatpush1.bf16.msra.mxu0 %v11806_v30  ;;  %v11884_v30 = vld [vmem:[%s15708_s4 + $0x12e0] ss:$16 sps:$4 sm:$0xff]  }
 0x57a   : > { %6415 = vmatpush1.bf16.msra.mxu1 %v11809_v61  ;;  %6330 = vmatprep.subr.bf16.mxu0 %v11814_v63  ;;  %v11887_v61 = vld [vmem:[%s15708_s4 + $0x12e8] ss:$16 sps:$4 sm:$0xff]   ;;  %v11892_v63 = vld [vmem:[%s15708_s4 + $0x1304] ss:$16 sps:$4 sm:$0xff]  }
 0x57b   : > { %6416 = vmatprep.subr.bf16.mxu1 %v11817_v4  ;;  %v11895_v4 = vld [vmem:[%s15708_s4 + $0x130c] ss:$16 sps:$4 sm:$0xff]  }
 0x57d   : > { %6331 = vmatpush1.bf16.msra.mxu0 %v11812_v5  ;;  %v11890_v5 = vld [vmem:[%s15708_s4 + $0x1300] ss:$16 sps:$4 sm:$0xff]  }
 0x57e   : > { %6417 = vmatpush1.bf16.msra.mxu1 %v11815_v27  ;;  %6332 = vmatprep.subr.bf16.mxu0 %v11820_v6  ;;  %v11893_v27 = vld [vmem:[%s15708_s4 + $0x1308] ss:$16 sps:$4 sm:$0xff]   ;;  %v11898_v6 = vld [vmem:[%s15708_s4 + $0x1324] ss:$16 sps:$4 sm:$0xff]  }
 0x57f   : > { %6418 = vmatprep.subr.bf16.mxu1 %v11823_v7  ;;  %v11901_v7 = vld [vmem:[%s15708_s4 + $0x132c] ss:$16 sps:$4 sm:$0xff]  }
 0x581   : > { %6333 = vmatpush1.bf16.msra.mxu0 %v11818_v8  ;;  %v11896_v8 = vld [vmem:[%s15708_s4 + $0x1320] ss:$16 sps:$4 sm:$0xff]  }
 0x582   : > { %6419 = vmatpush1.bf16.msra.mxu1 %v11821_v9  ;;  %6334 = vmatprep.subr.bf16.mxu0 %v11826_v40  ;;  %v11899_v9 = vld [vmem:[%s15708_s4 + $0x1328] ss:$16 sps:$4 sm:$0xff]   ;;  %v11904_v40 = vld [vmem:[%s15708_s4 + $0x1344] ss:$16 sps:$4 sm:$0xff]  }
 0x583   : > { %6420 = vmatprep.subr.bf16.mxu1 %v11829_v10  ;;  %v11907_v10 = vld [vmem:[%s15708_s4 + $0x134c] ss:$16 sps:$4 sm:$0xff]  }
 0x585   : > { %6335 = vmatpush1.bf16.msra.mxu0 %v11824_v12  ;;  %v11902_v12 = vld [vmem:[%s15708_s4 + $0x1340] ss:$16 sps:$4 sm:$0xff]  }
 0x586   : > { %6421 = vmatpush1.bf16.msra.mxu1 %v11827_v42  ;;  %6336 = vmatprep.subr.bf16.mxu0 %v11832_v14  ;;  %v11905_v42 = vld [vmem:[%s15708_s4 + $0x1348] ss:$16 sps:$4 sm:$0xff]   ;;  %v11910_v14 = vld [vmem:[%s15708_s4 + $0x1364] ss:$16 sps:$4 sm:$0xff]  }
 0x587   : > { %6422 = vmatprep.subr.bf16.mxu1 %v11835_v29  ;;  %v11913_v29 = vld [vmem:[%s15708_s4 + $0x136c] ss:$16 sps:$4 sm:$0xff]  }
 0x589   : > { %6337 = vmatpush1.bf16.msra.mxu0 %v11830_v18  ;;  %v11908_v18 = vld [vmem:[%s15708_s4 + $0x1360] ss:$16 sps:$4 sm:$0xff]  }
 0x58a   : > { %6423 = vmatpush1.bf16.msra.mxu1 %v11833_v19  ;;  %6338 = vmatprep.subr.bf16.mxu0 %v11838_v21  ;;  %v11911_v19 = vld [vmem:[%s15708_s4 + $0x1368] ss:$16 sps:$4 sm:$0xff]   ;;  %v11916_v21 = vld [vmem:[%s15708_s4 + $0x1384] ss:$16 sps:$4 sm:$0xff]  }
 0x58b   : > { %6424 = vmatprep.subr.bf16.mxu1 %v11841_v23  ;;  %v11919_v23 = vld [vmem:[%s15708_s4 + $0x138c] ss:$16 sps:$4 sm:$0xff]  }
 0x58d   : > { %6339 = vmatpush1.bf16.msra.mxu0 %v11836_v26  ;;  %v11914_v26 = vld [vmem:[%s15708_s4 + $0x1380] ss:$16 sps:$4 sm:$0xff]  }
 0x58e   : > { %6425 = vmatpush1.bf16.msra.mxu1 %v11839_v28  ;;  %6351 = vmatprep.subr.bf16.mxu0 %v11844_v48  ;;  %v11917_v28 = vld [vmem:[%s15708_s4 + $0x1388] ss:$16 sps:$4 sm:$0xff]   ;;  %v11922_v48 = vld [vmem:[%s15708_s4 + $0x13a4] ss:$16 sps:$4 sm:$0xff]  }
 0x58f   : > { %6437 = vmatprep.subr.bf16.mxu1 %v11847_v1  ;;  %v11925_v1 = vld [vmem:[%s15708_s4 + $0x13ac] ss:$16 sps:$4 sm:$0xff]  }
 0x590   : > { %6341 = vmatmul.mubr.bf16.vlgmr.msra.gmra.mrb[40].mxu0 %v13219_v31 }
 0x591   : > { %6427 = vmatmul.mubr.bf16.vlgmr.msra.gmra.mrb[44].mxu1 %v13219_v31  ;;  %6352 = vmatpush1.bf16.msra.mxu0 %v11842_v32  ;;  %v11859_v31 = vld [vmem:[%s15708_s4 + $0x124c] ss:$16 sps:$4 sm:$0xff]   ;;  %v11920_v32 = vld [vmem:[%s15708_s4 + $0x13a0] ss:$16 sps:$4 sm:$0xff]  }
 0x592   : > { %6383 = vmatprep.mubr.bf16.mxu0 %v13255_v3  ;;  %6438 = vmatpush1.bf16.msra.mxu1 %v11845_v33  ;;  %v11923_v33 = vld [vmem:[%s15708_s4 + $0x13a8] ss:$16 sps:$4 sm:$0xff]  }
 0x593   : > { %6469 = vmatprep.mubr.bf16.mxu1 %v13255_v3  ;;  %6353 = vmatprep.subr.bf16.mxu0 %v11850_v34  ;;  %v11862_v3 = vld [vmem:[%s15708_s4 + $0x1264] ss:$16 sps:$4 sm:$0xff]  }
 0x594   : > { %6439 = vmatprep.subr.bf16.mxu1 %v11853_v35  ;;  %v11928_v34 = vld [vmem:[%s15708_s4 + $0x13c4] ss:$16 sps:$4 sm:$0xff]   ;;  %v11931_v35 = vld [vmem:[%s15708_s4 + $0x13cc] ss:$16 sps:$4 sm:$0xff]  }
 0x595   : > { %6354 = vmatpush1.bf16.msra.mxu0 %v11848_v38  ;;  %v11926_v38 = vld [vmem:[%s15708_s4 + $0x13c0] ss:$16 sps:$4 sm:$0xff]  }
 0x596   : > { %6440 = vmatpush1.bf16.msra.mxu1 %v11851_v36  ;;  %6355 = vmatprep.subr.bf16.mxu0 %v11856_v62  ;;  %v11929_v36 = vld [vmem:[%s15708_s4 + $0x13c8] ss:$16 sps:$4 sm:$0xff]   ;;  %v11934_v62 = vld [vmem:[%s15708_s4 + $0x13e4] ss:$16 sps:$4 sm:$0xff]  }
 0x597   : > { %6441 = vmatprep.subr.bf16.mxu1 %v11859_v31  ;;  %v11937_v31 = vld [vmem:[%s15708_s4 + $0x13ec] ss:$16 sps:$4 sm:$0xff]  }
 0x599   : > { %6356 = vmatpush1.bf16.msra.mxu0 %v11854_v43  ;;  %v11932_v43 = vld [vmem:[%s15708_s4 + $0x13e0] ss:$16 sps:$4 sm:$0xff]  }
 0x59a   : > { %6442 = vmatpush1.bf16.msra.mxu1 %v11857_v45  ;;  %6357 = vmatprep.subr.bf16.mxu0 %v11862_v3  ;;  %v11935_v45 = vld [vmem:[%s15708_s4 + $0x13e8] ss:$16 sps:$4 sm:$0xff]   ;;  %v11940_v3 = vld [vmem:[%s15708_s4 + $0xc04] ss:$16 sps:$4 sm:$0xff]  }
 0x59b   : > { %6443 = vmatprep.subr.bf16.mxu1 %v11865_v50  ;;  %v11943_v50 = vld [vmem:[%s15708_s4 + $0xc0c] ss:$16 sps:$4 sm:$0xff]  }
 0x59d   : > { %6358 = vmatpush1.bf16.msra.mxu0 %v11860_v51  ;;  %v11938_v51 = vld [vmem:[%s15708_s4 + $0xc00] ss:$16 sps:$4 sm:$0xff]  }
 0x59e   : > { %6444 = vmatpush1.bf16.msra.mxu1 %v11863_v52  ;;  %6359 = vmatprep.subr.bf16.mxu0 %v11868_v0  ;;  %v11941_v52 = vld [vmem:[%s15708_s4 + $0xc08] ss:$16 sps:$4 sm:$0xff]   ;;  %v11946_v0 = vld [vmem:[%s15708_s4 + $0xc24] ss:$16 sps:$4 sm:$0xff]  }
 0x59f   : > { %6445 = vmatprep.subr.bf16.mxu1 %v11871_v11  ;;  %v11949_v11 = vld [vmem:[%s15708_s4 + $0xc2c] ss:$16 sps:$4 sm:$0xff]  }
 0x5a1   : > { %6360 = vmatpush1.bf16.msra.mxu0 %v11866_v20  ;;  %v11944_v20 = vld [vmem:[%s15708_s4 + $0xc20] ss:$16 sps:$4 sm:$0xff]  }
 0x5a2   : > { %6446 = vmatpush1.bf16.msra.mxu1 %v11869_v53  ;;  %6361 = vmatprep.subr.bf16.mxu0 %v11874_v25  ;;  %v11947_v53 = vld [vmem:[%s15708_s4 + $0xc28] ss:$16 sps:$4 sm:$0xff]   ;;  %v11952_v25 = vld [vmem:[%s15708_s4 + $0xc44] ss:$16 sps:$4 sm:$0xff]  }
 0x5a3   : > { %6447 = vmatprep.subr.bf16.mxu1 %v11877_v16  ;;  %v11950_v16 = vld [vmem:[%s15708_s4 + $0xc40] ss:$16 sps:$4 sm:$0xff]  }
 0x5a5   : > { %6362 = vmatpush1.bf16.msra.mxu0 %v11872_v60  ;;  %v11953_v60 = vld [vmem:[%s15708_s4 + $0xc48] ss:$16 sps:$4 sm:$0xff]  }
 0x5a6   : > { %6448 = vmatpush1.bf16.msra.mxu1 %v11875_v46  ;;  %6363 = vmatprep.subr.bf16.mxu0 %v11880_v57  ;;  %v11961_v46 = vld [vmem:[%s15708_s4 + $0xc6c] ss:$16 sps:$4 sm:$0xff]   ;;  %v11956_v57 = vld [vmem:[%s15708_s4 + $0xc60] ss:$16 sps:$4 sm:$0xff]  }
 0x5a7   : > { %6449 = vmatprep.subr.bf16.mxu1 %v11883_v22  ;;  %v11959_v22 = vld [vmem:[%s15708_s4 + $0xc68] ss:$16 sps:$4 sm:$0xff]  }
 0x5a9   : > { %6364 = vmatpush1.bf16.msra.mxu0 %v11878_v58  ;;  %v11964_v58 = vld [vmem:[%s15708_s4 + $0xc84] ss:$16 sps:$4 sm:$0xff]  }
 0x5aa   : > { %6450 = vmatpush1.bf16.msra.mxu1 %v11881_v59  ;;  %6365 = vmatprep.subr.bf16.mxu0 %v11886_v37  ;;  %v11967_v59 = vld [vmem:[%s15708_s4 + $0xc8c] ss:$16 sps:$4 sm:$0xff]   ;;  %v11962_v37 = vld [vmem:[%s15708_s4 + $0xc80] ss:$16 sps:$4 sm:$0xff]  }
 0x5ab   : > { %6451 = vmatprep.subr.bf16.mxu1 %v11889_v17  ;;  %v11965_v17 = vld [vmem:[%s15708_s4 + $0xc88] ss:$16 sps:$4 sm:$0xff]  }
 0x5ad   : > { %6366 = vmatpush1.bf16.msra.mxu0 %v11884_v30  ;;  %v11970_v30 = vld [vmem:[%s15708_s4 + $0xca4] ss:$16 sps:$4 sm:$0xff]  }
 0x5ae   : > { %6452 = vmatpush1.bf16.msra.mxu1 %v11887_v61  ;;  %6367 = vmatprep.subr.bf16.mxu0 %v11892_v63  ;;  %v11973_v61 = vld [vmem:[%s15708_s4 + $0xcac] ss:$16 sps:$4 sm:$0xff]   ;;  %v11968_v63 = vld [vmem:[%s15708_s4 + $0xca0] ss:$16 sps:$4 sm:$0xff]  }
 0x5af   : > { %6453 = vmatprep.subr.bf16.mxu1 %v11895_v4  ;;  %v11971_v4 = vld [vmem:[%s15708_s4 + $0xca8] ss:$16 sps:$4 sm:$0xff]  }
 0x5b1   : > { %6368 = vmatpush1.bf16.msra.mxu0 %v11890_v5  ;;  %v11976_v5 = vld [vmem:[%s15708_s4 + $0xcc4] ss:$16 sps:$4 sm:$0xff]  }
 0x5b2   : > { %6454 = vmatpush1.bf16.msra.mxu1 %v11893_v27  ;;  %6369 = vmatprep.subr.bf16.mxu0 %v11898_v6  ;;  %v11979_v27 = vld [vmem:[%s15708_s4 + $0xccc] ss:$16 sps:$4 sm:$0xff]   ;;  %v11974_v6 = vld [vmem:[%s15708_s4 + $0xcc0] ss:$16 sps:$4 sm:$0xff]  }
 0x5b3   : > { %6455 = vmatprep.subr.bf16.mxu1 %v11901_v7  ;;  %v11977_v7 = vld [vmem:[%s15708_s4 + $0xcc8] ss:$16 sps:$4 sm:$0xff]  }
 0x5b5   : > { %6370 = vmatpush1.bf16.msra.mxu0 %v11896_v8  ;;  %v11982_v8 = vld [vmem:[%s15708_s4 + $0xce4] ss:$16 sps:$4 sm:$0xff]  }
 0x5b6   : > { %6456 = vmatpush1.bf16.msra.mxu1 %v11899_v9  ;;  %6371 = vmatprep.subr.bf16.mxu0 %v11904_v40  ;;  %v11985_v9 = vld [vmem:[%s15708_s4 + $0xcec] ss:$16 sps:$4 sm:$0xff]   ;;  %v11980_v40 = vld [vmem:[%s15708_s4 + $0xce0] ss:$16 sps:$4 sm:$0xff]  }
 0x5b7   : > { %6457 = vmatprep.subr.bf16.mxu1 %v11907_v10  ;;  %v11983_v10 = vld [vmem:[%s15708_s4 + $0xce8] ss:$16 sps:$4 sm:$0xff]  }
 0x5b9   : > { %6372 = vmatpush1.bf16.msra.mxu0 %v11902_v12  ;;  %v11988_v12 = vld [vmem:[%s15708_s4 + $0xd04] ss:$16 sps:$4 sm:$0xff]  }
 0x5ba   : > { %6458 = vmatpush1.bf16.msra.mxu1 %v11905_v42  ;;  %6373 = vmatprep.subr.bf16.mxu0 %v11910_v14  ;;  %v11991_v42 = vld [vmem:[%s15708_s4 + $0xd0c] ss:$16 sps:$4 sm:$0xff]   ;;  %v11986_v14 = vld [vmem:[%s15708_s4 + $0xd00] ss:$16 sps:$4 sm:$0xff]  }
 0x5bb   : > { %6459 = vmatprep.subr.bf16.mxu1 %v11913_v29  ;;  %v11989_v29 = vld [vmem:[%s15708_s4 + $0xd08] ss:$16 sps:$4 sm:$0xff]  }
 0x5bd   : > { %6374 = vmatpush1.bf16.msra.mxu0 %v11908_v18  ;;  %v11994_v18 = vld [vmem:[%s15708_s4 + $0xd24] ss:$16 sps:$4 sm:$0xff]  }
 0x5be   : > { %6460 = vmatpush1.bf16.msra.mxu1 %v11911_v19  ;;  %6375 = vmatprep.subr.bf16.mxu0 %v11916_v21  ;;  %v11997_v19 = vld [vmem:[%s15708_s4 + $0xd2c] ss:$16 sps:$4 sm:$0xff]   ;;  %v11992_v21 = vld [vmem:[%s15708_s4 + $0xd20] ss:$16 sps:$4 sm:$0xff]  }
 0x5bf   : > { %6461 = vmatprep.subr.bf16.mxu1 %v11919_v23  ;;  %v11995_v23 = vld [vmem:[%s15708_s4 + $0xd28] ss:$16 sps:$4 sm:$0xff]  }
 0x5c1   : > { %6376 = vmatpush1.bf16.msra.mxu0 %v11914_v26  ;;  %v12000_v26 = vld [vmem:[%s15708_s4 + $0xd44] ss:$16 sps:$4 sm:$0xff]  }
 0x5c2   : > { %6462 = vmatpush1.bf16.msra.mxu1 %v11917_v28  ;;  %6377 = vmatprep.subr.bf16.mxu0 %v11922_v48  ;;  %v12003_v28 = vld [vmem:[%s15708_s4 + $0xd4c] ss:$16 sps:$4 sm:$0xff]   ;;  %v11998_v48 = vld [vmem:[%s15708_s4 + $0xd40] ss:$16 sps:$4 sm:$0xff]  }
 0x5c3   : > { %6463 = vmatprep.subr.bf16.mxu1 %v11925_v1  ;;  %v12001_v1 = vld [vmem:[%s15708_s4 + $0xd48] ss:$16 sps:$4 sm:$0xff]  }
 0x5c5   : > { %6378 = vmatpush1.bf16.msra.mxu0 %v11920_v32  ;;  %v12006_v32 = vld [vmem:[%s15708_s4 + $0xd64] ss:$16 sps:$4 sm:$0xff]  }
 0x5c6   : > { %6464 = vmatpush1.bf16.msra.mxu1 %v11923_v33  ;;  %6379 = vmatprep.subr.bf16.mxu0 %v11928_v34  ;;  %v12009_v33 = vld [vmem:[%s15708_s4 + $0xd6c] ss:$16 sps:$4 sm:$0xff]   ;;  %v12004_v34 = vld [vmem:[%s15708_s4 + $0xd60] ss:$16 sps:$4 sm:$0xff]  }
 0x5c7   : > { %6465 = vmatprep.subr.bf16.mxu1 %v11931_v35  ;;  %v12007_v35 = vld [vmem:[%s15708_s4 + $0xd68] ss:$16 sps:$4 sm:$0xff]  }
 0x5c9   : > { %6380 = vmatpush1.bf16.msra.mxu0 %v11926_v38  ;;  %v12012_v38 = vld [vmem:[%s15708_s4 + $0xd84] ss:$16 sps:$4 sm:$0xff]  }
 0x5ca   : > { %6466 = vmatpush1.bf16.msra.mxu1 %v11929_v36  ;;  %6381 = vmatprep.subr.bf16.mxu0 %v11934_v62  ;;  %v12015_v36 = vld [vmem:[%s15708_s4 + $0xd8c] ss:$16 sps:$4 sm:$0xff]   ;;  %v12010_v62 = vld [vmem:[%s15708_s4 + $0xd80] ss:$16 sps:$4 sm:$0xff]  }
 0x5cb   : > { %6467 = vmatprep.subr.bf16.mxu1 %v11937_v31  ;;  %v12013_v31 = vld [vmem:[%s15708_s4 + $0xd88] ss:$16 sps:$4 sm:$0xff]  }
 0x5cd   : > { %6382 = vmatpush1.bf16.msra.mxu0 %v11932_v43  ;;  %v12018_v43 = vld [vmem:[%s15708_s4 + $0xda4] ss:$16 sps:$4 sm:$0xff]  }
 0x5ce   : > { %6468 = vmatpush1.bf16.msra.mxu1 %v11935_v45  ;;  %7120 = vmatprep.subr.bf16.mxu0 %v11940_v3  ;;  %v12021_v45 = vld [vmem:[%s15708_s4 + $0xdac] ss:$16 sps:$4 sm:$0xff]   ;;  %v12016_v3 = vld [vmem:[%s15708_s4 + $0xda0] ss:$16 sps:$4 sm:$0xff]  }
 0x5cf   : > { %7206 = vmatprep.subr.bf16.mxu1 %v11943_v50  ;;  %v12019_v50 = vld [vmem:[%s15708_s4 + $0xda8] ss:$16 sps:$4 sm:$0xff]  }
 0x5d0   : > { %6384 = vmatmul.mubr.bf16.vlgmr.msra.gmra.mrb[40].mxu0 %v13418_v54 }
 0x5d1   : > { %6470 = vmatmul.mubr.bf16.vlgmr.msra.gmra.mrb[44].mxu1 %v13418_v54  ;;  %7121 = vmatpush1.bf16.msra.mxu0 %v11938_v51  ;;  %v11955_v54 = vld [vmem:[%s15708_s4 + $0xc4c] ss:$16 sps:$4 sm:$0xff]   ;;  %v12024_v51 = vld [vmem:[%s15708_s4 + $0xdc4] ss:$16 sps:$4 sm:$0xff]  }
 0x5d2   : > { %7152 = vmatprep.mubr.bf16.mxu0 %v13424_v55  ;;  %7207 = vmatpush1.bf16.msra.mxu1 %v11941_v52  ;;  %v12027_v52 = vld [vmem:[%s15708_s4 + $0xdcc] ss:$16 sps:$4 sm:$0xff]  }
 0x5d3   : > { %7238 = vmatprep.mubr.bf16.mxu1 %v13424_v55  ;;  %7122 = vmatprep.subr.bf16.mxu0 %v11946_v0  ;;  %v11958_v55 = vld [vmem:[%s15708_s4 + $0xc64] ss:$16 sps:$4 sm:$0xff]   ;;  %v12022_v0 = vld [vmem:[%s15708_s4 + $0xdc0] ss:$16 sps:$4 sm:$0xff]  }
 0x5d4   : > { %7208 = vmatprep.subr.bf16.mxu1 %v11949_v11  ;;  %v12025_v11 = vld [vmem:[%s15708_s4 + $0xdc8] ss:$16 sps:$4 sm:$0xff]  }
 0x5d5   : > { %7123 = vmatpush1.bf16.msra.mxu0 %v11944_v20  ;;  %v12030_v20 = vld [vmem:[%s15708_s4 + $0xde4] ss:$16 sps:$4 sm:$0xff]  }
 0x5d6   : > { %7209 = vmatpush1.bf16.msra.mxu1 %v11947_v53  ;;  %7124 = vmatprep.subr.bf16.mxu0 %v11952_v25  ;;  %v12033_v53 = vld [vmem:[%s15708_s4 + $0xdec] ss:$16 sps:$4 sm:$0xff]   ;;  %v12028_v25 = vld [vmem:[%s15708_s4 + $0xde0] ss:$16 sps:$4 sm:$0xff]  }
 0x5d7   : > { %7210 = vmatprep.subr.bf16.mxu1 %v11955_v54  ;;  %v12031_v54 = vld [vmem:[%s15708_s4 + $0xde8] ss:$16 sps:$4 sm:$0xff]  }
 0x5d9   : > { %7125 = vmatpush1.bf16.msra.mxu0 %v11950_v16  ;;  %v12036_v16 = vld [vmem:[%s15708_s4 + $0xe04] ss:$16 sps:$4 sm:$0xff]  }
 0x5da   : > { %7211 = vmatpush1.bf16.msra.mxu1 %v11953_v60  ;;  %7126 = vmatprep.subr.bf16.mxu0 %v11958_v55  ;;  %v12039_v60 = vld [vmem:[%s15708_s4 + $0xe0c] ss:$16 sps:$4 sm:$0xff]   ;;  %v12034_v55 = vld [vmem:[%s15708_s4 + $0xe00] ss:$16 sps:$4 sm:$0xff]  }
 0x5db   : > { %7212 = vmatprep.subr.bf16.mxu1 %v11961_v46  ;;  %v12037_v46 = vld [vmem:[%s15708_s4 + $0xe08] ss:$16 sps:$4 sm:$0xff]  }
 0x5dd   : > { %7127 = vmatpush1.bf16.msra.mxu0 %v11956_v57  ;;  %v12042_v57 = vld [vmem:[%s15708_s4 + $0xe24] ss:$16 sps:$4 sm:$0xff]  }
 0x5de   : > { %7213 = vmatpush1.bf16.msra.mxu1 %v11959_v22  ;;  %7128 = vmatprep.subr.bf16.mxu0 %v11964_v58  ;;  %v12045_v22 = vld [vmem:[%s15708_s4 + $0xe2c] ss:$16 sps:$4 sm:$0xff]   ;;  %v12040_v58 = vld [vmem:[%s15708_s4 + $0xe20] ss:$16 sps:$4 sm:$0xff]  }
 0x5df   : > { %7214 = vmatprep.subr.bf16.mxu1 %v11967_v59  ;;  %v12043_v59 = vld [vmem:[%s15708_s4 + $0xe28] ss:$16 sps:$4 sm:$0xff]  }
 0x5e1   : > { %7129 = vmatpush1.bf16.msra.mxu0 %v11962_v37  ;;  %v12048_v37 = vld [vmem:[%s15708_s4 + $0xe44] ss:$16 sps:$4 sm:$0xff]  }
 0x5e2   : > { %7215 = vmatpush1.bf16.msra.mxu1 %v11965_v17  ;;  %7130 = vmatprep.subr.bf16.mxu0 %v11970_v30  ;;  %v5076_v17 = vlaneseq  ;;  %v12046_v30 = vld [vmem:[%s15708_s4 + $0xe40] ss:$16 sps:$4 sm:$0xff]  }
 0x5e3   : > { %7216 = vmatprep.subr.bf16.mxu1 %v11973_v61  ;;  %v12049_v61 = vld [vmem:[%s15708_s4 + $0xe48] ss:$16 sps:$4 sm:$0xff]  }
 0x5e5   : > { %7131 = vmatpush1.bf16.msra.mxu0 %v11968_v63  ;;  %v5077_v63 = vshrl.u32 %v5076_v17, 7 }
 0x5e6   : > { %7217 = vmatpush1.bf16.msra.mxu1 %v11971_v4  ;;  %7132 = vmatprep.subr.bf16.mxu0 %v11976_v5  ;;  %v12057_v4 = vld [vmem:[%s15708_s4 + $0xe6c] ss:$16 sps:$4 sm:$0xff]   ;;  %v12052_v5 = vld [vmem:[%s15708_s4 + $0xe60] ss:$16 sps:$4 sm:$0xff]  }
 0x5e7   : > { %7218 = vmatprep.subr.bf16.mxu1 %v11979_v27  ;;  %v5086_v27 = vsub.s32 2, %v5077_v63 }
 0x5e9   : > { %7133 = vmatpush1.bf16.msra.mxu0 %v11974_v6  ;;  %v12055_v6 = vld [vmem:[%s15708_s4 + $0xe68] ss:$16 sps:$4 sm:$0xff]  }
 0x5ea   : > { %7219 = vmatpush1.bf16.msra.mxu1 %v11977_v7  ;;  %7134 = vmatprep.subr.bf16.mxu0 %v11982_v8  ;;  %v5078_v7 = vsub.s32 0, %v5077_v63  ;;  %v12060_v8 = vld [vmem:[%s15708_s4 + $0xe84] ss:$16 sps:$4 sm:$0xff]  }
 0x5eb   : > { %7220 = vmatprep.subr.bf16.mxu1 %v11985_v9  ;;  %v5090_v9 = vsub.s32 3, %v5077_v63 }
 0x5ed   : > { %7135 = vmatpush1.bf16.msra.mxu0 %v11980_v40  ;;  %v5074_v40 = vld [vmem:[%s15710_s6] sm:$0xf] }
 0x5ee   : > { %7221 = vmatpush1.bf16.msra.mxu1 %v11983_v10  ;;  %7136 = vmatprep.subr.bf16.mxu0 %v11988_v12  ;;  %v5082_v10 = vsub.s32 1, %v5077_v63  ;;  %v12063_v12 = vld [vmem:[%s15708_s4 + $0xe8c] ss:$16 sps:$4 sm:$0xff]   ;;  %v12079_v63 = vld [vmem:[%s15708_s4 + $0xee8] ss:$16 sps:$4 sm:$0xff]  }
 0x5ef   : > { %7222 = vmatprep.subr.bf16.mxu1 %v11991_v42  ;;  %v12058_v42 = vld [vmem:[%s15708_s4 + $0xe80] ss:$16 sps:$4 sm:$0xff]  }
 0x5f1   : > { %7137 = vmatpush1.bf16.msra.mxu0 %v11986_v14  ;;  %v14900_v14 = vrot.slane %v5074_v40, %v5086_v27  ;;  %v12082_v27 = vld [vmem:[%s15708_s4 + $0xf00] ss:$16 sps:$4 sm:$0xff]  }
 0x5f2   : > { %7223 = vmatpush1.bf16.msra.mxu1 %v11989_v29  ;;  %7138 = vmatprep.subr.bf16.mxu0 %v11994_v18  ;;  %v14902_v29 = vrot.slane %v5074_v40, %v5078_v7  ;;  %v12061_v18 = vld [vmem:[%s15708_s4 + $0xe88] ss:$16 sps:$4 sm:$0xff]   ;;  %v12090_v7 = vld [vmem:[%s15708_s4 + $0xf24] ss:$16 sps:$4 sm:$0xff]  }
 0x5f3   : > { %7224 = vmatprep.subr.bf16.mxu1 %v11997_v19  ;;  %v14907_v19 = vrot.slane %v5074_v40, %v5090_v9  ;;  %v12088_v9 = vld [vmem:[%s15708_s4 + $0xf20] ss:$16 sps:$4 sm:$0xff]  }
 0x5f5   : > { %7139 = vmatpush1.bf16.msra.mxu0 %v11992_v21  ;;  %v12066_v21 = vld [vmem:[%s15708_s4 + $0xea4] ss:$16 sps:$4 sm:$0xff]  }
 0x5f6   : > { %7225 = vmatpush1.bf16.msra.mxu1 %v11995_v23  ;;  %7140 = vmatprep.subr.bf16.mxu0 %v12000_v26  ;;  %v14912_v26 = vrot.slane %v5074_v40, %v5082_v10  ;;  %v12091_v40 = vld [vmem:[%s15708_s4 + $0xf28] ss:$16 sps:$4 sm:$0xff]   ;;  %v12096_v10 = vld [vmem:[%s15708_s4 + $0xf44] ss:$16 sps:$4 sm:$0xff]  }
 0x5f7   : > { %7226 = vmatprep.subr.bf16.mxu1 %v12003_v28  ;;  %v12069_v28 = vld [vmem:[%s15708_s4 + $0xeac] ss:$16 sps:$4 sm:$0xff]  }
 0x5f9   : > { %7141 = vmatpush1.bf16.msra.mxu0 %v11998_v48 }
 0x5fa   : > { %7227 = vmatpush1.bf16.msra.mxu1 %v12001_v1  ;;  %7142 = vmatprep.subr.bf16.mxu0 %v12006_v32 }
 0x5fb   : > { %7228 = vmatprep.subr.bf16.mxu1 %v12009_v33 }
 0x5fd   : > { %7143 = vmatpush1.bf16.msra.mxu0 %v12004_v34  ;;  %v12064_v34 = vld [vmem:[%s15708_s4 + $0xea0] ss:$16 sps:$4 sm:$0xff]  }
 0x5fe   : > { %7229 = vmatpush1.bf16.msra.mxu1 %v12007_v35  ;;  %7144 = vmatprep.subr.bf16.mxu0 %v12012_v38 }
 0x5ff   : > { %7230 = vmatprep.subr.bf16.mxu1 %v12015_v36  ;;  %v12067_v36 = vld [vmem:[%s15708_s4 + $0xea8] ss:$16 sps:$4 sm:$0xff]  }
 0x601   : > { %7145 = vmatpush1.bf16.msra.mxu0 %v12010_v62  ;;  %v12072_v62 = vld [vmem:[%s15708_s4 + $0xec4] ss:$16 sps:$4 sm:$0xff]  }
 0x602   : > { %7231 = vmatpush1.bf16.msra.mxu1 %v12013_v31  ;;  %7146 = vmatprep.subr.bf16.mxu0 %v12018_v43 }
 0x603   : > { %7232 = vmatprep.subr.bf16.mxu1 %v12021_v45  ;;  %v12075_v45 = vld [vmem:[%s15708_s4 + $0xecc] ss:$16 sps:$4 sm:$0xff]  }
 0x605   : > { %7147 = vmatpush1.bf16.msra.mxu0 %v12016_v3 }
 0x606   : > { %7233 = vmatpush1.bf16.msra.mxu1 %v12019_v50  ;;  %7148 = vmatprep.subr.bf16.mxu0 %v12024_v51 }
 0x607   : > { %7234 = vmatprep.subr.bf16.mxu1 %v12027_v52 }
 0x609   : > { %7149 = vmatpush1.bf16.msra.mxu0 %v12022_v0 }
 0x60a   : > { %7235 = vmatpush1.bf16.msra.mxu1 %v12025_v11  ;;  %7150 = vmatprep.subr.bf16.mxu0 %v12030_v20 }
 0x60b   : > { %7236 = vmatprep.subr.bf16.mxu1 %v12033_v53  ;;  %v12070_v53 = vld [vmem:[%s15708_s4 + $0xec0] ss:$16 sps:$4 sm:$0xff]  }
 0x60d   : > { %7151 = vmatpush1.bf16.msra.mxu0 %v12028_v25  ;;  %v12073_v25 = vld [vmem:[%s15708_s4 + $0xec8] ss:$16 sps:$4 sm:$0xff]  }
 0x60e   : > { %7237 = vmatpush1.bf16.msra.mxu1 %v12031_v54  ;;  %7163 = vmatprep.subr.bf16.mxu0 %v12036_v16 }
 0x60f   : > { %7249 = vmatprep.subr.bf16.mxu1 %v12039_v60 }
 0x610   : > { %7153 = vmatmul.mubr.bf16.vlgmr.msra.gmra.mrb[40].mxu0 %v13619_v41 }
 0x611   : > { %7239 = vmatmul.mubr.bf16.vlgmr.msra.gmra.mrb[44].mxu1 %v13619_v41  ;;  %7164 = vmatpush1.bf16.msra.mxu0 %v12034_v55  ;;  %v12051_v41 = vld [vmem:[%s15708_s4 + $0xe4c] ss:$16 sps:$4 sm:$0xff]  }
 0x612   : > { %7195 = vmatprep.mubr.bf16.mxu0 %v13629_v44  ;;  %7250 = vmatpush1.bf16.msra.mxu1 %v12037_v46  ;;  %v12078_v46 = vld [vmem:[%s15708_s4 + $0xee4] ss:$16 sps:$4 sm:$0xff]  }
 0x613   : > { %7281 = vmatprep.mubr.bf16.mxu1 %v13629_v44  ;;  %7165 = vmatprep.subr.bf16.mxu0 %v12042_v57  ;;  %v12054_v44 = vld [vmem:[%s15708_s4 + $0xe64] ss:$16 sps:$4 sm:$0xff]  }
 0x614   : > { %7251 = vmatprep.subr.bf16.mxu1 %v12045_v22 }
 0x615   : > { %7166 = vmatpush1.bf16.msra.mxu0 %v12040_v58 }
 0x616   : > { %7252 = vmatpush1.bf16.msra.mxu1 %v12043_v59  ;;  %7167 = vmatprep.subr.bf16.mxu0 %v12048_v37  ;;  %v12081_v59 = vld [vmem:[%s15708_s4 + $0xeec] ss:$16 sps:$4 sm:$0xff]  }
 0x617   : > { %7253 = vmatprep.subr.bf16.mxu1 %v12051_v41 }
 0x619   : > { %7168 = vmatpush1.bf16.msra.mxu0 %v12046_v30 }
 0x61a   : > { %7254 = vmatpush1.bf16.msra.mxu1 %v12049_v61  ;;  %7169 = vmatprep.subr.bf16.mxu0 %v12054_v44  ;;  %v12076_v61 = vld [vmem:[%s15708_s4 + $0xee0] ss:$16 sps:$4 sm:$0xff]  }
 0x61b   : > { %7255 = vmatprep.subr.bf16.mxu1 %v12057_v4  ;;  %v12084_v4 = vld [vmem:[%s15708_s4 + $0xf04] ss:$16 sps:$4 sm:$0xff]  }
 0x61d   : > { %7170 = vmatpush1.bf16.msra.mxu0 %v12052_v5  ;;  %v12087_v5 = vld [vmem:[%s15708_s4 + $0xf0c] ss:$16 sps:$4 sm:$0xff]  }
 0x61e   : > { %7256 = vmatpush1.bf16.msra.mxu1 %v12055_v6  ;;  %7171 = vmatprep.subr.bf16.mxu0 %v12060_v8  ;;  %v12085_v6 = vld [vmem:[%s15708_s4 + $0xf08] ss:$16 sps:$4 sm:$0xff]   ;;  %v12093_v8 = vld [vmem:[%s15708_s4 + $0xf2c] ss:$16 sps:$4 sm:$0xff]  }
 0x61f   : > { %v5179_v23 = vpop.f32.mrb[36].mxu0  ;;  %7257 = vmatprep.subr.bf16.mxu1 %v12063_v12  ;;  %v12099_v12 = vld [vmem:[%s15708_s4 + $0xf4c] ss:$16 sps:$4 sm:$0xff]  }
 0x620   : > { %v5181_v48 = vpop.f32.mrb[37].mxu0  ;;  %v5250_v1 = vpop.f32.mrb[40].mxu1  ;;  %v5180_v35 = vadd.f32 %v5179_v23, %v14902_v29  ;;  %v12105_v23 = vld [vmem:[%s15708_s4 + $0xf6c] ss:$16 sps:$4 sm:$0xff]  }
 0x621   : > { %v5251_v32 = vadd.f32 %v5250_v1, %v14900_v14  ;;  %7172 = vmatpush1.bf16.msra.mxu0 %v12058_v42  ;;  %v5252_v33 = vpop.f32.mrb[41].mxu1  ;;  %v5182_v31 = vadd.f32 %v5181_v48, %v14912_v26  ;;  %v12094_v42 = vld [vmem:[%s15708_s4 + $0xf40] ss:$16 sps:$4 sm:$0xff]   ;;  %v12103_v48 = vld [vmem:[%s15708_s4 + $0xf68] ss:$16 sps:$4 sm:$0xff]  }
 0x622   : > { %7258 = vmatpush1.bf16.msra.mxu1 %v12061_v18  ;;  %v5253_v38 = vadd.f32 %v5252_v33, %v14907_v19  ;;  %7173 = vmatprep.subr.bf16.mxu0 %v12066_v21  ;;  %v5255_v54 = vmax.f32 %v5180_v35, 0.0  ;;  %v12097_v18 = vld [vmem:[%s15708_s4 + $0xf48] ss:$16 sps:$4 sm:$0xff]   ;;  %v12102_v21 = vld [vmem:[%s15708_s4 + $0xf64] ss:$16 sps:$4 sm:$0xff]  }
 0x623   : > { %v5330_v43 = vpop.f32.mrb[38].mxu0  ;;  %7259 = vmatprep.subr.bf16.mxu1 %v12069_v28  ;;  %v5257_v52 = vmax.f32 %v5251_v32, 0.0  ;;  %v5256_v57 = vmax.f32 %v5182_v31, 0.0  ;;  %v12100_v28 = vld [vmem:[%s15708_s4 + $0xf60] ss:$16 sps:$4 sm:$0xff]  }
 0x624   : > { %v5331_v3 = vadd.f32 %v5330_v43, %v14902_v29  ;;  %v5401_v50 = vpop.f32.mrb[42].mxu1  ;;  %v5332_v51 = vpop.f32.mrb[39].mxu0  ;;  %v5258_v16 = vmax.f32 %v5253_v38, 0.0  ;;  %v12108_v1 = vld [vmem:[%s15708_s4 + $0xf84] ss:$16 sps:$4 sm:$0xff]  }
 0x625   : > { %v5402_v0 = vadd.f32 %v5401_v50, %v14900_v14  ;;  %v5333_v11 = vadd.f32 %v5332_v51, %v14912_v26  ;;  %v5403_v20 = vpop.f32.mrb[43].mxu1  ;;  %7174 = vmatpush1.bf16.msra.mxu0 %v12064_v34  ;;  %v12111_v32 = vld [vmem:[%s15708_s4 + $0xf8c] ss:$16 sps:$4 sm:$0xff]   ;;  %v12106_v33 = vld [vmem:[%s15708_s4 + $0xf80] ss:$16 sps:$4 sm:$0xff]  }
 0x626   : > { %v5406_v60 = vmax.f32 %v5331_v3, 0.0  ;;  %v5404_v55 = vadd.f32 %v5403_v20, %v14907_v19  ;;  %7260 = vmatpush1.bf16.msra.mxu1 %v12067_v36  ;;  %7175 = vmatprep.subr.bf16.mxu0 %v12072_v62  ;;  %v12109_v34 = vld [vmem:[%s15708_s4 + $0xf88] ss:$16 sps:$4 sm:$0xff]   ;;  %v12114_v35 = vld [vmem:[%s15708_s4 + $0xfa4] ss:$16 sps:$4 sm:$0xff]  }
 0x627   : > { %v5408_v22 = vmax.f32 %v5402_v0, 0.0  ;;  %v5407_v58 = vmax.f32 %v5333_v11, 0.0  ;;  %7261 = vmatprep.subr.bf16.mxu1 %v12075_v45  ;;  %v12117_v38 = vld [vmem:[%s15708_s4 + $0xfac] ss:$16 sps:$4 sm:$0xff]   ;;  %v12112_v36 = vld [vmem:[%s15708_s4 + $0xfa0] ss:$16 sps:$4 sm:$0xff]  }
 0x628   : > { %v14949_v37 = vmax.f32 %v5255_v54, %v5406_v60  ;;  %v5409_v17 = vmax.f32 %v5404_v55, 0.0  ;;  %v12115_v62 = vld [vmem:[%s15708_s4 + $0xfa8] ss:$16 sps:$4 sm:$0xff]   ;;  %v12120_v31 = vld [vmem:[%s15708_s4 + $0xfc4] ss:$16 sps:$4 sm:$0xff]  }
 0x629   : > { %v14951_v41 = vmax.f32 %v5257_v52, %v5408_v22  ;;  %v14953_v30 = vmax.f32 %v5256_v57, %v5407_v58  ;;  %7176 = vmatpush1.bf16.msra.mxu0 %v12070_v53  ;;  %v12123_v43 = vld [vmem:[%s15708_s4 + $0xfcc] ss:$16 sps:$4 sm:$0xff]   ;;  %v12118_v45 = vld [vmem:[%s15708_s4 + $0xfc0] ss:$16 sps:$4 sm:$0xff]   ;;  %v12121_v3 = vld [vmem:[%s15708_s4 + $0xfc8] ss:$16 sps:$4 sm:$0xff]  }
 0x62a   : > { %v14958_v44 = vmax.f32 %v5258_v16, %v5409_v17  ;;  %7262 = vmatpush1.bf16.msra.mxu1 %v12073_v25  ;;  %7177 = vmatprep.subr.bf16.mxu0 %v12078_v46  ;;  %v12126_v50 = vld [vmem:[%s15708_s4 + $0xfe4] ss:$16 sps:$4 sm:$0xff]   ;;  %v12129_v51 = vld [vmem:[%s15708_s4 + $0xfec] ss:$16 sps:$4 sm:$0xff]   ;;  %v12124_v52 = vld [vmem:[%s15708_s4 + $0xfe0] ss:$16 sps:$4 sm:$0xff]  }
 0x62b   : > { %7263 = vmatprep.subr.bf16.mxu1 %v12081_v59  ;;  %v12127_v0 = vld [vmem:[%s15708_s4 + $0xfe8] ss:$16 sps:$4 sm:$0xff]   ;;  %v12132_v11 = vld [vmem:[%s15708_s4 + $0x1404] ss:$16 sps:$4 sm:$0xff]   ;;  %v12135_v20 = vld [vmem:[%s15708_s4 + $0x140c] ss:$16 sps:$4 sm:$0xff]  }
 0x62c   : > { %v12130_v53 = vld [vmem:[%s15708_s4 + $0x1400] ss:$16 sps:$4 sm:$0xff]   ;;  %v12133_v25 = vld [vmem:[%s15708_s4 + $0x1408] ss:$16 sps:$4 sm:$0xff]   ;;  %v12138_v54 = vld [vmem:[%s15708_s4 + $0x1424] ss:$16 sps:$4 sm:$0xff]  }
 0x62d   : > { %7178 = vmatpush1.bf16.msra.mxu0 %v12076_v61  ;;  %v12141_v16 = vld [vmem:[%s15708_s4 + $0x142c] ss:$16 sps:$4 sm:$0xff]   ;;  %v12136_v60 = vld [vmem:[%s15708_s4 + $0x1420] ss:$16 sps:$4 sm:$0xff]   ;;  %v12139_v55 = vld [vmem:[%s15708_s4 + $0x1428] ss:$16 sps:$4 sm:$0xff]  }
 0x62e   : > { %7264 = vmatpush1.bf16.msra.mxu1 %v12079_v63  ;;  %7179 = vmatprep.subr.bf16.mxu0 %v12084_v4  ;;  %v12144_v46 = vld [vmem:[%s15708_s4 + $0x1444] ss:$16 sps:$4 sm:$0xff]   ;;  %v12142_v57 = vld [vmem:[%s15708_s4 + $0x1440] ss:$16 sps:$4 sm:$0xff]   ;;  %v12145_v22 = vld [vmem:[%s15708_s4 + $0x1448] ss:$16 sps:$4 sm:$0xff]  }
 0x62f   : > { %7265 = vmatprep.subr.bf16.mxu1 %v12087_v5  ;;  %v12153_v58 = vld [vmem:[%s15708_s4 + $0x146c] ss:$16 sps:$4 sm:$0xff]   ;;  %v12148_v59 = vld [vmem:[%s15708_s4 + $0x1460] ss:$16 sps:$4 sm:$0xff]   ;;  %v12151_v17 = vld [vmem:[%s15708_s4 + $0x1468] ss:$16 sps:$4 sm:$0xff]  }
 0x630   : > { %v12156_v61 = vld [vmem:[%s15708_s4 + $0x1484] ss:$16 sps:$4 sm:$0xff]   ;;  %v12159_v63 = vld [vmem:[%s15708_s4 + $0x148c] ss:$16 sps:$4 sm:$0xff]   ;;  %v12154_v4 = vld [vmem:[%s15708_s4 + $0x1480] ss:$16 sps:$4 sm:$0xff]  }
 0x631   : > { %7180 = vmatpush1.bf16.msra.mxu0 %v12082_v27  ;;  %v12157_v5 = vld [vmem:[%s15708_s4 + $0x1488] ss:$16 sps:$4 sm:$0xff]   ;;  %v12162_v27 = vld [vmem:[%s15708_s4 + $0x14a4] ss:$16 sps:$4 sm:$0xff]  }
 0x632   : > { %7266 = vmatpush1.bf16.msra.mxu1 %v12085_v6  ;;  %7181 = vmatprep.subr.bf16.mxu0 %v12090_v7  ;;  %v12165_v6 = vld [vmem:[%s15708_s4 + $0x14ac] ss:$16 sps:$4 sm:$0xff]   ;;  %v12160_v7 = vld [vmem:[%s15708_s4 + $0x14a0] ss:$16 sps:$4 sm:$0xff]  }
 0x633   : > { %7267 = vmatprep.subr.bf16.mxu1 %v12093_v8  ;;  %v12163_v8 = vld [vmem:[%s15708_s4 + $0x14a8] ss:$16 sps:$4 sm:$0xff]  }
 0x635   : > { %7182 = vmatpush1.bf16.msra.mxu0 %v12088_v9  ;;  %v12168_v9 = vld [vmem:[%s15708_s4 + $0x14c4] ss:$16 sps:$4 sm:$0xff]  }
 0x636   : > { %7268 = vmatpush1.bf16.msra.mxu1 %v12091_v40  ;;  %7183 = vmatprep.subr.bf16.mxu0 %v12096_v10  ;;  %v12171_v40 = vld [vmem:[%s15708_s4 + $0x14cc] ss:$16 sps:$4 sm:$0xff]   ;;  %v12166_v10 = vld [vmem:[%s15708_s4 + $0x14c0] ss:$16 sps:$4 sm:$0xff]  }
 0x637   : > { %7269 = vmatprep.subr.bf16.mxu1 %v12099_v12  ;;  %v12169_v12 = vld [vmem:[%s15708_s4 + $0x14c8] ss:$16 sps:$4 sm:$0xff]  }
 0x639   : > { %7184 = vmatpush1.bf16.msra.mxu0 %v12094_v42  ;;  %v12174_v42 = vld [vmem:[%s15708_s4 + $0x14e4] ss:$16 sps:$4 sm:$0xff]  }
 0x63a   : > { %7270 = vmatpush1.bf16.msra.mxu1 %v12097_v18  ;;  %7185 = vmatprep.subr.bf16.mxu0 %v12102_v21  ;;  %v12177_v18 = vld [vmem:[%s15708_s4 + $0x14ec] ss:$16 sps:$4 sm:$0xff]   ;;  %v12172_v21 = vld [vmem:[%s15708_s4 + $0x14e0] ss:$16 sps:$4 sm:$0xff]  }
 0x63b   : > { %7271 = vmatprep.subr.bf16.mxu1 %v12105_v23  ;;  %v12175_v23 = vld [vmem:[%s15708_s4 + $0x14e8] ss:$16 sps:$4 sm:$0xff]  }
 0x63d   : > { %7186 = vmatpush1.bf16.msra.mxu0 %v12100_v28  ;;  %v12180_v28 = vld [vmem:[%s15708_s4 + $0x1504] ss:$16 sps:$4 sm:$0xff]  }
 0x63e   : > { %7272 = vmatpush1.bf16.msra.mxu1 %v12103_v48  ;;  %7187 = vmatprep.subr.bf16.mxu0 %v12108_v1  ;;  %v12183_v48 = vld [vmem:[%s15708_s4 + $0x150c] ss:$16 sps:$4 sm:$0xff]   ;;  %v12178_v1 = vld [vmem:[%s15708_s4 + $0x1500] ss:$16 sps:$4 sm:$0xff]  }
 0x63f   : > { %7273 = vmatprep.subr.bf16.mxu1 %v12111_v32  ;;  %v12181_v32 = vld [vmem:[%s15708_s4 + $0x1508] ss:$16 sps:$4 sm:$0xff]  }
 0x641   : > { %7188 = vmatpush1.bf16.msra.mxu0 %v12106_v33  ;;  %v12186_v33 = vld [vmem:[%s15708_s4 + $0x1524] ss:$16 sps:$4 sm:$0xff]  }
 0x642   : > { %7274 = vmatpush1.bf16.msra.mxu1 %v12109_v34  ;;  %7189 = vmatprep.subr.bf16.mxu0 %v12114_v35  ;;  %v12189_v34 = vld [vmem:[%s15708_s4 + $0x152c] ss:$16 sps:$4 sm:$0xff]   ;;  %v12184_v35 = vld [vmem:[%s15708_s4 + $0x1520] ss:$16 sps:$4 sm:$0xff]  }
 0x643   : > { %7275 = vmatprep.subr.bf16.mxu1 %v12117_v38  ;;  %v12187_v38 = vld [vmem:[%s15708_s4 + $0x1528] ss:$16 sps:$4 sm:$0xff]  }
 0x645   : > { %7190 = vmatpush1.bf16.msra.mxu0 %v12112_v36  ;;  %v12192_v36 = vld [vmem:[%s15708_s4 + $0x1544] ss:$16 sps:$4 sm:$0xff]  }
 0x646   : > { %7276 = vmatpush1.bf16.msra.mxu1 %v12115_v62  ;;  %7191 = vmatprep.subr.bf16.mxu0 %v12120_v31  ;;  %v12195_v62 = vld [vmem:[%s15708_s4 + $0x154c] ss:$16 sps:$4 sm:$0xff]   ;;  %v12190_v31 = vld [vmem:[%s15708_s4 + $0x1540] ss:$16 sps:$4 sm:$0xff]  }
 0x647   : > { %7277 = vmatprep.subr.bf16.mxu1 %v12123_v43  ;;  %v12193_v43 = vld [vmem:[%s15708_s4 + $0x1548] ss:$16 sps:$4 sm:$0xff]  }
 0x649   : > { %7192 = vmatpush1.bf16.msra.mxu0 %v12118_v45  ;;  %v12198_v45 = vld [vmem:[%s15708_s4 + $0x1564] ss:$16 sps:$4 sm:$0xff]  }
 0x64a   : > { %7278 = vmatpush1.bf16.msra.mxu1 %v12121_v3  ;;  %7193 = vmatprep.subr.bf16.mxu0 %v12126_v50  ;;  %v12201_v3 = vld [vmem:[%s15708_s4 + $0x156c] ss:$16 sps:$4 sm:$0xff]   ;;  %v12196_v50 = vld [vmem:[%s15708_s4 + $0x1560] ss:$16 sps:$4 sm:$0xff]  }
 0x64b   : > { %7279 = vmatprep.subr.bf16.mxu1 %v12129_v51  ;;  %v12199_v51 = vld [vmem:[%s15708_s4 + $0x1568] ss:$16 sps:$4 sm:$0xff]  }
 0x64d   : > { %7194 = vmatpush1.bf16.msra.mxu0 %v12124_v52  ;;  %v12204_v52 = vld [vmem:[%s15708_s4 + $0x1584] ss:$16 sps:$4 sm:$0xff]  }
 0x64e   : > { %7280 = vmatpush1.bf16.msra.mxu1 %v12127_v0  ;;  %8061 = vmatprep.subr.bf16.mxu0 %v12132_v11  ;;  %v12207_v0 = vld [vmem:[%s15708_s4 + $0x158c] ss:$16 sps:$4 sm:$0xff]   ;;  %v12202_v11 = vld [vmem:[%s15708_s4 + $0x1580] ss:$16 sps:$4 sm:$0xff]  }
 0x64f   : > { %8147 = vmatprep.subr.bf16.mxu1 %v12135_v20  ;;  %v12205_v20 = vld [vmem:[%s15708_s4 + $0x1588] ss:$16 sps:$4 sm:$0xff]  }
 0x650   : > { %7196 = vmatmul.mubr.bf16.vlgmr.msra.gmra.mrb[40].mxu0 %v13820_v13 }
 0x651   : > { %7282 = vmatmul.mubr.bf16.vlgmr.msra.gmra.mrb[44].mxu1 %v13820_v13  ;;  %8062 = vmatpush1.bf16.msra.mxu0 %v12130_v53  ;;  %v12147_v13 = vld [vmem:[%s15708_s4 + $0x144c] ss:$16 sps:$4 sm:$0xff]   ;;  %v12210_v53 = vld [vmem:[%s15708_s4 + $0x15a4] ss:$16 sps:$4 sm:$0xff]  }
 0x652   : > { %8093 = vmatprep.mubr.bf16.mxu0 %v13829_v15  ;;  %8148 = vmatpush1.bf16.msra.mxu1 %v12133_v25  ;;  %v12213_v25 = vld [vmem:[%s15708_s4 + $0x15ac] ss:$16 sps:$4 sm:$0xff]  }
 0x653   : > { %8179 = vmatprep.mubr.bf16.mxu1 %v13829_v15  ;;  %8063 = vmatprep.subr.bf16.mxu0 %v12138_v54  ;;  %v12150_v15 = vld [vmem:[%s15708_s4 + $0x1464] ss:$16 sps:$4 sm:$0xff]   ;;  %v12208_v54 = vld [vmem:[%s15708_s4 + $0x15a0] ss:$16 sps:$4 sm:$0xff]  }
 0x654   : > { %8149 = vmatprep.subr.bf16.mxu1 %v12141_v16  ;;  %v12211_v16 = vld [vmem:[%s15708_s4 + $0x15a8] ss:$16 sps:$4 sm:$0xff]  }
 0x655   : > { %8064 = vmatpush1.bf16.msra.mxu0 %v12136_v60  ;;  %v12216_v60 = vld [vmem:[%s15708_s4 + $0x15c4] ss:$16 sps:$4 sm:$0xff]  }
 0x656   : > { %8150 = vmatpush1.bf16.msra.mxu1 %v12139_v55  ;;  %8065 = vmatprep.subr.bf16.mxu0 %v12144_v46  ;;  %v12219_v55 = vld [vmem:[%s15708_s4 + $0x15cc] ss:$16 sps:$4 sm:$0xff]   ;;  %v12214_v46 = vld [vmem:[%s15708_s4 + $0x15c0] ss:$16 sps:$4 sm:$0xff]  }
 0x657   : > { %8151 = vmatprep.subr.bf16.mxu1 %v12147_v13  ;;  %v12217_v13 = vld [vmem:[%s15708_s4 + $0x15c8] ss:$16 sps:$4 sm:$0xff]  }
 0x659   : > { %8066 = vmatpush1.bf16.msra.mxu0 %v12142_v57  ;;  %v12222_v57 = vld [vmem:[%s15708_s4 + $0x15e4] ss:$16 sps:$4 sm:$0xff]  }
 0x65a   : > { %8152 = vmatpush1.bf16.msra.mxu1 %v12145_v22  ;;  %8067 = vmatprep.subr.bf16.mxu0 %v12150_v15  ;;  %v12225_v22 = vld [vmem:[%s15708_s4 + $0x15ec] ss:$16 sps:$4 sm:$0xff]   ;;  %v12220_v15 = vld [vmem:[%s15708_s4 + $0x15e0] ss:$16 sps:$4 sm:$0xff]  }
 0x65b   : > { %8153 = vmatprep.subr.bf16.mxu1 %v12153_v58  ;;  %v12223_v58 = vld [vmem:[%s15708_s4 + $0x15e8] ss:$16 sps:$4 sm:$0xff]  }
 0x65d   : > { %8068 = vmatpush1.bf16.msra.mxu0 %v12148_v59  ;;  %v12228_v59 = vld [vmem:[%s15708_s4 + $0x1604] ss:$16 sps:$4 sm:$0xff]  }
 0x65e   : > { %8154 = vmatpush1.bf16.msra.mxu1 %v12151_v17  ;;  %8069 = vmatprep.subr.bf16.mxu0 %v12156_v61  ;;  %v12231_v17 = vld [vmem:[%s15708_s4 + $0x160c] ss:$16 sps:$4 sm:$0xff]   ;;  %v12226_v61 = vld [vmem:[%s15708_s4 + $0x1600] ss:$16 sps:$4 sm:$0xff]  }
 0x65f   : > { %8155 = vmatprep.subr.bf16.mxu1 %v12159_v63  ;;  %v12229_v63 = vld [vmem:[%s15708_s4 + $0x1608] ss:$16 sps:$4 sm:$0xff]  }
 0x661   : > { %8070 = vmatpush1.bf16.msra.mxu0 %v12154_v4  ;;  %v12234_v4 = vld [vmem:[%s15708_s4 + $0x1624] ss:$16 sps:$4 sm:$0xff]  }
 0x662   : > { %8156 = vmatpush1.bf16.msra.mxu1 %v12157_v5  ;;  %8071 = vmatprep.subr.bf16.mxu0 %v12162_v27  ;;  %v12237_v5 = vld [vmem:[%s15708_s4 + $0x162c] ss:$16 sps:$4 sm:$0xff]   ;;  %v12232_v27 = vld [vmem:[%s15708_s4 + $0x1620] ss:$16 sps:$4 sm:$0xff]  }
 0x663   : > { %8157 = vmatprep.subr.bf16.mxu1 %v12165_v6  ;;  %v12235_v6 = vld [vmem:[%s15708_s4 + $0x1628] ss:$16 sps:$4 sm:$0xff]  }
 0x665   : > { %8072 = vmatpush1.bf16.msra.mxu0 %v12160_v7  ;;  %v12240_v7 = vld [vmem:[%s15708_s4 + $0x1644] ss:$16 sps:$4 sm:$0xff]  }
 0x666   : > { %8158 = vmatpush1.bf16.msra.mxu1 %v12163_v8  ;;  %8073 = vmatprep.subr.bf16.mxu0 %v12168_v9  ;;  %v12238_v8 = vld [vmem:[%s15708_s4 + $0x1640] ss:$16 sps:$4 sm:$0xff]   ;;  %v12241_v9 = vld [vmem:[%s15708_s4 + $0x1648] ss:$16 sps:$4 sm:$0xff]  }
 0x667   : > { %8159 = vmatprep.subr.bf16.mxu1 %v12171_v40  ;;  %v12249_v40 = vld [vmem:[%s15708_s4 + $0x166c] ss:$16 sps:$4 sm:$0xff]  }
 0x669   : > { %8074 = vmatpush1.bf16.msra.mxu0 %v12166_v10  ;;  %v12244_v10 = vld [vmem:[%s15708_s4 + $0x1660] ss:$16 sps:$4 sm:$0xff]  }
 0x66a   : > { %8160 = vmatpush1.bf16.msra.mxu1 %v12169_v12  ;;  %8075 = vmatprep.subr.bf16.mxu0 %v12174_v42  ;;  %v12247_v12 = vld [vmem:[%s15708_s4 + $0x1668] ss:$16 sps:$4 sm:$0xff]   ;;  %v12252_v42 = vld [vmem:[%s15708_s4 + $0x1684] ss:$16 sps:$4 sm:$0xff]  }
 0x66b   : > { %8161 = vmatprep.subr.bf16.mxu1 %v12177_v18  ;;  %v12255_v18 = vld [vmem:[%s15708_s4 + $0x168c] ss:$16 sps:$4 sm:$0xff]  }
 0x66d   : > { %8076 = vmatpush1.bf16.msra.mxu0 %v12172_v21  ;;  %v12250_v21 = vld [vmem:[%s15708_s4 + $0x1680] ss:$16 sps:$4 sm:$0xff]  }
 0x66e   : > { %8162 = vmatpush1.bf16.msra.mxu1 %v12175_v23  ;;  %8077 = vmatprep.subr.bf16.mxu0 %v12180_v28  ;;  %v12253_v23 = vld [vmem:[%s15708_s4 + $0x1688] ss:$16 sps:$4 sm:$0xff]   ;;  %v12258_v28 = vld [vmem:[%s15708_s4 + $0x16a4] ss:$16 sps:$4 sm:$0xff]  }
 0x66f   : > { %8163 = vmatprep.subr.bf16.mxu1 %v12183_v48  ;;  %v12261_v48 = vld [vmem:[%s15708_s4 + $0x16ac] ss:$16 sps:$4 sm:$0xff]  }
 0x671   : > { %8078 = vmatpush1.bf16.msra.mxu0 %v12178_v1  ;;  %v12256_v1 = vld [vmem:[%s15708_s4 + $0x16a0] ss:$16 sps:$4 sm:$0xff]  }
 0x672   : > { %8164 = vmatpush1.bf16.msra.mxu1 %v12181_v32  ;;  %8079 = vmatprep.subr.bf16.mxu0 %v12186_v33  ;;  %v12259_v32 = vld [vmem:[%s15708_s4 + $0x16a8] ss:$16 sps:$4 sm:$0xff]   ;;  %v12264_v33 = vld [vmem:[%s15708_s4 + $0x16c4] ss:$16 sps:$4 sm:$0xff]  }
 0x673   : > { %8165 = vmatprep.subr.bf16.mxu1 %v12189_v34  ;;  %v12267_v34 = vld [vmem:[%s15708_s4 + $0x16cc] ss:$16 sps:$4 sm:$0xff]  }
 0x675   : > { %8080 = vmatpush1.bf16.msra.mxu0 %v12184_v35  ;;  %v12262_v35 = vld [vmem:[%s15708_s4 + $0x16c0] ss:$16 sps:$4 sm:$0xff]  }
 0x676   : > { %8166 = vmatpush1.bf16.msra.mxu1 %v12187_v38  ;;  %8081 = vmatprep.subr.bf16.mxu0 %v12192_v36  ;;  %v12265_v38 = vld [vmem:[%s15708_s4 + $0x16c8] ss:$16 sps:$4 sm:$0xff]   ;;  %v12270_v36 = vld [vmem:[%s15708_s4 + $0x16e4] ss:$16 sps:$4 sm:$0xff]  }
 0x677   : > { %8167 = vmatprep.subr.bf16.mxu1 %v12195_v62  ;;  %v12273_v62 = vld [vmem:[%s15708_s4 + $0x16ec] ss:$16 sps:$4 sm:$0xff]  }
 0x679   : > { %8082 = vmatpush1.bf16.msra.mxu0 %v12190_v31  ;;  %v12268_v31 = vld [vmem:[%s15708_s4 + $0x16e0] ss:$16 sps:$4 sm:$0xff]  }
 0x67a   : > { %8168 = vmatpush1.bf16.msra.mxu1 %v12193_v43  ;;  %8083 = vmatprep.subr.bf16.mxu0 %v12198_v45  ;;  %v12271_v43 = vld [vmem:[%s15708_s4 + $0x16e8] ss:$16 sps:$4 sm:$0xff]   ;;  %v12276_v45 = vld [vmem:[%s15708_s4 + $0x1704] ss:$16 sps:$4 sm:$0xff]  }
 0x67b   : > { %8169 = vmatprep.subr.bf16.mxu1 %v12201_v3  ;;  %v12279_v3 = vld [vmem:[%s15708_s4 + $0x170c] ss:$16 sps:$4 sm:$0xff]  }
 0x67d   : > { %8084 = vmatpush1.bf16.msra.mxu0 %v12196_v50  ;;  %v12274_v50 = vld [vmem:[%s15708_s4 + $0x1700] ss:$16 sps:$4 sm:$0xff]  }
 0x67e   : > { %8170 = vmatpush1.bf16.msra.mxu1 %v12199_v51  ;;  %8085 = vmatprep.subr.bf16.mxu0 %v12204_v52  ;;  %v12277_v51 = vld [vmem:[%s15708_s4 + $0x1708] ss:$16 sps:$4 sm:$0xff]   ;;  %v12282_v52 = vld [vmem:[%s15708_s4 + $0x1724] ss:$16 sps:$4 sm:$0xff]  }
 0x67f   : > { %8171 = vmatprep.subr.bf16.mxu1 %v12207_v0  ;;  %v12285_v0 = vld [vmem:[%s15708_s4 + $0x172c] ss:$16 sps:$4 sm:$0xff]  }
 0x681   : > { %8086 = vmatpush1.bf16.msra.mxu0 %v12202_v11  ;;  %v12280_v11 = vld [vmem:[%s15708_s4 + $0x1720] ss:$16 sps:$4 sm:$0xff]  }
 0x682   : > { %8172 = vmatpush1.bf16.msra.mxu1 %v12205_v20  ;;  %8087 = vmatprep.subr.bf16.mxu0 %v12210_v53  ;;  %v12283_v20 = vld [vmem:[%s15708_s4 + $0x1728] ss:$16 sps:$4 sm:$0xff]   ;;  %v12288_v53 = vld [vmem:[%s15708_s4 + $0x1744] ss:$16 sps:$4 sm:$0xff]  }
 0x683   : > { %8173 = vmatprep.subr.bf16.mxu1 %v12213_v25  ;;  %v12291_v25 = vld [vmem:[%s15708_s4 + $0x174c] ss:$16 sps:$4 sm:$0xff]  }
 0x685   : > { %8088 = vmatpush1.bf16.msra.mxu0 %v12208_v54  ;;  %v12286_v54 = vld [vmem:[%s15708_s4 + $0x1740] ss:$16 sps:$4 sm:$0xff]  }
 0x686   : > { %8174 = vmatpush1.bf16.msra.mxu1 %v12211_v16  ;;  %8089 = vmatprep.subr.bf16.mxu0 %v12216_v60  ;;  %v12289_v16 = vld [vmem:[%s15708_s4 + $0x1748] ss:$16 sps:$4 sm:$0xff]   ;;  %v12294_v60 = vld [vmem:[%s15708_s4 + $0x1764] ss:$16 sps:$4 sm:$0xff]  }
 0x687   : > { %8175 = vmatprep.subr.bf16.mxu1 %v12219_v55  ;;  %v12297_v55 = vld [vmem:[%s15708_s4 + $0x176c] ss:$16 sps:$4 sm:$0xff]  }
 0x689   : > { %8090 = vmatpush1.bf16.msra.mxu0 %v12214_v46  ;;  %v12292_v46 = vld [vmem:[%s15708_s4 + $0x1760] ss:$16 sps:$4 sm:$0xff]  }
 0x68a   : > { %8176 = vmatpush1.bf16.msra.mxu1 %v12217_v13  ;;  %8091 = vmatprep.subr.bf16.mxu0 %v12222_v57  ;;  %v12295_v13 = vld [vmem:[%s15708_s4 + $0x1768] ss:$16 sps:$4 sm:$0xff]   ;;  %v12300_v57 = vld [vmem:[%s15708_s4 + $0x1784] ss:$16 sps:$4 sm:$0xff]  }
 0x68b   : > { %8177 = vmatprep.subr.bf16.mxu1 %v12225_v22  ;;  %v12303_v22 = vld [vmem:[%s15708_s4 + $0x178c] ss:$16 sps:$4 sm:$0xff]  }
 0x68d   : > { %8092 = vmatpush1.bf16.msra.mxu0 %v12220_v15  ;;  %v12298_v15 = vld [vmem:[%s15708_s4 + $0x1780] ss:$16 sps:$4 sm:$0xff]  }
 0x68e   : > { %8178 = vmatpush1.bf16.msra.mxu1 %v12223_v58  ;;  %8104 = vmatprep.subr.bf16.mxu0 %v12228_v59  ;;  %v12301_v58 = vld [vmem:[%s15708_s4 + $0x1788] ss:$16 sps:$4 sm:$0xff]   ;;  %v12306_v59 = vld [vmem:[%s15708_s4 + $0x17a4] ss:$16 sps:$4 sm:$0xff]  }
 0x68f   : > { %8190 = vmatprep.subr.bf16.mxu1 %v12231_v17  ;;  %v12309_v17 = vld [vmem:[%s15708_s4 + $0x17ac] ss:$16 sps:$4 sm:$0xff]  }
 0x690   : > { %8094 = vmatmul.mubr.bf16.vlgmr.msra.gmra.mrb[40].mxu0 %v14020_v39 }
 0x691   : > { %8180 = vmatmul.mubr.bf16.vlgmr.msra.gmra.mrb[44].mxu1 %v14020_v39  ;;  %8105 = vmatpush1.bf16.msra.mxu0 %v12226_v61  ;;  %v12243_v39 = vld [vmem:[%s15708_s4 + $0x164c] ss:$16 sps:$4 sm:$0xff]   ;;  %v12304_v61 = vld [vmem:[%s15708_s4 + $0x17a0] ss:$16 sps:$4 sm:$0xff]  }
 0x692   : > { %8136 = vmatprep.mubr.bf16.mxu0 %v14029_v47  ;;  %8191 = vmatpush1.bf16.msra.mxu1 %v12229_v63  ;;  %v12307_v63 = vld [vmem:[%s15708_s4 + $0x17a8] ss:$16 sps:$4 sm:$0xff]  }
 0x693   : > { %8222 = vmatprep.mubr.bf16.mxu1 %v14029_v47  ;;  %8106 = vmatprep.subr.bf16.mxu0 %v12234_v4  ;;  %v12246_v47 = vld [vmem:[%s15708_s4 + $0x1664] ss:$16 sps:$4 sm:$0xff]  }
 0x694   : > { %8192 = vmatprep.subr.bf16.mxu1 %v12237_v5  ;;  %v12312_v4 = vld [vmem:[%s15708_s4 + $0x17c4] ss:$16 sps:$4 sm:$0xff]   ;;  %v12315_v5 = vld [vmem:[%s15708_s4 + $0x17cc] ss:$16 sps:$4 sm:$0xff]  }
 0x695   : > { %8107 = vmatpush1.bf16.msra.mxu0 %v12232_v27  ;;  %v12310_v27 = vld [vmem:[%s15708_s4 + $0x17c0] ss:$16 sps:$4 sm:$0xff]  }
 0x696   : > { %8193 = vmatpush1.bf16.msra.mxu1 %v12235_v6  ;;  %8108 = vmatprep.subr.bf16.mxu0 %v12240_v7  ;;  %v12313_v6 = vld [vmem:[%s15708_s4 + $0x17c8] ss:$16 sps:$4 sm:$0xff]   ;;  %v12318_v7 = vld [vmem:[%s15708_s4 + $0x17e4] ss:$16 sps:$4 sm:$0xff]  }
 0x697   : > { %8194 = vmatprep.subr.bf16.mxu1 %v12243_v39  ;;  %v12321_v39 = vld [vmem:[%s15708_s4 + $0x17ec] ss:$16 sps:$4 sm:$0xff]  }
 0x699   : > { %8109 = vmatpush1.bf16.msra.mxu0 %v12238_v8  ;;  %v12316_v8 = vld [vmem:[%s15708_s4 + $0x17e0] ss:$16 sps:$4 sm:$0xff]  }
 0x69a   : > { %8195 = vmatpush1.bf16.msra.mxu1 %v12241_v9  ;;  %8110 = vmatprep.subr.bf16.mxu0 %v12246_v47  ;;  %v12319_v9 = vld [vmem:[%s15708_s4 + $0x17e8] ss:$16 sps:$4 sm:$0xff]  }
 0x69b   : > { %8196 = vmatprep.subr.bf16.mxu1 %v12249_v40 }
 0x69d   : > { %8111 = vmatpush1.bf16.msra.mxu0 %v12244_v10 }
 0x69e   : > { %8197 = vmatpush1.bf16.msra.mxu1 %v12247_v12  ;;  %8112 = vmatprep.subr.bf16.mxu0 %v12252_v42 }
 0x69f   : > { %8198 = vmatprep.subr.bf16.mxu1 %v12255_v18 }
 0x6a1   : > { %8113 = vmatpush1.bf16.msra.mxu0 %v12250_v21 }
 0x6a2   : > { %8199 = vmatpush1.bf16.msra.mxu1 %v12253_v23  ;;  %8114 = vmatprep.subr.bf16.mxu0 %v12258_v28 }
 0x6a3   : > { %8200 = vmatprep.subr.bf16.mxu1 %v12261_v48 }
 0x6a5   : > { %8115 = vmatpush1.bf16.msra.mxu0 %v12256_v1 }
 0x6a6   : > { %8201 = vmatpush1.bf16.msra.mxu1 %v12259_v32  ;;  %8116 = vmatprep.subr.bf16.mxu0 %v12264_v33  ;;  %v12326_v33 = vld [vmem:[%s15711_s7 + $0x40] sm:$0xff]  }
 0x6a7   : > { %8202 = vmatprep.subr.bf16.mxu1 %v12267_v34  ;;  %v12327_v34 = vld [vmem:[%s15711_s7] sm:$0xff]  }
 0x6a9   : > { %8117 = vmatpush1.bf16.msra.mxu0 %v12262_v35  ;;  %v12322_v35 = vld [vmem:[%s15711_s7 + $0x80] sm:$0xff]  }
 0x6aa   : > { %8203 = vmatpush1.bf16.msra.mxu1 %v12265_v38  ;;  %8118 = vmatprep.subr.bf16.mxu0 %v12270_v36  ;;  %v12329_v38 = vld [vmem:[%s15711_s7 + $0x48] sm:$0xff]  }
 0x6ab   : > { %8204 = vmatprep.subr.bf16.mxu1 %v12273_v62  ;;  %v12355_v36 = vld [vmem:[%s15709_s5 + $0x8] sm:$0x7f] }
 0x6ac   : > { %v12323_v62 = vld [vmem:[%s15711_s7 + $0x88] sm:$0xff]  }
 0x6ad   : > { %8119 = vmatpush1.bf16.msra.mxu0 %v12268_v31  ;;  %v12332_v31 = vld [vmem:[%s15711_s7 + $0x50] sm:$0xff]  }
 0x6ae   : > { %8205 = vmatpush1.bf16.msra.mxu1 %v12271_v43  ;;  %8120 = vmatprep.subr.bf16.mxu0 %v12276_v45  ;;  %v12333_v43 = vld [vmem:[%s15711_s7 + $0x10] sm:$0xff]  }
 0x6af   : > { %8206 = vmatprep.subr.bf16.mxu1 %v12279_v3  ;;  %v12324_v45 = vld [vmem:[%s15711_s7 + $0x90] sm:$0xff]   ;;  %v12335_v3 = vld [vmem:[%s15711_s7 + $0x58] sm:$0xff]  }
 0x6b1   : > { %8121 = vmatpush1.bf16.msra.mxu0 %v12274_v50  ;;  %v12336_v50 = vld [vmem:[%s15711_s7 + $0x18] sm:$0xff]  }
 0x6b2   : > { %8207 = vmatpush1.bf16.msra.mxu1 %v12277_v51  ;;  %8122 = vmatprep.subr.bf16.mxu0 %v12282_v52  ;;  %v12325_v51 = vld [vmem:[%s15711_s7 + $0x98] sm:$0xff]   ;;  %v12338_v52 = vld [vmem:[%s15711_s7 + $0x60] sm:$0xff]  }
 0x6b3   : > { %8208 = vmatprep.subr.bf16.mxu1 %v12285_v0  ;;  %v12328_v0 = vld [vmem:[%s15711_s7 + $0xa0] sm:$0xff]  }
 0x6b5   : > { %8123 = vmatpush1.bf16.msra.mxu0 %v12280_v11  ;;  %v12331_v11 = vld [vmem:[%s15711_s7 + $0xa8] sm:$0xff]  }
 0x6b6   : > { %8209 = vmatpush1.bf16.msra.mxu1 %v12283_v20  ;;  %8124 = vmatprep.subr.bf16.mxu0 %v12288_v53  ;;  %v12334_v20 = vld [vmem:[%s15711_s7 + $0xb0] sm:$0xff]   ;;  %v12337_v53 = vld [vmem:[%s15711_s7 + $0xb8] sm:$0xff]  }
 0x6b7   : > { %8210 = vmatprep.subr.bf16.mxu1 %v12291_v25  ;;  %v12339_v25 = vld [vmem:[%s15711_s7 + $0x20] sm:$0xff]  }
 0x6b9   : > { %8125 = vmatpush1.bf16.msra.mxu0 %v12286_v54  ;;  %v12340_v54 = vld [vmem:[%s15711_s7 + $0xc0] sm:$0xff]  }
 0x6ba   : > { %8211 = vmatpush1.bf16.msra.mxu1 %v12289_v16  ;;  %8126 = vmatprep.subr.bf16.mxu0 %v12294_v60  ;;  %v12341_v16 = vld [vmem:[%s15711_s7 + $0x68] sm:$0xff]  }
 0x6bb   : > { %8212 = vmatprep.subr.bf16.mxu1 %v12297_v55  ;;  %v12342_v60 = vld [vmem:[%s15711_s7 + $0x28] sm:$0xff]  }
 0x6bc   : > { %v12343_v55 = vld [vmem:[%s15711_s7 + $0xc8] sm:$0xff]  }
 0x6bd   : > { %8127 = vmatpush1.bf16.msra.mxu0 %v12292_v46  ;;  %v12344_v46 = vld [vmem:[%s15711_s7 + $0x70] sm:$0xff]  }
 0x6be   : > { %8213 = vmatpush1.bf16.msra.mxu1 %v12295_v13  ;;  %8128 = vmatprep.subr.bf16.mxu0 %v12300_v57  ;;  %v12345_v13 = vld [vmem:[%s15711_s7 + $0x30] sm:$0xff]  }
 0x6bf   : > { %8214 = vmatprep.subr.bf16.mxu1 %v12303_v22  ;;  %v12346_v57 = vld [vmem:[%s15711_s7 + $0xd0] sm:$0xff]   ;;  %v12347_v22 = vld [vmem:[%s15711_s7 + $0x78] sm:$0xff]  }
 0x6c1   : > { %8129 = vmatpush1.bf16.msra.mxu0 %v12298_v15  ;;  %v12348_v15 = vld [vmem:[%s15711_s7 + $0x38] sm:$0xff]  }
 0x6c2   : > { %8215 = vmatpush1.bf16.msra.mxu1 %v12301_v58  ;;  %8130 = vmatprep.subr.bf16.mxu0 %v12306_v59  ;;  %v12349_v58 = vld [vmem:[%s15711_s7 + $0xd8] sm:$0xff]   ;;  %v12423_v59 = vmov 0.0|0.0  }
 0x6c3   : > { %8216 = vmatprep.subr.bf16.mxu1 %v12309_v17 }
 0x6c5   : > { %8131 = vmatpush1.bf16.msra.mxu0 %v12304_v61 }
 0x6c6   : > { %8217 = vmatpush1.bf16.msra.mxu1 %v12307_v63  ;;  %8132 = vmatprep.subr.bf16.mxu0 %v12312_v4 }
 0x6c7   : > { %8218 = vmatprep.subr.bf16.mxu1 %v12315_v5 }
 0x6c9   : > { %8133 = vmatpush1.bf16.msra.mxu0 %v12310_v27 }
 0x6ca   : > { %8219 = vmatpush1.bf16.msra.mxu1 %v12313_v6  ;;  %8134 = vmatprep.subr.bf16.mxu0 %v12318_v7 }
 0x6cb   : > { %8220 = vmatprep.subr.bf16.mxu1 %v12321_v39 }
 0x6cd   : > { %8135 = vmatpush1.bf16.msra.mxu0 %v12316_v8 }
 0x6ce   : > { %8221 = vmatpush1.bf16.msra.mxu1 %v12319_v9 }
 0x6d0   : > { %8137 = vmatmul.mubr.bf16.vlgmr.msra.gmra.mrb[40].mxu0 %v14211_v56 }
 0x6d1   : > { %8223 = vmatmul.mubr.bf16.vlgmr.msra.gmra.mrb[44].mxu1 %v14211_v56  ;;  %8317 = vmatprep.mubr.f32.mxu0 %v12421_v49  ;;  %v12354_v56 = vld [vmem:[%s15709_s5] sm:$0x7f] }
 0x6d2   : > { %8388 = vmatprep.mubr.f32.mxu1 %v12421_v49 }
 0x7a3   : > { %v8138_v47 = vpop.f32.mrb[40].mxu0 }
 0x7a4   : > { %v8224_v40 = vpop.f32.mrb[44].mxu1  ;;  %v8140_v10 = vpop.f32.mrb[41].mxu0 }
 0x7a5   : > { %v8226_v12 = vpop.f32.mrb[45].mxu1  ;;  %v8142_v42 = vpop.f32.mrb[42].mxu0 }
 0x7a6   : > { %v10861_v18 = vpack.c.bf16 %v8142_v42, %v8138_v47  ;;  %v8228_v21 = vpop.f32.mrb[46].mxu1  ;;  %v8144_v23 = vpop.f32.mrb[43].mxu0 }
 0x7a7   : > { %v10867_v28 = vpack.c.bf16 %v8228_v21, %v8224_v40  ;;  %v10858_v48 = vpack.c.bf16 %v8144_v23, %v8140_v10  ;;  %v8230_v1 = vpop.f32.mrb[47].mxu1 }
 0x7a8   : > { %v10864_v32 = vpack.c.bf16 %v8230_v1, %v8226_v12 }
 0x7a9   : > { %10860 = vmatprep.subr.msk.bf16.mxu0 %vm14218_vm7, %v10858_v48 }
 0x7aa   : > { %10866 = vmatprep.subr.msk.bf16.mxu1 %vm14218_vm7, %v10864_v32  ;;  %10863 = vmatpush1.bf16.msk.msra.mxu0 %vm14218_vm7, %v10861_v18 }
 0x7ab   : > { %10869 = vmatpush1.bf16.msk.msra.mxu1 %vm14218_vm7, %v10867_v28  ;;  %10872 = vmatprep.subr.msk.bf16.mxu0 %vm14218_vm7, %v10858_v48 }
 0x7ac   : > { %10878 = vmatprep.subr.msk.bf16.mxu1 %vm14218_vm7, %v10864_v32 }
 0x7ad   : > { %10637 = vmatmul.mubr.msk.f32.vlgmr.msra.gmra.mrb[44].mxu0 %vm5096_vm8, %v12354_v56 }
 0x7ae   : > { %10640 = vmatmul.mubr.msk.f32.vlgmr.msra.gmra.mrb[48].mxu1 %vm5096_vm8, %v12354_v56  ;;  %10875 = vmatpush1.bf16.msk.msra.mxu0 %vm14218_vm7, %v10861_v18 }
 0x7af   : > { %10881 = vmatpush1.bf16.msk.msra.mxu1 %vm14218_vm7, %v10867_v28  ;;  %8463 = vmatprep.mubr.f32.mxu0 %v12421_v49 }
 0x7b0   : > { %8534 = vmatprep.mubr.f32.mxu1 %v12421_v49  ;;  %8829 = vmatprep.subr.bf16.mxu1 %v12420_v2 }
 0x7b1   : > { %10643 = vmatmul.mubr.msk.f32.vlgmr.msra.gmra.mrb[46].mxu0 %vm5096_vm8, %v12355_v36  ;;  %10680 = vmatprep.subr.bf16.mxu0 %v12326_v33 }
 0x7b2   : > { %10646 = vmatmul.mubr.msk.f32.vlgmr.msra.gmra.mrb[50].mxu1 %vm5096_vm8, %v12355_v36  ;;  %10681 = vmatpush3.bf16.msra.mxu0 %v12327_v34 }
 0x7b3   : > { %8830 = vmatpush1.bf16.msra.mxu1 %v12322_v35  ;;  %10682 = vmatprep.subr.bf16.mxu0 %v12329_v38 }
 0x7b4   : > { %8831 = vmatprep.subr.bf16.mxu1 %v12420_v2 }
 0x7b6   : > { %10683 = vmatpush3.bf16.msra.mxu0 %v12330_v24 }
 0x7b7   : > { %8832 = vmatpush1.bf16.msra.mxu1 %v12323_v62  ;;  %10684 = vmatprep.subr.bf16.mxu0 %v12332_v31 }
 0x7b8   : > { %8833 = vmatprep.subr.bf16.mxu1 %v12420_v2 }
 0x7ba   : > { %10685 = vmatpush3.bf16.msra.mxu0 %v12333_v43  ;;  %v8873_v43 = vld [vmem:[%s15713_s9 + $0x10] sm:$0xff] }
 0x7bb   : > { %8834 = vmatpush1.bf16.msra.mxu1 %v12324_v45  ;;  %10686 = vmatprep.subr.bf16.mxu0 %v12335_v3  ;;  %v8874_v45 = vld [vmem:[%s15713_s9 + $0x18] sm:$0xff] }
 0x7bc   : > { %8835 = vmatprep.subr.bf16.mxu1 %v12420_v2 }
 0x7be   : > { %10687 = vmatpush3.bf16.msra.mxu0 %v12336_v50 }
 0x7bf   : > { %8836 = vmatpush1.bf16.msra.mxu1 %v12325_v51  ;;  %10688 = vmatprep.subr.bf16.mxu0 %v12338_v52  ;;  %v8877_v51 = vld [vmem:[%s15713_s9 + $0x30] sm:$0xff]  ;;  %v8878_v52 = vld [vmem:[%s15713_s9 + $0x38] sm:$0xff] }
 0x7c0   : > { %8837 = vmatprep.subr.bf16.mxu1 %v12420_v2 }
 0x7c2   : > { %10689 = vmatpush3.bf16.msra.mxu0 %v12339_v25  ;;  %v8881_v25 = vld [vmem:[%s15713_s9 + $0x50] sm:$0xff] }
 0x7c3   : > { %8838 = vmatpush1.bf16.msra.mxu1 %v12328_v0  ;;  %10690 = vmatprep.subr.bf16.mxu0 %v12341_v16  ;;  %v10892_v0 = vpack.c.bf16 %v8878_v52, %v8877_v51 }
 0x7c4   : > { %8839 = vmatprep.subr.bf16.mxu1 %v12420_v2 }
 0x7c6   : > { %10691 = vmatpush3.bf16.msra.mxu0 %v12342_v60  ;;  %v8883_v60 = vld [vmem:[%s15713_s9 + $0x60] sm:$0xff] }
 0x7c7   : > { %8840 = vmatpush1.bf16.msra.mxu1 %v12331_v11  ;;  %10692 = vmatprep.subr.bf16.mxu0 %v12344_v46  ;;  %v8879_v11 = vld [vmem:[%s15713_s9 + $0x40] sm:$0xff] }
 0x7c8   : > { %8841 = vmatprep.subr.bf16.mxu1 %v12420_v2 }
 0x7ca   : > { %10693 = vmatpush3.bf16.msra.mxu0 %v12345_v13  ;;  %v8885_v13 = vld [vmem:[%s15713_s9 + $0x70] sm:$0xff] }
 0x7cb   : > { %8842 = vmatpush1.bf16.msra.mxu1 %v12334_v20  ;;  %10694 = vmatprep.subr.bf16.mxu0 %v12347_v22  ;;  %v8880_v20 = vld [vmem:[%s15713_s9 + $0x48] sm:$0xff] }
 0x7cc   : > { %8843 = vmatprep.subr.bf16.mxu1 %v12420_v2 }
 0x7ce   : > { %10695 = vmatpush3.bf16.msra.mxu0 %v12348_v15 }
 0x7cf   : > { %8844 = vmatpush1.bf16.msra.mxu1 %v12337_v53  ;;  %10882 = vmatprep.subr.bf16.mxu0 %v12423_v59  ;;  %v10895_v53 = vpack.c.bf16 %v8880_v20, %v8879_v11 }
 0x7d0   : > { %8845 = vmatprep.subr.bf16.mxu1 %v12420_v2 }
 0x7d3   : > { %8846 = vmatpush1.bf16.msra.mxu1 %v12340_v54  ;;  %v8882_v54 = vld [vmem:[%s15713_s9 + $0x58] sm:$0xff] }
 0x7d4   : > { %8847 = vmatprep.subr.bf16.mxu1 %v12420_v2  ;;  %v10898_v16 = vpack.c.bf16 %v8882_v54, %v8881_v25 }
 0x7d7   : > { %8848 = vmatpush1.bf16.msra.mxu1 %v12343_v55  ;;  %v8884_v55 = vld [vmem:[%s15713_s9 + $0x68] sm:$0xff] }
 0x7d8   : > { %8849 = vmatprep.subr.bf16.mxu1 %v12420_v2  ;;  %v10901_v46 = vpack.c.bf16 %v8884_v55, %v8883_v60 }
 0x7db   : > { %8850 = vmatpush1.bf16.msra.mxu1 %v12346_v57  ;;  %v8886_v57 = vld [vmem:[%s15713_s9 + $0x78] sm:$0xff] }
 0x7dc   : > { %8851 = vmatprep.subr.bf16.mxu1 %v12420_v2  ;;  %v10904_v22 = vpack.c.bf16 %v8886_v57, %v8885_v13 }
 0x7df   : > { %8852 = vmatpush1.bf16.msra.mxu1 %v12349_v58 }
 0x880   : > { %v8319_v17 = vpop.f32.mrb[44].mxu0 }
 0x881   : > { %v8390_v61 = vpop.f32.mrb[48].mxu1  ;;  %v8321_v63 = vpop.f32.mrb[45].mxu0  ;;  %v8320_v5 = vadd.f32 %v8319_v17, %v14902_v29 }
 0x882   : > { %v8391_v4 = vadd.f32 %v8390_v61, %v14900_v14  ;;  %v8392_v2 = vpop.f32.mrb[49].mxu1  ;;  %v8322_v27 = vadd.f32 %v8321_v63, %v14912_v26 }
 0x883   : > { %v8393_v7 = vadd.f32 %v8392_v2, %v14907_v19  ;;  %v8395_v42 = vmax.f32 %v8320_v5, 0.0 }
 0x884   : > { %v8465_v6 = vpop.f32.mrb[46].mxu0  ;;  %v8397_v47 = vmax.f32 %v8391_v4, 0.0  ;;  %v8396_v23 = vmax.f32 %v8322_v27, 0.0 }
 0x885   : > { %v8466_v39 = vadd.f32 %v8465_v6, %v14902_v29  ;;  %v8536_v8 = vpop.f32.mrb[50].mxu1  ;;  %v8467_v9 = vpop.f32.mrb[47].mxu0  ;;  %v8398_v1 = vmax.f32 %v8393_v7, 0.0 }
 0x886   : > { %v8537_v40 = vadd.f32 %v8536_v8, %v14900_v14  ;;  %v8468_v10 = vadd.f32 %v8467_v9, %v14912_v26  ;;  %v8538_v12 = vpop.f32.mrb[51].mxu1  ;;  %v8871_v14 = vld [vmem:[%s15713_s9] sm:$0xff]  ;;  %v8872_v26 = vld [vmem:[%s15713_s9 + $0x8] sm:$0xff] }
 0x887   : > { %v8541_v18 = vmax.f32 %v8466_v39, 0.0  ;;  %v8539_v21 = vadd.f32 %v8538_v12, %v14907_v19  ;;  %v10883_v62 = vpack.c.bf16 %v8872_v26, %v8871_v14 }
 0x888   : > { %v8543_v28 = vmax.f32 %v8537_v40, 0.0  ;;  %v8542_v48 = vmax.f32 %v8468_v10, 0.0 }
 0x889   : > { %v8549_v32 = vmax.f32 %v8395_v42, %v8541_v18  ;;  %v8544_v56 = vmax.f32 %v8539_v21, 0.0  ;;  %v8957_v42 = vld [vmem:[%s15714_s10] sm:$0x1] }
 0x88a   : > { %v8551_v33 = vmax.f32 %v8397_v47, %v8543_v28  ;;  %v8550_v29 = vmax.f32 %v8396_v23, %v8542_v48 }
 0x88b   : > { %v8553_v34 = vmax.f32 %v14949_v37, %v8549_v32  ;;  %v8552_v35 = vmax.f32 %v8398_v1, %v8544_v56 }
 0x88c   : > { %v8555_v19 = vmax.f32 %v14951_v41, %v8551_v33  ;;  %v8554_v38 = vmax.f32 %v14953_v30, %v8550_v29  ;;  %v10886_v41 = vpack.c.bf16 %v8874_v45, %v8873_v43  ;;  %v8875_v30 = vld [vmem:[%s15713_s9 + $0x20] sm:$0xff] }
 0x88d   : > { %v8556_v36 = vmax.f32 %v14958_v44, %v8552_v35  ;;  %v8557_v31 = vpack.c.bf16 %v8553_v34, %v8553_v34  ;;  %v8876_v44 = vld [vmem:[%s15713_s9 + $0x28] sm:$0xff] }
 0x88e   : > { %v8558_v24 = vpack.c.bf16 %v8554_v38, %v8554_v38  ;;  %v8559_v3 = vpack.c.bf16 %v8555_v19, %v8555_v19  ;;  %v10889_v50 = vpack.c.bf16 %v8876_v44, %v8875_v30 }
 0x88f   : > { %v8560_v37 = vpack.c.bf16 %v8556_v36, %v8556_v36 }
 0x890   : > { %8821 = vmatprep.mubr.bf16.mxu0 %v8558_v24 }
 0x891   : > { %10675 = vmatprep.mubr.msk.bf16.mxu1 %vm8785_vm9, %v8560_v37  ;;  %8822 = vmatmul.mubr.bf16.vlgmr.msra.gmra.mrb[48].mxu0 %v8557_v31 }
 0x892   : > { %8862 = vmatmul.mubr.bf16.vlgmr.msra.gmra.mrb[52].mxu1 %v8559_v3  ;;  %10884 = vmatpush3.bf16.msra.mxu0 %v10883_v62 }
 0x893   : > { %10885 = vmatprep.subr.bf16.mxu0 %v12423_v59  ;;  %10751 = vmatprep.mubr.msk.f32.mxu0 %vm12424_vm10, %v12421_v49 }
 0x896   : > { %10887 = vmatpush3.bf16.msra.mxu0 %v10886_v41 }
 0x897   : > { %10888 = vmatprep.subr.bf16.mxu0 %v12423_v59 }
 0x89a   : > { %10890 = vmatpush3.bf16.msra.mxu0 %v10889_v50 }
 0x89b   : > { %10891 = vmatprep.subr.bf16.mxu0 %v12423_v59 }
 0x89e   : > { %10893 = vmatpush3.bf16.msra.mxu0 %v10892_v0 }
 0x89f   : > { %10894 = vmatprep.subr.bf16.mxu0 %v12423_v59 }
 0x8a2   : > { %10896 = vmatpush3.bf16.msra.mxu0 %v10895_v53 }
 0x8a3   : > { %10897 = vmatprep.subr.bf16.mxu0 %v12423_v59 }
 0x8a6   : > { %10899 = vmatpush3.bf16.msra.mxu0 %v10898_v16 }
 0x8a7   : > { %10900 = vmatprep.subr.bf16.mxu0 %v12423_v59 }
 0x8aa   : > { %10902 = vmatpush3.bf16.msra.mxu0 %v10901_v46 }
 0x8ab   : > { %10903 = vmatprep.subr.bf16.mxu0 %v12423_v59  ;;  %v8869_v59 = vld [vmem:[%s15712_s8] sm:$0x7f] }
 0x8ae   : > { %10905 = vmatpush3.bf16.msra.mxu0 %v10904_v22 }
 0x964   : > { %v10696_v15 = vpop.f32.mrb[48].mxu0 }
 0x965   : > { %v8863_v58 = vpop.f32.mrb[52].mxu1  ;;  %v10697_v17 = vpop.f32.mrb[49].mxu0 }
 0x966   : > { %v10698_v61 = vadd.f32 %v10697_v17, %v10696_v15  ;;  %v8865_v63 = vpop.f32.mrb[53].mxu1  ;;  %v10699_v4 = vpop.f32.mrb[50].mxu0 }
 0x967   : > { %v8866_v2 = vpop.f32.mrb[54].mxu1  ;;  %v10700_v5 = vpop.f32.mrb[51].mxu0 }
 0x968   : > { %v8864_v27 = vadd.f32 %v10698_v61, %v8863_v58  ;;  %v8867_v6 = vpop.f32.mrb[55].mxu1 }
 0x96a   : > { %v8870_v7 = vmul.f32 %v8869_v59, %v8864_v27 }
 0x96c   : > { %10752 = vmatmul.mubr.f32.vlgmr.msra.gmra.mrb[52].mxu0 %v8870_v7 }
 0xa3f   : > { %v8953_v39 = vpop.f32.mrb[52].mxu0 }
 0xa40   : > { %v8959_v8 = vsel %vm8958_vm11, %v8953_v39, 0.0  ;;  %v10753_v49 = vpop.f32.mrb[53].mxu0 }
 0xa41   : > { %v8960_v9 = vrot.slane %v8959_v8, 4 }
 0xa43   : > { %v8961_v47 = vadd.f32 %v8960_v9, %v8959_v8 }
 0xa45   : > { %v8962_v40 = vrot.slane %v8961_v47, 2 }
 0xa47   : > { %v8963_v10 = vadd.f32 %v8962_v40, %v8961_v47 }
 0xa49   : > { %v8964_v12 = vrot.slane %v8963_v10, 1 }
 0xa4b   : > { %v8965_v18 = vadd.f32 %v8964_v12, %v8963_v10 }
 0xa4d   : > { %v8966_v21 = vadd.f32 %v8965_v18, %v8957_v42 }
 0xa4f   : > { %v8968_v23 = vsel %vm8967_vm12, %v8966_v21, -inf }
 0xa50   : > { %8969 = vmax.xlane.f32.xlu0 %v8968_v23 }
 0xadd   : > { %v8970_v28 = vpop.xlane.xlu0 %8969 }
 0xade   : > { %v8971_v48 = vsub.f32 %v8966_v21, %v8970_v28 }
 0xae0   : > { %v8972_v1 = vmul.f32 1.442695, %v8971_v48 }
 0xae2   : > { %12350 = vpow2.f32 %v8972_v1 }
 0xaec   : > { %v12351_v32 = vpop.eup %12350 }
 0xaed   : > { %v8974_v56 = vsel %vm8967_vm12, %v12351_v32, 0.0 }
 0xaee   : > { %8975 = vadd.xlane.f32.xlu0 %v8974_v56 }
 0xb7b   : > { %v8976_v33 = vpop.xlane.xlu0 %8975 }
 0xb7c   : > { %12352 = vlog2.f32 %v8976_v33 }
 0xb86   : > { %v12353_v29 = vpop.eup %12352 }
 0xb87   : > { %v8978_v34 = vmul.f32 0.6931472, %v12353_v29 }
 0xb89   : > { %v8979_v35 = vadd.f32 %v8978_v34, %v8970_v28 }
 0xb8b   : > { %v8980_v14 = vsub.f32 %v8966_v21, %v8979_v35 }
 0xb8d   : > { %8981 = vst.msk [vmem:[%s378_s25] sm:$0x1] %vm8967_vm12, %v8980_v14 }
 0xb8e   : > { %12369 = shalt.err (!%p12366_p3)
}
 0xb8f   : > { %s12370_s16 = scalar_lea.hbm %s15661_s14, 16  ;;  %s12374_s24 = scalar_lea.hbm %s15715_s11, 32 }
 0xb90   : > { %p12371_p4 = scmp.ne.s32.totalorder %s15661_s14, %s12370_s16  ;;  %p12375_p9 = scmp.lt.u32.totalorder %s15661_s14, %s15715_s11 }
 0xb91   : > { %p12376_p10 = scmp.lt.u32.totalorder %s12374_s24, %s12370_s16  ;;  %p12378_p12 = scmp.lt.u32.totalorder %s12370_s16, %s15661_s14 }
 0xb92   : > { %p12372_p7 = pnand %p12371_p4, %p12524_p5 }
 0xb93   : > { %p12377_p11 = por %p12376_p10, %p12375_p9 }
 0xb94   : > { %p12373_p8 = pneg %p12372_p7 }
 0xb95   : > { %p12379_p13 = por %p12378_p12, %p12377_p11 }
 0xb97   : > { %p12380_p0 = pnand %p12379_p13, %p12373_p8 }
 0xb99   : > { %12383 = shalt.err (!%p12380_p0)
}
 0xb9a   : > { %11054 = dma.vmem_to_hbm [thread:$0]  (%p12524_p5), %s15663_s29, 16, %s15661_s14, %s8983_s26  }
 0xb9b PF: > { %p11060_p1 = scmp.ge.s32.totalorder %s12418_s20, 2  ;;  %s9007_s12 = sand.u32 1, %s12406_s17  }
 0xb9c   : > { %s9008_s13 = scalar_lea.sflag [#allocation4], %s9007_s12 }
 0xb9d   : > { %p11057_p2 = pnand %p11060_p1, %p12528_p6 }
 0xb9f   : > { %12401 = dma.done.wait (!%p11057_p2), %s9008_s13, 16  }
 0xba0   : > { %12403 = vsyncadd (!%p11057_p2), %s9008_s13, 4294967280  ;;  %s15723_s15 = sld [smem:[#allocation6_spill]]  ;;  %p21_p3 = scmp.ge.s32.totalorder %s12511_s23, 4  }
 0xba1   : > { %s15724_s17 = smov %s12410_s18  ;;  %s15725_s18 = smov %s12414_s19 }
 0xba2   : > { %s15727_s20 = smov %s12511_s23  ;;  %23 = sbr.rel (!%p21_p3) target bundleno = 3 (0x3), region = 111 }
 0xba6   : > { %s15726_s19 = smov %s15723_s15 }
 0xba9   :  { %9012 = vsyncpa [#allocation4], 1 }
 0xbaa   :  { %9014 = vsyncpa [#allocation4 + $0x1], 1 }

</bundles_post_ra>
